<compile_context>
chip_gen: v7x
topology: tpu7x:2x2x1
jax: 0.10.0
libtpu: 0.0.40
codegen_flags: <defaults>
</compile_context>

<pallas_src>
import jax
import jax.numpy as jnp
import numpy as np
from jax.experimental import pallas as pl
from jax.experimental.pallas import tpu as pltpu


# ----------------------------------------------------------------------------
# Fused kernel (one grid step = one chunk of Bc images)
# ----------------------------------------------------------------------------
def _net_kernel(x_ref, gt_ref, w1r_ref, w2r_ref, s1_ref, r1_ref, b1p_ref,
                s2_ref, r2_ref, b2r_ref, wrt_ref, mkc_ref, rg_ref, cg_ref,
                logits_ref, loss_ref):
    f32 = jnp.float32
    Bc = logits_ref.shape[0]          # images per grid step
    W1 = 32 * Bc                      # stride-32 padded conv1 frame width
    W1m = W1 - 2                      # tap / accumulator width (dj<=2 headroom)
    W2 = 32 * Bc                      # stride-16 padded conv2 frame width (2 ch)
    W2m = W2 - 2

    def conv_taps(src, rows, width, wrows_ref, n_out):
        # src holds zero-padded frames lane-stacked across the whole chunk.
        # Output channel co accumulates sum_t wrow[co*9+t, c] * src[di+r, dj+c]
        # over the full chunk width in one MAC per tap (no per-image loops).
        accs = [jnp.zeros((rows, width), f32) for _ in range(n_out)]
        for t in range(9):
            di, dj = t // 3, t % 3
            tap = src[di:di + rows, dj:dj + width]
            for co in range(n_out):
                accs[co] = accs[co] + \
                    wrows_ref[co * 9 + t:co * 9 + t + 1, :width] * tap
        return accs

    def pool_cols(acc0, acc1, s_ref):
        # Host-built 0/1 selection matmuls on the MXU: column phase select for
        # the 2x2 max-pool, relayout to the next stage's padded frame layout,
        # and (for conv2) the input-channel sum -- all in one matmul per phase
        # and channel.
        def phase(p):
            return (jnp.dot(acc0, s_ref[p], preferred_element_type=f32) +
                    jnp.dot(acc1, s_ref[2 + p], preferred_element_type=f32))
        return jnp.maximum(phase(0), phase(1))

    def pool_rows(cm, r_ref):
        return jnp.maximum(jnp.dot(r_ref[0], cm, preferred_element_type=f32),
                           jnp.dot(r_ref[1], cm, preferred_element_type=f32))

    # ---- conv1 (1->2) -> maxpool2x2 -> relu ---------------------------------
    # Output is emitted directly as zero-padded 16x16 frames per
    # (image, channel) so conv2 needs no re-padding / scatter.
    a1 = conv_taps(x_ref, 28, W1m, w1r_ref, 2)
    cm1 = pool_cols(a1[0], a1[1], s1_ref)                            # (28, W2)
    p1 = jnp.maximum(pool_rows(cm1, r1_ref) + b1p_ref[...], 0.0)     # (16, W2)

    # ---- conv2 (2->2) -> maxpool2x2 -> relu ---------------------------------
    a2 = conv_taps(p1, 14, W2m, w2r_ref, 2)
    cm2 = pool_cols(a2[0], a2[1], s2_ref)                            # (14, 14*Bc)
    p2 = jnp.maximum(pool_rows(cm2, r2_ref) + b2r_ref[...], 0.0)     # (7, 14*Bc)

    # ---- flatten + fc: three matmuls + one mask multiply --------------------
    # logits[b,o] = sum_{i,m} p2[i, b*14+m] * Wfc_perm[i, m, o]
    qt = jnp.dot(wrt_ref[...], p2, preferred_element_type=f32)       # (140, 14*Bc)
    a = jnp.dot(rg_ref[...], qt * mkc_ref[...],
                preferred_element_type=f32)                          # (10, 14*Bc)
    logits = jax.lax.dot_general(cg_ref[...], a, (((1,), (1,)), ((), ())),
                                 preferred_element_type=f32)         # (Bc, 10)
    logits_ref[...] = logits

    # ---- softmax + cross-entropy on the SOFTMAX output (reference quirk) ----
    mx = jnp.max(logits, axis=1, keepdims=True)
    e = jnp.exp(logits - mx)
    s = e / jnp.sum(e, axis=1, keepdims=True)
    smx = jnp.max(s, axis=1, keepdims=True)
    lse = jnp.log(jnp.sum(jnp.exp(s - smx), axis=1, keepdims=True)) + smx
    cls = jax.lax.broadcasted_iota(jnp.int32, logits.shape, 1)
    picked = jnp.sum(jnp.where(cls == gt_ref[...], s, 0.0), axis=1, keepdims=True)
    loss_ref[...] = lse - picked                                      # per-sample


# ----------------------------------------------------------------------------
# Host-side one-time preparation of all constant kernel inputs
# ----------------------------------------------------------------------------
def prepare_params(params, Bc=8):
    assert Bc % 8 == 0, "chunk size must keep blocks (8,128)-friendly"
    w1 = np.asarray(params["w1"], np.float32)     # (2,1,3,3)
    b1 = np.asarray(params["b1"], np.float32)     # (2,)
    w2 = np.asarray(params["w2"], np.float32)     # (2,2,3,3)
    b2 = np.asarray(params["b2"], np.float32)     # (2,)
    wfc = np.asarray(params["wfc"], np.float32)   # (10, 98)

    W1 = 32 * Bc
    W1m = W1 - 2
    P2W = 14 * Bc

    # per-lane weight rows (uniform MAC shape for both convs, no SMEM scalars)
    w1_rows = np.zeros((18, W1), np.float32)
    w2_rows = np.zeros((18, W1), np.float32)
    ci_of_col = (np.arange(W1) // 16) % 2
    for co in range(2):
        for t in range(9):
            di, dj = t // 3, t % 3
            w1_rows[co * 9 + t, :] = w1[co, 0, di, dj]
            w2_rows[co * 9 + t, :] = w2[co, ci_of_col, di, dj]

    # stage-1 pooling: column phase-select + relayout into padded 16x16 frames
    s1 = np.zeros((4, W1m, W1), np.float32)
    for co in range(2):
        for p in range(2):
            for b in range(Bc):
                for v in range(14):
                    s1[co * 2 + p, b * 32 + 2 * v + p,
                       (2 * b + co) * 16 + 1 + v] = 1.0
    r1 = np.zeros((2, 16, 28), np.float32)
    for p in range(2):
        for r in range(14):
            r1[p, 1 + r, 2 * r + p] = 1.0
    bias1 = np.zeros((16, W1), np.float32)        # zeros on pad rows / gutters
    for co in range(2):
        for b in range(Bc):
            k = 2 * b + co
            bias1[1:15, k * 16 + 1:k * 16 + 15] = b1[co]

    # stage-2 pooling: column phase-select + input-channel sum + tight repack
    s2 = np.zeros((4, W1m, P2W), np.float32)
    for co in range(2):
        for p in range(2):
            for b in range(Bc):
                for ci in range(2):
                    for v in range(7):
                        s2[co * 2 + p, (2 * b + ci) * 16 + 2 * v + p,
                           (2 * b + co) * 7 + v] = 1.0
    r2 = np.zeros((2, 7, 14), np.float32)
    for p in range(2):
        for r in range(7):
            r2[p, r, 2 * r + p] = 1.0
    bias2 = np.zeros((1, P2W), np.float32)
    for co in range(2):
        for b in range(Bc):
            bias2[0, (2 * b + co) * 7:(2 * b + co) * 7 + 7] = b2[co]

    # flatten+FC as matmuls: wrt (FC weight permuted to [class*14+m, i]),
    # block-diagonal trace mask, and the two group-sum matrices.
    wrt = np.zeros((140, 7), np.float32)
    for o in range(10):
        for m in range(14):
            c, j = m // 7, m % 7
            for i in range(7):
                wrt[o * 14 + m, i] = wfc[o, c * 49 + i * 7 + j]
    k_idx = np.arange(140)
    c_idx = np.arange(P2W)
    maskkc = (k_idx[:, None] % 14 == c_idx[None, :] % 14).astype(np.float32)
    rgrow = (k_idx[None, :] // 14 == np.arange(10)[:, None]).astype(np.float32)
    cgrow = (c_idx[None, :] // 14 == np.arange(Bc)[:, None]).astype(np.float32)

    arrs = dict(w1_rows=w1_rows, w2_rows=w2_rows, s1=s1, r1=r1, bias1=bias1,
                s2=s2, r2=r2, bias2=bias2, wrt=wrt, maskkc=maskkc,
                rgrow=rgrow, cgrow=cgrow)
    return {k: jnp.asarray(v) for k, v in arrs.items()}


# ----------------------------------------------------------------------------
# Forward wrapper: batch grid over chunks of Bc images
# ----------------------------------------------------------------------------
def net_forward(prep, x, gt):
    B = x.shape[0]
    Bc = prep["cgrow"].shape[0]
    assert B % Bc == 0
    grid = (B // Bc,)

    # cheap host-side (XLA) input formatting: padded, lane-stacked conv1 frames
    xp = jnp.zeros((B, 32, 32), jnp.float32)
    xp = xp.at[:, 1:29, 1:29].set(x[:, 0].astype(jnp.float32))
    x_pad = jnp.transpose(xp, (1, 0, 2)).reshape(32, B * 32)
    gt2d = gt.astype(jnp.int32).reshape(B, 1)

    const_names = ("w1_rows", "w2_rows", "s1", "r1", "bias1",
                   "s2", "r2", "bias2", "wrt", "maskkc", "rgrow", "cgrow")
    consts = [prep[k] for k in const_names]

    def full_spec(a):
        nd = a.ndim
        return pl.BlockSpec(a.shape, lambda i, _nd=nd: (0,) * _nd)

    logits, loss_ps = pl.pallas_call(
        _net_kernel,
        grid=grid,
        out_shape=(jax.ShapeDtypeStruct((B, 10), jnp.float32),
                   jax.ShapeDtypeStruct((B, 1), jnp.float32)),
        in_specs=[pl.BlockSpec((32, Bc * 32), lambda i: (0, i)),   # x (lane-blocked)
                  pl.BlockSpec((Bc, 1), lambda i: (i, 0))]         # labels
                 + [full_spec(c) for c in consts],                 # constants
        out_specs=(pl.BlockSpec((Bc, 10), lambda i: (i, 0)),
                   pl.BlockSpec((Bc, 1), lambda i: (i, 0))),
        compiler_params=pltpu.CompilerParams(
            dimension_semantics=("parallel",)),
    )(x_pad, gt2d, *consts)
    return logits, jnp.sum(loss_ps)


# ----------------------------------------------------------------------------
# Pure-JAX reference for correctness checking
# ----------------------------------------------------------------------------
def ref_forward(params, x, gt):
    def conv(h, w, b):
        y = jax.lax.conv_general_dilated(
            h, w, (1, 1), ((1, 1), (1, 1)),
            dimension_numbers=("NCHW", "OIHW", "NCHW"),
            precision=jax.lax.Precision.HIGHEST)
        return y + b[None, :, None, None]

    def pool(h):
        B, C, H, W = h.shape
        return jnp.max(h.reshape(B, C, H // 2, 2, W // 2, 2), axis=(3, 5))

    h = jax.nn.relu(pool(conv(x, params["w1"], params["b1"])))
    h = jax.nn.relu(pool(conv(h, params["w2"], params["b2"])))
    logits = jnp.einsum("bn,kn->bk", h.reshape(x.shape[0], -1), params["wfc"],
                        precision=jax.lax.Precision.HIGHEST)
    s = jax.nn.softmax(logits, axis=1)
    lse = jax.scipy.special.logsumexp(s, axis=1)
    picked = jnp.take_along_axis(s, gt[:, None], axis=1)[:, 0]
    return logits, jnp.sum(lse - picked)


if __name__ == "__main__":
    key = jax.random.PRNGKey(0)
    kx, kgt, k1, k2, k3, k4, k5 = jax.random.split(key, 7)

    B, Bc = 16, 8
    x = jax.random.normal(kx, (B, 1, 28, 28), jnp.float32)
    gt = jax.random.randint(kgt, (B,), 0, 10, jnp.int32)

    # deterministic parameter init (bounds mimic PyTorch defaults / the module)
    params = {
        "w1": jax.random.uniform(k1, (2, 1, 3, 3), jnp.float32, -1.0 / 3, 1.0 / 3),
        "b1": jax.random.uniform(k2, (2,), jnp.float32, -1.0 / 3, 1.0 / 3),
        "w2": jax.random.uniform(k3, (2, 2, 3, 3), jnp.float32, -0.2357, 0.2357),
        "b2": jax.random.uniform(k4, (2,), jnp.float32, -0.2357, 0.2357),
        "wfc": jax.random.uniform(k5, (10, 2 * 7 * 7), jnp.float32, -0.01, 0.01),
    }
    prep = prepare_params(params, Bc=Bc)     # one-time constant build

    fwd = jax.jit(net_forward)
    logits, loss = fwd(prep, x, gt)
    jax.block_until_ready((logits, loss))

    ref_logits, ref_loss = jax.jit(ref_forward)(params, x, gt)
    np.testing.assert_allclose(np.asarray(logits), np.asarray(ref_logits),
                               rtol=1e-2, atol=2e-3)
    np.testing.assert_allclose(float(loss), float(ref_loss),
                               rtol=1e-2, atol=2e-3)

    print("KERNEL_OK")
</pallas_src>

<mosaic_0001>
module attributes {stable_mosaic.version = 11 : i64} {
  func.func @_net_kernel(%arg0: i32, %arg1: memref<32x256xf32, #tpu.memory_space<vmem>>, %arg2: memref<8x1xi32, #tpu.memory_space<vmem>>, %arg3: memref<18x256xf32, #tpu.memory_space<vmem>>, %arg4: memref<18x256xf32, #tpu.memory_space<vmem>>, %arg5: memref<4x254x256xf32, #tpu.memory_space<vmem>>, %arg6: memref<2x16x28xf32, #tpu.memory_space<vmem>>, %arg7: memref<16x256xf32, #tpu.memory_space<vmem>>, %arg8: memref<4x254x112xf32, #tpu.memory_space<vmem>>, %arg9: memref<2x7x14xf32, #tpu.memory_space<vmem>>, %arg10: memref<1x112xf32, #tpu.memory_space<vmem>>, %arg11: memref<140x7xf32, #tpu.memory_space<vmem>>, %arg12: memref<140x112xf32, #tpu.memory_space<vmem>>, %arg13: memref<10x140xf32, #tpu.memory_space<vmem>>, %arg14: memref<8x112xf32, #tpu.memory_space<vmem>>, %arg15: memref<8x10xf32, #tpu.memory_space<vmem>>, %arg16: memref<8x1xf32, #tpu.memory_space<vmem>>) attributes {dimension_semantics = [#tpu.dimension_semantics<parallel>], iteration_bounds = array<i64: 2>, scalar_prefetch = 0 : i64, scratch_operands = 0 : i64, tpu.core_type = #tpu.core_type<tc>, window_params = [{transform_indices = @transform_0, window_bounds = array<i64: 32, 256>}, {transform_indices = @transform_1, window_bounds = array<i64: 8, 1>}, {pipeline_mode = #tpu.pipeline_mode<synchronous>, transform_indices = @transform_2, window_bounds = array<i64: 18, 256>}, {pipeline_mode = #tpu.pipeline_mode<synchronous>, transform_indices = @transform_3, window_bounds = array<i64: 18, 256>}, {pipeline_mode = #tpu.pipeline_mode<synchronous>, transform_indices = @transform_4, window_bounds = array<i64: 4, 254, 256>}, {pipeline_mode = #tpu.pipeline_mode<synchronous>, transform_indices = @transform_5, window_bounds = array<i64: 2, 16, 28>}, {pipeline_mode = #tpu.pipeline_mode<synchronous>, transform_indices = @transform_6, window_bounds = array<i64: 16, 256>}, {pipeline_mode = #tpu.pipeline_mode<synchronous>, transform_indices = @transform_7, window_bounds = array<i64: 4, 254, 112>}, {pipeline_mode = #tpu.pipeline_mode<synchronous>, transform_indices = @transform_8, window_bounds = array<i64: 2, 7, 14>}, {pipeline_mode = #tpu.pipeline_mode<synchronous>, transform_indices = @transform_9, window_bounds = array<i64: 1, 112>}, {pipeline_mode = #tpu.pipeline_mode<synchronous>, transform_indices = @transform_10, window_bounds = array<i64: 140, 7>}, {pipeline_mode = #tpu.pipeline_mode<synchronous>, transform_indices = @transform_11, window_bounds = array<i64: 140, 112>}, {pipeline_mode = #tpu.pipeline_mode<synchronous>, transform_indices = @transform_12, window_bounds = array<i64: 10, 140>}, {pipeline_mode = #tpu.pipeline_mode<synchronous>, transform_indices = @transform_13, window_bounds = array<i64: 8, 112>}, {transform_indices = @transform_14, window_bounds = array<i64: 8, 10>}, {transform_indices = @transform_15, window_bounds = array<i64: 8, 1>}]} {
    %cst = arith.constant 0.000000e+00 : f32
    %0 = vector.broadcast %cst : f32 to vector<28x254xf32>
    %cst_0 = arith.constant 0.000000e+00 : f32
    %1 = vector.broadcast %cst_0 : f32 to vector<28x254xf32>
    %c0 = arith.constant 0 : index
    %c0_1 = arith.constant 0 : index
    %2 = vector.load %arg1[%c0, %c0_1] : memref<32x256xf32, #tpu.memory_space<vmem>>, vector<28x254xf32>
    %c0_2 = arith.constant 0 : index
    %c0_3 = arith.constant 0 : index
    %3 = vector.load %arg3[%c0_2, %c0_3] : memref<18x256xf32, #tpu.memory_space<vmem>>, vector<1x254xf32>
    %4 = vector.broadcast %3 : vector<1x254xf32> to vector<28x254xf32>
    %5 = arith.mulf %4, %2 : vector<28x254xf32>
    %6 = arith.addf %0, %5 : vector<28x254xf32>
    %c9 = arith.constant 9 : index
    %c0_4 = arith.constant 0 : index
    %7 = vector.load %arg3[%c9, %c0_4] : memref<18x256xf32, #tpu.memory_space<vmem>>, vector<1x254xf32>
    %8 = vector.broadcast %7 : vector<1x254xf32> to vector<28x254xf32>
    %9 = arith.mulf %8, %2 : vector<28x254xf32>
    %10 = arith.addf %1, %9 : vector<28x254xf32>
    %c0_5 = arith.constant 0 : index
    %c1 = arith.constant 1 : index
    %11 = vector.load %arg1[%c0_5, %c1] : memref<32x256xf32, #tpu.memory_space<vmem>>, vector<28x254xf32>
    %c1_6 = arith.constant 1 : index
    %c0_7 = arith.constant 0 : index
    %12 = vector.load %arg3[%c1_6, %c0_7] : memref<18x256xf32, #tpu.memory_space<vmem>>, vector<1x254xf32>
    %13 = vector.broadcast %12 : vector<1x254xf32> to vector<28x254xf32>
    %14 = arith.mulf %13, %11 : vector<28x254xf32>
    %15 = arith.addf %6, %14 : vector<28x254xf32>
    %c10 = arith.constant 10 : index
    %c0_8 = arith.constant 0 : index
    %16 = vector.load %arg3[%c10, %c0_8] : memref<18x256xf32, #tpu.memory_space<vmem>>, vector<1x254xf32>
    %17 = vector.broadcast %16 : vector<1x254xf32> to vector<28x254xf32>
    %18 = arith.mulf %17, %11 : vector<28x254xf32>
    %19 = arith.addf %10, %18 : vector<28x254xf32>
    %c0_9 = arith.constant 0 : index
    %c2 = arith.constant 2 : index
    %20 = vector.load %arg1[%c0_9, %c2] : memref<32x256xf32, #tpu.memory_space<vmem>>, vector<28x254xf32>
    %c2_10 = arith.constant 2 : index
    %c0_11 = arith.constant 0 : index
    %21 = vector.load %arg3[%c2_10, %c0_11] : memref<18x256xf32, #tpu.memory_space<vmem>>, vector<1x254xf32>
    %22 = vector.broadcast %21 : vector<1x254xf32> to vector<28x254xf32>
    %23 = arith.mulf %22, %20 : vector<28x254xf32>
    %24 = arith.addf %15, %23 : vector<28x254xf32>
    %c11 = arith.constant 11 : index
    %c0_12 = arith.constant 0 : index
    %25 = vector.load %arg3[%c11, %c0_12] : memref<18x256xf32, #tpu.memory_space<vmem>>, vector<1x254xf32>
    %26 = vector.broadcast %25 : vector<1x254xf32> to vector<28x254xf32>
    %27 = arith.mulf %26, %20 : vector<28x254xf32>
    %28 = arith.addf %19, %27 : vector<28x254xf32>
    %c1_13 = arith.constant 1 : index
    %c0_14 = arith.constant 0 : index
    %29 = vector.load %arg1[%c1_13, %c0_14] : memref<32x256xf32, #tpu.memory_space<vmem>>, vector<28x254xf32>
    %c3 = arith.constant 3 : index
    %c0_15 = arith.constant 0 : index
    %30 = vector.load %arg3[%c3, %c0_15] : memref<18x256xf32, #tpu.memory_space<vmem>>, vector<1x254xf32>
    %31 = vector.broadcast %30 : vector<1x254xf32> to vector<28x254xf32>
    %32 = arith.mulf %31, %29 : vector<28x254xf32>
    %33 = arith.addf %24, %32 : vector<28x254xf32>
    %c12 = arith.constant 12 : index
    %c0_16 = arith.constant 0 : index
    %34 = vector.load %arg3[%c12, %c0_16] : memref<18x256xf32, #tpu.memory_space<vmem>>, vector<1x254xf32>
    %35 = vector.broadcast %34 : vector<1x254xf32> to vector<28x254xf32>
    %36 = arith.mulf %35, %29 : vector<28x254xf32>
    %37 = arith.addf %28, %36 : vector<28x254xf32>
    %c1_17 = arith.constant 1 : index
    %c1_18 = arith.constant 1 : index
    %38 = vector.load %arg1[%c1_17, %c1_18] : memref<32x256xf32, #tpu.memory_space<vmem>>, vector<28x254xf32>
    %c4 = arith.constant 4 : index
    %c0_19 = arith.constant 0 : index
    %39 = vector.load %arg3[%c4, %c0_19] : memref<18x256xf32, #tpu.memory_space<vmem>>, vector<1x254xf32>
    %40 = vector.broadcast %39 : vector<1x254xf32> to vector<28x254xf32>
    %41 = arith.mulf %40, %38 : vector<28x254xf32>
    %42 = arith.addf %33, %41 : vector<28x254xf32>
    %c13 = arith.constant 13 : index
    %c0_20 = arith.constant 0 : index
    %43 = vector.load %arg3[%c13, %c0_20] : memref<18x256xf32, #tpu.memory_space<vmem>>, vector<1x254xf32>
    %44 = vector.broadcast %43 : vector<1x254xf32> to vector<28x254xf32>
    %45 = arith.mulf %44, %38 : vector<28x254xf32>
    %46 = arith.addf %37, %45 : vector<28x254xf32>
    %c1_21 = arith.constant 1 : index
    %c2_22 = arith.constant 2 : index
    %47 = vector.load %arg1[%c1_21, %c2_22] : memref<32x256xf32, #tpu.memory_space<vmem>>, vector<28x254xf32>
    %c5 = arith.constant 5 : index
    %c0_23 = arith.constant 0 : index
    %48 = vector.load %arg3[%c5, %c0_23] : memref<18x256xf32, #tpu.memory_space<vmem>>, vector<1x254xf32>
    %49 = vector.broadcast %48 : vector<1x254xf32> to vector<28x254xf32>
    %50 = arith.mulf %49, %47 : vector<28x254xf32>
    %51 = arith.addf %42, %50 : vector<28x254xf32>
    %c14 = arith.constant 14 : index
    %c0_24 = arith.constant 0 : index
    %52 = vector.load %arg3[%c14, %c0_24] : memref<18x256xf32, #tpu.memory_space<vmem>>, vector<1x254xf32>
    %53 = vector.broadcast %52 : vector<1x254xf32> to vector<28x254xf32>
    %54 = arith.mulf %53, %47 : vector<28x254xf32>
    %55 = arith.addf %46, %54 : vector<28x254xf32>
    %c2_25 = arith.constant 2 : index
    %c0_26 = arith.constant 0 : index
    %56 = vector.load %arg1[%c2_25, %c0_26] : memref<32x256xf32, #tpu.memory_space<vmem>>, vector<28x254xf32>
    %c6 = arith.constant 6 : index
    %c0_27 = arith.constant 0 : index
    %57 = vector.load %arg3[%c6, %c0_27] : memref<18x256xf32, #tpu.memory_space<vmem>>, vector<1x254xf32>
    %58 = vector.broadcast %57 : vector<1x254xf32> to vector<28x254xf32>
    %59 = arith.mulf %58, %56 : vector<28x254xf32>
    %60 = arith.addf %51, %59 : vector<28x254xf32>
    %c15 = arith.constant 15 : index
    %c0_28 = arith.constant 0 : index
    %61 = vector.load %arg3[%c15, %c0_28] : memref<18x256xf32, #tpu.memory_space<vmem>>, vector<1x254xf32>
    %62 = vector.broadcast %61 : vector<1x254xf32> to vector<28x254xf32>
    %63 = arith.mulf %62, %56 : vector<28x254xf32>
    %64 = arith.addf %55, %63 : vector<28x254xf32>
    %c2_29 = arith.constant 2 : index
    %c1_30 = arith.constant 1 : index
    %65 = vector.load %arg1[%c2_29, %c1_30] : memref<32x256xf32, #tpu.memory_space<vmem>>, vector<28x254xf32>
    %c7 = arith.constant 7 : index
    %c0_31 = arith.constant 0 : index
    %66 = vector.load %arg3[%c7, %c0_31] : memref<18x256xf32, #tpu.memory_space<vmem>>, vector<1x254xf32>
    %67 = vector.broadcast %66 : vector<1x254xf32> to vector<28x254xf32>
    %68 = arith.mulf %67, %65 : vector<28x254xf32>
    %69 = arith.addf %60, %68 : vector<28x254xf32>
    %c16 = arith.constant 16 : index
    %c0_32 = arith.constant 0 : index
    %70 = vector.load %arg3[%c16, %c0_32] : memref<18x256xf32, #tpu.memory_space<vmem>>, vector<1x254xf32>
    %71 = vector.broadcast %70 : vector<1x254xf32> to vector<28x254xf32>
    %72 = arith.mulf %71, %65 : vector<28x254xf32>
    %73 = arith.addf %64, %72 : vector<28x254xf32>
    %c2_33 = arith.constant 2 : index
    %c2_34 = arith.constant 2 : index
    %74 = vector.load %arg1[%c2_33, %c2_34] : memref<32x256xf32, #tpu.memory_space<vmem>>, vector<28x254xf32>
    %c8 = arith.constant 8 : index
    %c0_35 = arith.constant 0 : index
    %75 = vector.load %arg3[%c8, %c0_35] : memref<18x256xf32, #tpu.memory_space<vmem>>, vector<1x254xf32>
    %76 = vector.broadcast %75 : vector<1x254xf32> to vector<28x254xf32>
    %77 = arith.mulf %76, %74 : vector<28x254xf32>
    %78 = arith.addf %69, %77 : vector<28x254xf32>
    %c17 = arith.constant 17 : index
    %c0_36 = arith.constant 0 : index
    %79 = vector.load %arg3[%c17, %c0_36] : memref<18x256xf32, #tpu.memory_space<vmem>>, vector<1x254xf32>
    %80 = vector.broadcast %79 : vector<1x254xf32> to vector<28x254xf32>
    %81 = arith.mulf %80, %74 : vector<28x254xf32>
    %82 = arith.addf %73, %81 : vector<28x254xf32>
    %c0_37 = arith.constant 0 : index
    %c0_38 = arith.constant 0 : index
    %c0_39 = arith.constant 0 : index
    %83 = vector.load %arg5[%c0_37, %c0_38, %c0_39] : memref<4x254x256xf32, #tpu.memory_space<vmem>>, vector<1x254x256xf32>
    %84 = vector.shape_cast %83 : vector<1x254x256xf32> to vector<254x256xf32>
    %cst_40 = arith.constant dense<0.000000e+00> : vector<28x256xf32>
    %85 = tpu.matmul %78, %84, %cst_40 {dimension_numbers = #tpu.dot_dimension_numbers<[1], [0], [0], [1], [0, 0, 1, 1], [], []>} : vector<28x254xf32>, vector<254x256xf32>, vector<28x256xf32> -> vector<28x256xf32>
    %c2_41 = arith.constant 2 : index
    %c0_42 = arith.constant 0 : index
    %c0_43 = arith.constant 0 : index
    %86 = vector.load %arg5[%c2_41, %c0_42, %c0_43] : memref<4x254x256xf32, #tpu.memory_space<vmem>>, vector<1x254x256xf32>
    %87 = vector.shape_cast %86 : vector<1x254x256xf32> to vector<254x256xf32>
    %cst_44 = arith.constant dense<0.000000e+00> : vector<28x256xf32>
    %88 = tpu.matmul %82, %87, %cst_44 {dimension_numbers = #tpu.dot_dimension_numbers<[1], [0], [0], [1], [0, 0, 1, 1], [], []>} : vector<28x254xf32>, vector<254x256xf32>, vector<28x256xf32> -> vector<28x256xf32>
    %89 = arith.addf %85, %88 : vector<28x256xf32>
    %c1_45 = arith.constant 1 : index
    %c0_46 = arith.constant 0 : index
    %c0_47 = arith.constant 0 : index
    %90 = vector.load %arg5[%c1_45, %c0_46, %c0_47] : memref<4x254x256xf32, #tpu.memory_space<vmem>>, vector<1x254x256xf32>
    %91 = vector.shape_cast %90 : vector<1x254x256xf32> to vector<254x256xf32>
    %cst_48 = arith.constant dense<0.000000e+00> : vector<28x256xf32>
    %92 = tpu.matmul %78, %91, %cst_48 {dimension_numbers = #tpu.dot_dimension_numbers<[1], [0], [0], [1], [0, 0, 1, 1], [], []>} : vector<28x254xf32>, vector<254x256xf32>, vector<28x256xf32> -> vector<28x256xf32>
    %c3_49 = arith.constant 3 : index
    %c0_50 = arith.constant 0 : index
    %c0_51 = arith.constant 0 : index
    %93 = vector.load %arg5[%c3_49, %c0_50, %c0_51] : memref<4x254x256xf32, #tpu.memory_space<vmem>>, vector<1x254x256xf32>
    %94 = vector.shape_cast %93 : vector<1x254x256xf32> to vector<254x256xf32>
    %cst_52 = arith.constant dense<0.000000e+00> : vector<28x256xf32>
    %95 = tpu.matmul %82, %94, %cst_52 {dimension_numbers = #tpu.dot_dimension_numbers<[1], [0], [0], [1], [0, 0, 1, 1], [], []>} : vector<28x254xf32>, vector<254x256xf32>, vector<28x256xf32> -> vector<28x256xf32>
    %96 = arith.addf %92, %95 : vector<28x256xf32>
    %97 = arith.maximumf %89, %96 : vector<28x256xf32>
    %c0_53 = arith.constant 0 : index
    %c0_54 = arith.constant 0 : index
    %c0_55 = arith.constant 0 : index
    %98 = vector.load %arg6[%c0_53, %c0_54, %c0_55] : memref<2x16x28xf32, #tpu.memory_space<vmem>>, vector<1x16x28xf32>
    %99 = vector.shape_cast %98 : vector<1x16x28xf32> to vector<16x28xf32>
    %cst_56 = arith.constant dense<0.000000e+00> : vector<16x256xf32>
    %100 = tpu.matmul %99, %97, %cst_56 {dimension_numbers = #tpu.dot_dimension_numbers<[1], [0], [0], [1], [0, 0, 1, 1], [], []>} : vector<16x28xf32>, vector<28x256xf32>, vector<16x256xf32> -> vector<16x256xf32>
    %c1_57 = arith.constant 1 : index
    %c0_58 = arith.constant 0 : index
    %c0_59 = arith.constant 0 : index
    %101 = vector.load %arg6[%c1_57, %c0_58, %c0_59] : memref<2x16x28xf32, #tpu.memory_space<vmem>>, vector<1x16x28xf32>
    %102 = vector.shape_cast %101 : vector<1x16x28xf32> to vector<16x28xf32>
    %cst_60 = arith.constant dense<0.000000e+00> : vector<16x256xf32>
    %103 = tpu.matmul %102, %97, %cst_60 {dimension_numbers = #tpu.dot_dimension_numbers<[1], [0], [0], [1], [0, 0, 1, 1], [], []>} : vector<16x28xf32>, vector<28x256xf32>, vector<16x256xf32> -> vector<16x256xf32>
    %104 = arith.maximumf %100, %103 : vector<16x256xf32>
    %c0_61 = arith.constant 0 : index
    %c0_62 = arith.constant 0 : index
    %105 = vector.load %arg7[%c0_61, %c0_62] : memref<16x256xf32, #tpu.memory_space<vmem>>, vector<16x256xf32>
    %106 = arith.addf %104, %105 : vector<16x256xf32>
    %cst_63 = arith.constant 0.000000e+00 : f32
    %107 = vector.broadcast %cst_63 : f32 to vector<16x256xf32>
    %108 = arith.maximumf %106, %107 : vector<16x256xf32>
    %cst_64 = arith.constant 0.000000e+00 : f32
    %109 = vector.broadcast %cst_64 : f32 to vector<14x254xf32>
    %cst_65 = arith.constant 0.000000e+00 : f32
    %110 = vector.broadcast %cst_65 : f32 to vector<14x254xf32>
    %111 = vector.extract_strided_slice %108 {offsets = [0, 0], sizes = [14, 254], strides = [1, 1]} : vector<16x256xf32> to vector<14x254xf32>
    %c0_66 = arith.constant 0 : index
    %c0_67 = arith.constant 0 : index
    %112 = vector.load %arg4[%c0_66, %c0_67] : memref<18x256xf32, #tpu.memory_space<vmem>>, vector<1x254xf32>
    %113 = vector.broadcast %112 : vector<1x254xf32> to vector<14x254xf32>
    %114 = arith.mulf %113, %111 : vector<14x254xf32>
    %115 = arith.addf %109, %114 : vector<14x254xf32>
    %c9_68 = arith.constant 9 : index
    %c0_69 = arith.constant 0 : index
    %116 = vector.load %arg4[%c9_68, %c0_69] : memref<18x256xf32, #tpu.memory_space<vmem>>, vector<1x254xf32>
    %117 = vector.broadcast %116 : vector<1x254xf32> to vector<14x254xf32>
    %118 = arith.mulf %117, %111 : vector<14x254xf32>
    %119 = arith.addf %110, %118 : vector<14x254xf32>
    %120 = vector.extract_strided_slice %108 {offsets = [0, 1], sizes = [14, 254], strides = [1, 1]} : vector<16x256xf32> to vector<14x254xf32>
    %c1_70 = arith.constant 1 : index
    %c0_71 = arith.constant 0 : index
    %121 = vector.load %arg4[%c1_70, %c0_71] : memref<18x256xf32, #tpu.memory_space<vmem>>, vector<1x254xf32>
    %122 = vector.broadcast %121 : vector<1x254xf32> to vector<14x254xf32>
    %123 = arith.mulf %122, %120 : vector<14x254xf32>
    %124 = arith.addf %115, %123 : vector<14x254xf32>
    %c10_72 = arith.constant 10 : index
    %c0_73 = arith.constant 0 : index
    %125 = vector.load %arg4[%c10_72, %c0_73] : memref<18x256xf32, #tpu.memory_space<vmem>>, vector<1x254xf32>
    %126 = vector.broadcast %125 : vector<1x254xf32> to vector<14x254xf32>
    %127 = arith.mulf %126, %120 : vector<14x254xf32>
    %128 = arith.addf %119, %127 : vector<14x254xf32>
    %129 = vector.extract_strided_slice %108 {offsets = [0, 2], sizes = [14, 254], strides = [1, 1]} : vector<16x256xf32> to vector<14x254xf32>
    %c2_74 = arith.constant 2 : index
    %c0_75 = arith.constant 0 : index
    %130 = vector.load %arg4[%c2_74, %c0_75] : memref<18x256xf32, #tpu.memory_space<vmem>>, vector<1x254xf32>
    %131 = vector.broadcast %130 : vector<1x254xf32> to vector<14x254xf32>
    %132 = arith.mulf %131, %129 : vector<14x254xf32>
    %133 = arith.addf %124, %132 : vector<14x254xf32>
    %c11_76 = arith.constant 11 : index
    %c0_77 = arith.constant 0 : index
    %134 = vector.load %arg4[%c11_76, %c0_77] : memref<18x256xf32, #tpu.memory_space<vmem>>, vector<1x254xf32>
    %135 = vector.broadcast %134 : vector<1x254xf32> to vector<14x254xf32>
    %136 = arith.mulf %135, %129 : vector<14x254xf32>
    %137 = arith.addf %128, %136 : vector<14x254xf32>
    %138 = vector.extract_strided_slice %108 {offsets = [1, 0], sizes = [14, 254], strides = [1, 1]} : vector<16x256xf32> to vector<14x254xf32>
    %c3_78 = arith.constant 3 : index
    %c0_79 = arith.constant 0 : index
    %139 = vector.load %arg4[%c3_78, %c0_79] : memref<18x256xf32, #tpu.memory_space<vmem>>, vector<1x254xf32>
    %140 = vector.broadcast %139 : vector<1x254xf32> to vector<14x254xf32>
    %141 = arith.mulf %140, %138 : vector<14x254xf32>
    %142 = arith.addf %133, %141 : vector<14x254xf32>
    %c12_80 = arith.constant 12 : index
    %c0_81 = arith.constant 0 : index
    %143 = vector.load %arg4[%c12_80, %c0_81] : memref<18x256xf32, #tpu.memory_space<vmem>>, vector<1x254xf32>
    %144 = vector.broadcast %143 : vector<1x254xf32> to vector<14x254xf32>
    %145 = arith.mulf %144, %138 : vector<14x254xf32>
    %146 = arith.addf %137, %145 : vector<14x254xf32>
    %147 = vector.extract_strided_slice %108 {offsets = [1, 1], sizes = [14, 254], strides = [1, 1]} : vector<16x256xf32> to vector<14x254xf32>
    %c4_82 = arith.constant 4 : index
    %c0_83 = arith.constant 0 : index
    %148 = vector.load %arg4[%c4_82, %c0_83] : memref<18x256xf32, #tpu.memory_space<vmem>>, vector<1x254xf32>
    %149 = vector.broadcast %148 : vector<1x254xf32> to vector<14x254xf32>
    %150 = arith.mulf %149, %147 : vector<14x254xf32>
    %151 = arith.addf %142, %150 : vector<14x254xf32>
    %c13_84 = arith.constant 13 : index
    %c0_85 = arith.constant 0 : index
    %152 = vector.load %arg4[%c13_84, %c0_85] : memref<18x256xf32, #tpu.memory_space<vmem>>, vector<1x254xf32>
    %153 = vector.broadcast %152 : vector<1x254xf32> to vector<14x254xf32>
    %154 = arith.mulf %153, %147 : vector<14x254xf32>
    %155 = arith.addf %146, %154 : vector<14x254xf32>
    %156 = vector.extract_strided_slice %108 {offsets = [1, 2], sizes = [14, 254], strides = [1, 1]} : vector<16x256xf32> to vector<14x254xf32>
    %c5_86 = arith.constant 5 : index
    %c0_87 = arith.constant 0 : index
    %157 = vector.load %arg4[%c5_86, %c0_87] : memref<18x256xf32, #tpu.memory_space<vmem>>, vector<1x254xf32>
    %158 = vector.broadcast %157 : vector<1x254xf32> to vector<14x254xf32>
    %159 = arith.mulf %158, %156 : vector<14x254xf32>
    %160 = arith.addf %151, %159 : vector<14x254xf32>
    %c14_88 = arith.constant 14 : index
    %c0_89 = arith.constant 0 : index
    %161 = vector.load %arg4[%c14_88, %c0_89] : memref<18x256xf32, #tpu.memory_space<vmem>>, vector<1x254xf32>
    %162 = vector.broadcast %161 : vector<1x254xf32> to vector<14x254xf32>
    %163 = arith.mulf %162, %156 : vector<14x254xf32>
    %164 = arith.addf %155, %163 : vector<14x254xf32>
    %165 = vector.extract_strided_slice %108 {offsets = [2, 0], sizes = [14, 254], strides = [1, 1]} : vector<16x256xf32> to vector<14x254xf32>
    %c6_90 = arith.constant 6 : index
    %c0_91 = arith.constant 0 : index
    %166 = vector.load %arg4[%c6_90, %c0_91] : memref<18x256xf32, #tpu.memory_space<vmem>>, vector<1x254xf32>
    %167 = vector.broadcast %166 : vector<1x254xf32> to vector<14x254xf32>
    %168 = arith.mulf %167, %165 : vector<14x254xf32>
    %169 = arith.addf %160, %168 : vector<14x254xf32>
    %c15_92 = arith.constant 15 : index
    %c0_93 = arith.constant 0 : index
    %170 = vector.load %arg4[%c15_92, %c0_93] : memref<18x256xf32, #tpu.memory_space<vmem>>, vector<1x254xf32>
    %171 = vector.broadcast %170 : vector<1x254xf32> to vector<14x254xf32>
    %172 = arith.mulf %171, %165 : vector<14x254xf32>
    %173 = arith.addf %164, %172 : vector<14x254xf32>
    %174 = vector.extract_strided_slice %108 {offsets = [2, 1], sizes = [14, 254], strides = [1, 1]} : vector<16x256xf32> to vector<14x254xf32>
    %c7_94 = arith.constant 7 : index
    %c0_95 = arith.constant 0 : index
    %175 = vector.load %arg4[%c7_94, %c0_95] : memref<18x256xf32, #tpu.memory_space<vmem>>, vector<1x254xf32>
    %176 = vector.broadcast %175 : vector<1x254xf32> to vector<14x254xf32>
    %177 = arith.mulf %176, %174 : vector<14x254xf32>
    %178 = arith.addf %169, %177 : vector<14x254xf32>
    %c16_96 = arith.constant 16 : index
    %c0_97 = arith.constant 0 : index
    %179 = vector.load %arg4[%c16_96, %c0_97] : memref<18x256xf32, #tpu.memory_space<vmem>>, vector<1x254xf32>
    %180 = vector.broadcast %179 : vector<1x254xf32> to vector<14x254xf32>
    %181 = arith.mulf %180, %174 : vector<14x254xf32>
    %182 = arith.addf %173, %181 : vector<14x254xf32>
    %183 = vector.extract_strided_slice %108 {offsets = [2, 2], sizes = [14, 254], strides = [1, 1]} : vector<16x256xf32> to vector<14x254xf32>
    %c8_98 = arith.constant 8 : index
    %c0_99 = arith.constant 0 : index
    %184 = vector.load %arg4[%c8_98, %c0_99] : memref<18x256xf32, #tpu.memory_space<vmem>>, vector<1x254xf32>
    %185 = vector.broadcast %184 : vector<1x254xf32> to vector<14x254xf32>
    %186 = arith.mulf %185, %183 : vector<14x254xf32>
    %187 = arith.addf %178, %186 : vector<14x254xf32>
    %c17_100 = arith.constant 17 : index
    %c0_101 = arith.constant 0 : index
    %188 = vector.load %arg4[%c17_100, %c0_101] : memref<18x256xf32, #tpu.memory_space<vmem>>, vector<1x254xf32>
    %189 = vector.broadcast %188 : vector<1x254xf32> to vector<14x254xf32>
    %190 = arith.mulf %189, %183 : vector<14x254xf32>
    %191 = arith.addf %182, %190 : vector<14x254xf32>
    %c0_102 = arith.constant 0 : index
    %c0_103 = arith.constant 0 : index
    %c0_104 = arith.constant 0 : index
    %192 = vector.load %arg8[%c0_102, %c0_103, %c0_104] : memref<4x254x112xf32, #tpu.memory_space<vmem>>, vector<1x254x112xf32>
    %193 = vector.shape_cast %192 : vector<1x254x112xf32> to vector<254x112xf32>
    %cst_105 = arith.constant dense<0.000000e+00> : vector<14x112xf32>
    %194 = tpu.matmul %187, %193, %cst_105 {dimension_numbers = #tpu.dot_dimension_numbers<[1], [0], [0], [1], [0, 0, 1, 1], [], []>} : vector<14x254xf32>, vector<254x112xf32>, vector<14x112xf32> -> vector<14x112xf32>
    %c2_106 = arith.constant 2 : index
    %c0_107 = arith.constant 0 : index
    %c0_108 = arith.constant 0 : index
    %195 = vector.load %arg8[%c2_106, %c0_107, %c0_108] : memref<4x254x112xf32, #tpu.memory_space<vmem>>, vector<1x254x112xf32>
    %196 = vector.shape_cast %195 : vector<1x254x112xf32> to vector<254x112xf32>
    %cst_109 = arith.constant dense<0.000000e+00> : vector<14x112xf32>
    %197 = tpu.matmul %191, %196, %cst_109 {dimension_numbers = #tpu.dot_dimension_numbers<[1], [0], [0], [1], [0, 0, 1, 1], [], []>} : vector<14x254xf32>, vector<254x112xf32>, vector<14x112xf32> -> vector<14x112xf32>
    %198 = arith.addf %194, %197 : vector<14x112xf32>
    %c1_110 = arith.constant 1 : index
    %c0_111 = arith.constant 0 : index
    %c0_112 = arith.constant 0 : index
    %199 = vector.load %arg8[%c1_110, %c0_111, %c0_112] : memref<4x254x112xf32, #tpu.memory_space<vmem>>, vector<1x254x112xf32>
    %200 = vector.shape_cast %199 : vector<1x254x112xf32> to vector<254x112xf32>
    %cst_113 = arith.constant dense<0.000000e+00> : vector<14x112xf32>
    %201 = tpu.matmul %187, %200, %cst_113 {dimension_numbers = #tpu.dot_dimension_numbers<[1], [0], [0], [1], [0, 0, 1, 1], [], []>} : vector<14x254xf32>, vector<254x112xf32>, vector<14x112xf32> -> vector<14x112xf32>
    %c3_114 = arith.constant 3 : index
    %c0_115 = arith.constant 0 : index
    %c0_116 = arith.constant 0 : index
    %202 = vector.load %arg8[%c3_114, %c0_115, %c0_116] : memref<4x254x112xf32, #tpu.memory_space<vmem>>, vector<1x254x112xf32>
    %203 = vector.shape_cast %202 : vector<1x254x112xf32> to vector<254x112xf32>
    %cst_117 = arith.constant dense<0.000000e+00> : vector<14x112xf32>
    %204 = tpu.matmul %191, %203, %cst_117 {dimension_numbers = #tpu.dot_dimension_numbers<[1], [0], [0], [1], [0, 0, 1, 1], [], []>} : vector<14x254xf32>, vector<254x112xf32>, vector<14x112xf32> -> vector<14x112xf32>
    %205 = arith.addf %201, %204 : vector<14x112xf32>
    %206 = arith.maximumf %198, %205 : vector<14x112xf32>
    %c0_118 = arith.constant 0 : index
    %c0_119 = arith.constant 0 : index
    %c0_120 = arith.constant 0 : index
    %207 = vector.load %arg9[%c0_118, %c0_119, %c0_120] : memref<2x7x14xf32, #tpu.memory_space<vmem>>, vector<1x7x14xf32>
    %208 = vector.shape_cast %207 : vector<1x7x14xf32> to vector<7x14xf32>
    %cst_121 = arith.constant dense<0.000000e+00> : vector<7x112xf32>
    %209 = tpu.matmul %208, %206, %cst_121 {dimension_numbers = #tpu.dot_dimension_numbers<[1], [0], [0], [1], [0, 0, 1, 1], [], []>} : vector<7x14xf32>, vector<14x112xf32>, vector<7x112xf32> -> vector<7x112xf32>
    %c1_122 = arith.constant 1 : index
    %c0_123 = arith.constant 0 : index
    %c0_124 = arith.constant 0 : index
    %210 = vector.load %arg9[%c1_122, %c0_123, %c0_124] : memref<2x7x14xf32, #tpu.memory_space<vmem>>, vector<1x7x14xf32>
    %211 = vector.shape_cast %210 : vector<1x7x14xf32> to vector<7x14xf32>
    %cst_125 = arith.constant dense<0.000000e+00> : vector<7x112xf32>
    %212 = tpu.matmul %211, %206, %cst_125 {dimension_numbers = #tpu.dot_dimension_numbers<[1], [0], [0], [1], [0, 0, 1, 1], [], []>} : vector<7x14xf32>, vector<14x112xf32>, vector<7x112xf32> -> vector<7x112xf32>
    %213 = arith.maximumf %209, %212 : vector<7x112xf32>
    %c0_126 = arith.constant 0 : index
    %c0_127 = arith.constant 0 : index
    %214 = vector.load %arg10[%c0_126, %c0_127] : memref<1x112xf32, #tpu.memory_space<vmem>>, vector<1x112xf32>
    %215 = vector.broadcast %214 : vector<1x112xf32> to vector<7x112xf32>
    %216 = arith.addf %213, %215 : vector<7x112xf32>
    %cst_128 = arith.constant 0.000000e+00 : f32
    %217 = vector.broadcast %cst_128 : f32 to vector<7x112xf32>
    %218 = arith.maximumf %216, %217 : vector<7x112xf32>
    %c0_129 = arith.constant 0 : index
    %c0_130 = arith.constant 0 : index
    %219 = vector.load %arg11[%c0_129, %c0_130] : memref<140x7xf32, #tpu.memory_space<vmem>>, vector<140x7xf32>
    %cst_131 = arith.constant dense<0.000000e+00> : vector<140x112xf32>
    %220 = tpu.matmul %219, %218, %cst_131 {dimension_numbers = #tpu.dot_dimension_numbers<[1], [0], [0], [1], [0, 0, 1, 1], [], []>} : vector<140x7xf32>, vector<7x112xf32>, vector<140x112xf32> -> vector<140x112xf32>
    %c0_132 = arith.constant 0 : index
    %c0_133 = arith.constant 0 : index
    %221 = vector.load %arg13[%c0_132, %c0_133] : memref<10x140xf32, #tpu.memory_space<vmem>>, vector<10x140xf32>
    %c0_134 = arith.constant 0 : index
    %c0_135 = arith.constant 0 : index
    %222 = vector.load %arg12[%c0_134, %c0_135] : memref<140x112xf32, #tpu.memory_space<vmem>>, vector<140x112xf32>
    %223 = arith.mulf %220, %222 : vector<140x112xf32>
    %cst_136 = arith.constant dense<0.000000e+00> : vector<10x112xf32>
    %224 = tpu.matmul %221, %223, %cst_136 {dimension_numbers = #tpu.dot_dimension_numbers<[1], [0], [0], [1], [0, 0, 1, 1], [], []>} : vector<10x140xf32>, vector<140x112xf32>, vector<10x112xf32> -> vector<10x112xf32>
    %c0_137 = arith.constant 0 : index
    %c0_138 = arith.constant 0 : index
    %225 = vector.load %arg14[%c0_137, %c0_138] : memref<8x112xf32, #tpu.memory_space<vmem>>, vector<8x112xf32>
    %cst_139 = arith.constant dense<0.000000e+00> : vector<8x10xf32>
    %226 = tpu.matmul %225, %224, %cst_139 {dimension_numbers = #tpu.dot_dimension_numbers<[1], [1], [0], [0], [0, 0, 1, 0], [], []>} : vector<8x112xf32>, vector<10x112xf32>, vector<8x10xf32> -> vector<8x10xf32>
    %c0_140 = arith.constant 0 : index
    %c0_141 = arith.constant 0 : index
    %227 = vector.load %arg15[%c0_140, %c0_141] : memref<8x10xf32, #tpu.memory_space<vmem>>, vector<8x10xf32>
    tpu.vector_store %arg15[%c0_140, %c0_141], %226 {strides = array<i32>} : memref<8x10xf32, #tpu.memory_space<vmem>>, vector<8x10xf32>,
    %cst_142 = arith.constant dense<0xFF800000> : vector<8xf32>
    %228 = vector.multi_reduction <maximumf>, %226, %cst_142 [1] : vector<8x10xf32> to vector<8xf32>
    %229 = vector.shape_cast %228 : vector<8xf32> to vector<8x1xf32>
    %230 = vector.broadcast %229 : vector<8x1xf32> to vector<8x10xf32>
    %231 = arith.subf %226, %230 : vector<8x10xf32>
    %232 = math.exp %231 : vector<8x10xf32>
    %cst_143 = arith.constant dense<0.000000e+00> : vector<8xf32>
    %233 = vector.multi_reduction <add>, %232, %cst_143 [1] : vector<8x10xf32> to vector<8xf32>
    %234 = vector.shape_cast %233 : vector<8xf32> to vector<8x1xf32>
    %235 = vector.broadcast %234 : vector<8x1xf32> to vector<8x10xf32>
    %236 = arith.divf %232, %235 : vector<8x10xf32>
    %cst_144 = arith.constant dense<0xFF800000> : vector<8xf32>
    %237 = vector.multi_reduction <maximumf>, %236, %cst_144 [1] : vector<8x10xf32> to vector<8xf32>
    %238 = vector.shape_cast %237 : vector<8xf32> to vector<8x1xf32>
    %239 = vector.broadcast %238 : vector<8x1xf32> to vector<8x10xf32>
    %240 = arith.subf %236, %239 : vector<8x10xf32>
    %241 = math.exp %240 : vector<8x10xf32>
    %cst_145 = arith.constant dense<0.000000e+00> : vector<8xf32>
    %242 = vector.multi_reduction <add>, %241, %cst_145 [1] : vector<8x10xf32> to vector<8xf32>
    %243 = vector.shape_cast %242 : vector<8xf32> to vector<8x1xf32>
    %244 = math.log %243 : vector<8x1xf32>
    %245 = arith.addf %244, %238 : vector<8x1xf32>
    %246 = tpu.iota {dimensions = array<i32: 1>} : vector<8x10xi32>
    %c0_146 = arith.constant 0 : index
    %c0_147 = arith.constant 0 : index
    %247 = vector.load %arg2[%c0_146, %c0_147] : memref<8x1xi32, #tpu.memory_space<vmem>>, vector<8x1xi32>
    %248 = vector.broadcast %247 : vector<8x1xi32> to vector<8x10xi32>
    %249 = arith.cmpi eq, %246, %248 : vector<8x10xi32>
    %cst_148 = arith.constant 0.000000e+00 : f32
    %250 = vector.broadcast %cst_148 : f32 to vector<8x10xf32>
    %251 = arith.select %249, %236, %250 : vector<8x10xi1>, vector<8x10xf32>
    %cst_149 = arith.constant dense<0.000000e+00> : vector<8xf32>
    %252 = vector.multi_reduction <add>, %251, %cst_149 [1] : vector<8x10xf32> to vector<8xf32>
    %253 = vector.shape_cast %252 : vector<8xf32> to vector<8x1xf32>
    %254 = arith.subf %245, %253 : vector<8x1xf32>
    %c0_150 = arith.constant 0 : index
    %c0_151 = arith.constant 0 : index
    %255 = vector.load %arg16[%c0_150, %c0_151] : memref<8x1xf32, #tpu.memory_space<vmem>>, vector<8x1xf32>
    tpu.vector_store %arg16[%c0_150, %c0_151], %254 {strides = array<i32>} : memref<8x1xf32, #tpu.memory_space<vmem>>, vector<8x1xf32>,
    return
  }
  func.func @transform_0(%arg0: i32) -> (i32, i32) {
    %c0_i32 = arith.constant 0 : i32
    %c0_i32_0 = arith.constant 0 : i32
    return %c0_i32, %arg0 : i32, i32
  }
  func.func @transform_1(%arg0: i32) -> (i32, i32) {
    %c0_i32 = arith.constant 0 : i32
    %c0_i32_0 = arith.constant 0 : i32
    return %arg0, %c0_i32 : i32, i32
  }
  func.func @transform_2(%arg0: i32) -> (i32, i32) {
    %c0_i32 = arith.constant 0 : i32
    %c0_i32_0 = arith.constant 0 : i32
    %c0_i32_1 = arith.constant 0 : i32
    return %c0_i32, %c0_i32_0 : i32, i32
  }
  func.func @transform_3(%arg0: i32) -> (i32, i32) {
    %c0_i32 = arith.constant 0 : i32
    %c0_i32_0 = arith.constant 0 : i32
    %c0_i32_1 = arith.constant 0 : i32
    return %c0_i32, %c0_i32_0 : i32, i32
  }
  func.func @transform_4(%arg0: i32) -> (i32, i32, i32) {
    %c0_i32 = arith.constant 0 : i32
    %c0_i32_0 = arith.constant 0 : i32
    %c0_i32_1 = arith.constant 0 : i32
    %c0_i32_2 = arith.constant 0 : i32
    return %c0_i32, %c0_i32_0, %c0_i32_1 : i32, i32, i32
  }
  func.func @transform_5(%arg0: i32) -> (i32, i32, i32) {
    %c0_i32 = arith.constant 0 : i32
    %c0_i32_0 = arith.constant 0 : i32
    %c0_i32_1 = arith.constant 0 : i32
    %c0_i32_2 = arith.constant 0 : i32
    return %c0_i32, %c0_i32_0, %c0_i32_1 : i32, i32, i32
  }
  func.func @transform_6(%arg0: i32) -> (i32, i32) {
    %c0_i32 = arith.constant 0 : i32
    %c0_i32_0 = arith.constant 0 : i32
    %c0_i32_1 = arith.constant 0 : i32
    return %c0_i32, %c0_i32_0 : i32, i32
  }
  func.func @transform_7(%arg0: i32) -> (i32, i32, i32) {
    %c0_i32 = arith.constant 0 : i32
    %c0_i32_0 = arith.constant 0 : i32
    %c0_i32_1 = arith.constant 0 : i32
    %c0_i32_2 = arith.constant 0 : i32
    return %c0_i32, %c0_i32_0, %c0_i32_1 : i32, i32, i32
  }
  func.func @transform_8(%arg0: i32) -> (i32, i32, i32) {
    %c0_i32 = arith.constant 0 : i32
    %c0_i32_0 = arith.constant 0 : i32
    %c0_i32_1 = arith.constant 0 : i32
    %c0_i32_2 = arith.constant 0 : i32
    return %c0_i32, %c0_i32_0, %c0_i32_1 : i32, i32, i32
  }
  func.func @transform_9(%arg0: i32) -> (i32, i32) {
    %c0_i32 = arith.constant 0 : i32
    %c0_i32_0 = arith.constant 0 : i32
    %c0_i32_1 = arith.constant 0 : i32
    return %c0_i32, %c0_i32_0 : i32, i32
  }
  func.func @transform_10(%arg0: i32) -> (i32, i32) {
    %c0_i32 = arith.constant 0 : i32
    %c0_i32_0 = arith.constant 0 : i32
    %c0_i32_1 = arith.constant 0 : i32
    return %c0_i32, %c0_i32_0 : i32, i32
  }
  func.func @transform_11(%arg0: i32) -> (i32, i32) {
    %c0_i32 = arith.constant 0 : i32
    %c0_i32_0 = arith.constant 0 : i32
    %c0_i32_1 = arith.constant 0 : i32
    return %c0_i32, %c0_i32_0 : i32, i32
  }
  func.func @transform_12(%arg0: i32) -> (i32, i32) {
    %c0_i32 = arith.constant 0 : i32
    %c0_i32_0 = arith.constant 0 : i32
    %c0_i32_1 = arith.constant 0 : i32
    return %c0_i32, %c0_i32_0 : i32, i32
  }
  func.func @transform_13(%arg0: i32) -> (i32, i32) {
    %c0_i32 = arith.constant 0 : i32
    %c0_i32_0 = arith.constant 0 : i32
    %c0_i32_1 = arith.constant 0 : i32
    return %c0_i32, %c0_i32_0 : i32, i32
  }
  func.func @transform_14(%arg0: i32) -> (i32, i32) {
    %c0_i32 = arith.constant 0 : i32
    %c0_i32_0 = arith.constant 0 : i32
    return %arg0, %c0_i32 : i32, i32
  }
  func.func @transform_15(%arg0: i32) -> (i32, i32) {
    %c0_i32 = arith.constant 0 : i32
    %c0_i32_0 = arith.constant 0 : i32
    return %arg0, %c0_i32 : i32, i32
  }
}

</mosaic_0001>

<bundles_post_ra>
// kernel: net_forward.1
= control target key start
LH: loop header
LB: loop body
LE: loop exit
PB: predicated region body
PF: predicated region fallthrough
CT: control target
= control target key end

     0   :  { %s8760_s0 = inlined_call_operand.vmem [shape: f32[32,512], index: 0, kind: input, shape index: {}]   ;;  %s8761_s1 = inlined_call_operand.vmem [shape: s32[16,1], index: 1, kind: input, shape index: {}]   ;;  %s8762_s2 = inlined_call_operand.vmem [shape: f32[18,256], index: 2, kind: input, shape index: {}]   ;;  %s8763_s3 = inlined_call_operand.vmem [shape: f32[18,256], index: 3, kind: input, shape index: {}]   ;;  %s8764_s4 = inlined_call_operand.vmem [shape: f32[4,254,256], index: 4, kind: input, shape index: {}]   ;;  %s8765_s5 = inlined_call_operand.vmem [shape: f32[2,16,28], index: 5, kind: input, shape index: {}]   ;;  %s8766_s6 = inlined_call_operand.vmem [shape: f32[16,256], index: 6, kind: input, shape index: {}]   ;;  %s8767_s7 = inlined_call_operand.vmem [shape: f32[4,254,112], index: 7, kind: input, shape index: {}]   ;;  %s8768_s8 = inlined_call_operand.vmem [shape: f32[2,7,14], index: 8, kind: input, shape index: {}]   ;;  %s8769_s9 = inlined_call_operand.vmem [shape: f32[1,112], index: 9, kind: input, shape index: {}]   ;;  %s8770_s10 = inlined_call_operand.vmem [shape: f32[140,7], index: 10, kind: input, shape index: {}]   ;;  %s8771_s11 = inlined_call_operand.vmem [shape: f32[140,112], index: 11, kind: input, shape index: {}]   ;;  %s8772_s12 = inlined_call_operand.vmem [shape: f32[10,140], index: 12, kind: input, shape index: {}]   ;;  %s8773_s13 = inlined_call_operand.vmem [shape: f32[8,112], index: 13, kind: input, shape index: {}]   ;;  %s8774_s14 = inlined_call_operand.hbm [shape: f32[16,10], index: 14, kind: output, shape index: {0}]   ;;  %s8775_s15 = inlined_call_operand.vmem [shape: f32[16,1], index: 15, kind: output, shape index: {1}]  }
   0x1   :  { %8853 = sst [smem:[#allocation60_spill]] %s8760_s0 }
   0x2   :  { %21 = vsyncpa [#allocation4], 0 }
   0x3   :  { %23 = vsyncpa [#allocation4 + $0x1], 0  ;;  %s5370_s18 = smov 0   ;;  %s5372_s19 = smov 0  }
   0x4   :  { %s5374_s20 = smov 0   ;;  %s5376_s21 = smov 0  }
   0x5 LB: > { %8854 = sst [smem:[#allocation6_spill]] %s5268_s18  ;;  %s5391_s22 = sadd.s32 4294967295, %s5280_s21   ;;  %s5280_s21 = sphi %s5376_s21, %s9052_s21   ;;  %s5276_s20 = sphi %s5374_s20, %s9055_s20   ;;  %s5272_s19 = sphi %s5372_s19, %s9054_s19   ;;  %s5268_s18 = sphi %s5370_s18, %s9053_s18  }
   0x6   : > { %8855 = sst [smem:[#allocation7_spill]] %s5272_s19  ;;  %s4046_s23 = sadd.s32 4294967294, %s5280_s21  }
   0x7   : > { %8856 = sst [smem:[#allocation8_spill]] %s5276_s20  ;;  %s5395_s24 = sadd.s32 1, %s5280_s21  }
   0x8   : > { %8857 = sst [smem:[#allocation9_spill]] %s5280_s21  ;;  %s36_s25 = sadd.s32 1, %s5276_s20 }
   0x9   : > { %8858 = sst [smem:[#allocation10_spill]] %s5395_s24  ;;  %s33_s26 = ssub.s32 %s5280_s21, %s5395_s24 }
   0xa   : > { %p43_p0 = scmp.ne.s32.totalorder %s5276_s20, %s5272_s19  ;;  %p34_p1 = scmp.eq.s32.totalorder %s33_s26, 0 }
   0xb   : > { %p44_p2 = scmp.eq.s32.totalorder %s5280_s21, 0  ;;  %p351_p3 = scmp.eq.s32.totalorder %s5391_s22, 1 }
   0xc   : > { %p356_p4 = scmp.ne.s32.totalorder %s5272_s19, %s5268_s18  ;;  %p357_p7 = scmp.eq.s32.totalorder %s4046_s23, 1 }
   0xd   : > { %s5407_s27 = scalar_select %p34_p1, %s5276_s20, %s36_s25  }
   0xe   : > { %p45_p5 = por %p44_p2, %p43_p0  ;;  %p5409_p6 = por %p351_p3, %p43_p0 }
   0xf   : > { %8859 = sst [smem:[#allocation11_spill]] %s5407_s27  ;;  %p5413_p8 = por %p357_p7, %p356_p4 }
  0x10   : > { %p4048_p9 = scmp.ge.s32.totalorder %s5280_s21, 2 }
  0x11   : > { %s8861_s29 = scalar_select %p5413_p8, 1, 0 }
  0x12   : > { %435 = sbr.rel (%p4048_p9) target bundleno = 39 (0x27), region = 64 }
  0x13   : > { %8862 = sst [smem:[#allocation12_spill]] %s8861_s29 }
  0x19   : > { %438 = sbr.rel (!%p45_p5) target bundleno = 39 (0x27), region = 68  ;;  %s440_s30 = sand.u32 (%p45_p5), 1, %s5276_s20  }
  0x1a   : > { %s4460_s16 = sshll.u32 (%p45_p5), %s5280_s21, 4  ;;  %s4049_s17 = sshll.u32 (%p45_p5), %s440_s30, 6 }
  0x1b   : > { %s8863_s0 = sld [smem:[#allocation60_spill]] (%p45_p5)  ;;  %s442_s23 = scalar_lea.vmem (%p45_p5), [#allocation2], %s4049_s17 }
  0x21   : > { %s445_s27 = scalar_lea.vmem %s8863_s0, %s4460_s16 }
  0x22   : > { %v458_v0 = vld [vmem:[%s445_s27] sm:$0xff]  ;;  %v460_v1 = vld [vmem:[%s445_s27 + $0x8] sm:$0xff] }
  0x23   : > { %v462_v2 = vld [vmem:[%s445_s27 + $0x20] sm:$0xff]  ;;  %459 = vst [vmem:[%s442_s23] sm:$0xff] %v458_v0  ;;  %461 = vst [vmem:[%s442_s23 + $0x8] sm:$0xff] %v460_v1  ;;  %v464_v3 = vld [vmem:[%s445_s27 + $0x28] sm:$0xff] }
  0x24   : > { %463 = vst [vmem:[%s442_s23 + $0x10] sm:$0xff] %v462_v2  ;;  %v466_v4 = vld [vmem:[%s445_s27 + $0x40] sm:$0xff]  ;;  %v468_v5 = vld [vmem:[%s445_s27 + $0x48] sm:$0xff]  ;;  %465 = vst [vmem:[%s442_s23 + $0x18] sm:$0xff] %v464_v3 }
  0x25   : > { %467 = vst [vmem:[%s442_s23 + $0x20] sm:$0xff] %v466_v4  ;;  %469 = vst [vmem:[%s442_s23 + $0x28] sm:$0xff] %v468_v5  ;;  %v470_v6 = vld [vmem:[%s445_s27 + $0x60] sm:$0xff]  ;;  %v472_v7 = vld [vmem:[%s445_s27 + $0x68] sm:$0xff] }
  0x26   : > { %471 = vst [vmem:[%s442_s23 + $0x30] sm:$0xff] %v470_v6  ;;  %473 = vst [vmem:[%s442_s23 + $0x38] sm:$0xff] %v472_v7 }
  0x27 PF: > { %p4052_p10 = scmp.ge.s32.totalorder %s5280_s21, 1  ;;  %p485_p11 = scmp.lt.s32.totalorder %s5280_s21, 3 }
  0x29   : > { %p486_p12 = pnand %p4052_p10, %p485_p11 }
  0x2b   : > { %489 = sbr.rel (%p486_p12) target bundleno = 2667 (0xa6b), region = 95 }
  0x32   : > { %s5428_s30 = sand.u32 1, %s5272_s19   ;;  %v8787_v8 = vlaneseq  ;;  %s8778_s27 = smov 126   ;;  %vm836_vm0 = vcmask 1046528   ;;  %v4063_v21 = vld [vmem:[%s8762_s2 + $0x14] ss:$8 sm:$0x3] }
  0x33   : > { %s4053_s16 = sshll.u32 %s5428_s30, 6  ;;  %s8776_s25 = smov 127   ;;  %vm1149_vm1 = vcmask 1045504   ;;  %v4075_v33 = vld [vmem:[%s8764_s4 + $0x408] sm:$0xff]  ;;  %v4077_v38 = vld [vmem:[%s8764_s4 + $0x418] sm:$0xff]  ;;  %v4074_v45 = vld [vmem:[%s8764_s4 + $0x400] sm:$0xff] }
  0x34   : > { %s5431_s17 = scalar_lea.vmem [#allocation2], %s4053_s16  ;;  %v567_v11 = vshrl.u32 %v8787_v8, 7  ;;  %v4069_v35 = vld [vmem:[%s8762_s2 + $0x17] ss:$8 sm:$0x3]  ;;  %s8867_s20 = smov 126   ;;  %v4691_v52 = vpack.c.bf16 %v4077_v38, %v4075_v33 }
  0x35   : > { %v5434_v9 = vld [vmem:[%s5431_s17] sm:$0xff]  ;;  %v5437_v10 = vld [vmem:[%s5431_s17 + $0x18] sm:$0xff]  ;;  %v5445_v12 = vld [vmem:[%s5431_s17 + $0x8] sm:$0xfe]  ;;  %s8869_s18 = smov 127   ;;  %vm5284_vm2 = vmmov 1  }
  0x36   : > { %729 = vrot.lane.b32.xlu1 %v5434_v9, %s8778_s27  ;;  %642 = vrot.lane.b32.xlu0 %v5434_v9, %s8776_s25  ;;  %v5448_v13 = vld [vmem:[%s5431_s17 + $0x8] sm:$0xff]  ;;  %v946_v14 = vrot.slane %v5445_v12, 1  ;;  %v947_v15 = vrot.slane %v5437_v10, 1  ;;  %v5453_v16 = vld [vmem:[%s5431_s17 + $0x10] sm:$0xff]  ;;  %v5463_v19 = vsub.s32 1, %v567_v11  ;;  %v5481_v26 = vsub.s32 0, %v567_v11  ;;  %vm6334_vm3 = vmpackc.low %vm1149_vm1, %vm5284_vm2 }
  0x37   : > { %v5456_v17 = vld [vmem:[%s5431_s17] sm:$0xfe]  ;;  %v944_v20 = vrot.slane %v5453_v16, 1  ;;  %v5476_v24 = vld [vmem:[%s5431_s17 + $0x8] sm:$0xfc]  ;;  %v8789_v29 = vrot.slane %v5437_v10, 2  ;;  %4692 = vmatprep.subr.bf16.mxu0 %v4691_v52 }
  0x38   : > { %v943_v18 = vrot.slane %v5456_v17, 1  ;;  %8864 = vst [vmem:[#allocation13_spill] sm:$0xff] %v5463_v19  ;;  %v948_v22 = vsel %vm836_vm0, %v946_v14, %v947_v15  ;;  %v5479_v25 = vld [vmem:[%s5431_s17] sm:$0xfc]  ;;  %8865 = vst [vmem:[#allocation14_spill] sm:$0xff] %v5481_v26  ;;  %v5484_v27 = vrot.slane %v4063_v21, %v5463_v19  ;;  %v1259_v28 = vrot.slane %v5476_v24, 2 }
  0x39   : > { %v1256_v30 = vrot.slane %v5479_v25, 2  ;;  %v8788_v31 = vrot.slane %v5453_v16, 2  ;;  %v5493_v32 = vld [vmem:[%s5431_s17 + $0x38] sm:$0x1f]  ;;  %v5499_v34 = vrot.slane %v4063_v21, %v5481_v26  ;;  %v5509_v37 = vld [vmem:[%s5431_s17 + $0x30] sm:$0x1f]  ;;  %v5566_v57 = vrot.slane %v4069_v35, %v5463_v19 }
  0x3a   : > { %731 = vrot.lane.b32.xlu1 %v5448_v13, %s8778_s27  ;;  %644 = vrot.lane.b32.xlu0 %v5448_v13, %s8776_s25  ;;  %v945_v23 = vsel %vm836_vm0, %v943_v18, %v944_v20  ;;  %v5506_v36 = vmul.f32 %v5484_v27, %v5493_v32  ;;  %v4215_v39 = vld [vmem:[%s8764_s4 + $0x608] sm:$0xff]  ;;  %v4217_v40 = vld [vmem:[%s8764_s4 + $0x618] sm:$0xff]  ;;  %v1261_v42 = vsel %vm1149_vm1, %v1259_v28, %v8789_v29  ;;  %vm745_vm4 = vcmask 1031168   ;;  %s4054_s19 = sshll.u32 %s5428_s30, 3  ;;  %p548_p13 = scmp.lt.s32.totalorder %s5391_s22, 1 }
  0x3b   : > { %v4062_v41 = vld [vmem:[%s8762_s2 + $0x3] ss:$8 sm:$0x3]  ;;  %v1258_v43 = vsel %vm1149_vm1, %v1256_v30, %v8788_v31  ;;  %v5533_v44 = vmul.f32 %v5499_v34, %v5509_v37  ;;  %v4076_v46 = vld [vmem:[%s8764_s4 + $0x410] sm:$0xff]  ;;  %v4081_v50 = vld [vmem:[%s8764_s4 + $0x438] sm:$0xff]  ;;  %v4823_v53 = vpack.c.bf16 %v4217_v40, %v4215_v39  ;;  %v5570_v58 = vrot.slane %v4069_v35, %v5481_v26  ;;  %s8693_s24 = scalar_lea.vmem [#allocation3], %s4054_s19 }
  0x3c   : > { %8866 = vst [vmem:[#allocation15_spill] sm:$0xff] %v5506_v36  ;;  %v4214_v47 = vld [vmem:[%s8764_s4 + $0x600] sm:$0xff]  ;;  %v4216_v48 = vld [vmem:[%s8764_s4 + $0x610] sm:$0xff]  ;;  %v4079_v49 = vld [vmem:[%s8764_s4 + $0x428] sm:$0xff]  ;;  %v4693_v62 = vpack.c.bf16 %v4076_v46, %v4074_v45  ;;  %v5592_v4 = vrot.slane %v4062_v41, %v5463_v19  ;;  %v5595_v5 = vrot.slane %v4062_v41, %v5481_v26  ;;  %vm658_vm5 = vcmask 1039360   ;;  %s8701_s26 = scalar_select %p548_p13, %s5391_s22, 1 }
  0x3d   : > { %8868 = vst [vmem:[#allocation16_spill] sm:$0xff] %v5533_v44  ;;  %v4068_v51 = vld [vmem:[%s8762_s2 + $0x6] ss:$8 sm:$0x3]  ;;  %v4221_v55 = vld [vmem:[%s8764_s4 + $0x638] sm:$0xff]  ;;  %v4080_v61 = vld [vmem:[%s8764_s4 + $0x430] sm:$0xff]  ;;  %4824 = vmatprep.subr.bf16.mxu1 %v4823_v53  ;;  %v4825_v63 = vpack.c.bf16 %v4216_v48, %v4214_v47  ;;  %v4695_v0 = vpack.c.bf16 %v4081_v50, %v4079_v49 }
  0x3e   : > { %959 = vrot.lane.b32.xlu1 %v948_v22, %s8776_s25  ;;  %957 = vrot.lane.b32.xlu0 %v945_v23, %s8776_s25  ;;  %v4219_v54 = vld [vmem:[%s8764_s4 + $0x628] sm:$0xff]  ;;  %v5563_v56 = vld [vmem:[%s5431_s17 + $0x38] sm:$0x3f]  ;;  %v5621_v28 = vrot.slane %v4068_v51, %v5463_v19  ;;  %v5644_v45 = vmul.f32 %v5595_v5, %v5456_v17  ;;  %vm2109_vm6 = vcmask 1043456   ;;  %vm2102_vm8 = vcmask 228352   ;;  %s4055_s25 = sshll.u32 %s8701_s26, 3 }
  0x3f   : > { %v5574_v59 = vld [vmem:[%s5431_s17 + $0x30] sm:$0x3f]  ;;  %v4078_v60 = vld [vmem:[%s8764_s4 + $0x420] sm:$0xff]  ;;  %v4083_v3 = vld [vmem:[%s8764_s4 + $0x448] sm:$0xff]  ;;  %v4827_v6 = vpack.c.bf16 %v4221_v55, %v4219_v54  ;;  %v5599_v7 = vmul.f32 %v5566_v57, %v5563_v56  ;;  %4694 = vmatpush1.bf16.msra.mxu0 %v4693_v62  ;;  %4826 = vmatpush1.bf16.msra.mxu1 %v4825_v63  ;;  %v5670_v55 = vrot.slane %v4068_v51, %v5481_v26  ;;  %vm5287_vm9 = vmmov 0   ;;  %s4457_s29 = sshll.u32 %s5391_s22, 7 }
  0x40   : > { %v4218_v1 = vld [vmem:[%s8764_s4 + $0x620] sm:$0xff]  ;;  %v4220_v2 = vld [vmem:[%s8764_s4 + $0x630] sm:$0xff]  ;;  %v4085_v11 = vld [vmem:[%s8764_s4 + $0x458] sm:$0xff]  ;;  %v5612_v21 = vmul.f32 %v5570_v58, %v5574_v59  ;;  %v4697_v30 = vpack.c.bf16 %v4080_v61, %v4078_v60  ;;  %4696 = vmatprep.subr.bf16.mxu0 %v4695_v0  ;;  %v5667_v54 = vmul.f32 %v5621_v28, %v5476_v24  ;;  %vm3286_vm10 = vcmask 113664   ;;  %s3942_s27 = sshll.u32 %s8693_s24, 4  ;;  %s3925_s16 = scalar_lea.sflag [#allocation4], %s5428_s30  ;;  %s3943_s27 = int_to_ptr.vmem [resolvable:$true] %s3942_s27 }
  0x41   : > { %8870 = vst [vmem:[#allocation17_spill] sm:$0xff] %v5599_v7  ;;  %v4223_v14 = vld [vmem:[%s8764_s4 + $0x648] sm:$0xff]  ;;  %v4225_v18 = vld [vmem:[%s8764_s4 + $0x658] sm:$0xff]  ;;  %v4829_v33 = vpack.c.bf16 %v4220_v2, %v4218_v1  ;;  %v4222_v35 = vld [vmem:[%s8764_s4 + $0x640] sm:$0xff]  ;;  %4828 = vmatprep.subr.bf16.mxu1 %v4827_v6  ;;  %v4699_v39 = vpack.c.bf16 %v4085_v11, %v4083_v3  ;;  %v837_v6 = vrot.slane %v5644_v45, 1  ;;  %vm3466_vm11 = vcmask 56320  }
  0x42   : > { %1045 = vrot.lane.b32.xlu1 %v948_v22, %s8867_s20  ;;  %1043 = vrot.lane.b32.xlu0 %v945_v23, %s8867_s20  ;;  %8871 = vst [vmem:[#allocation18_spill] sm:$0xff] %v5612_v21  ;;  %v4082_v22 = vld [vmem:[%s8764_s4 + $0x440] sm:$0xff]  ;;  %v4084_v23 = vld [vmem:[%s8764_s4 + $0x450] sm:$0xff]  ;;  %v4831_v40 = vpack.c.bf16 %v4225_v18, %v4223_v14  ;;  %vm7526_vm7 = vmpackc.low %vm2109_vm6, %vm5284_vm2  ;;  %vm3719_vm12 = vcmask 97280   ;;  %vm3805_vm13 = vcmask 916480   ;;  %vm3885_vm15 = vcmask 80896  }
  0x43   : > { %v4224_v38 = vld [vmem:[%s8764_s4 + $0x650] sm:$0xff]  ;;  %v4087_v41 = vld [vmem:[%s8764_s4 + $0x468] sm:$0xff]  ;;  %v4089_v46 = vld [vmem:[%s8764_s4 + $0x478] sm:$0xff]  ;;  %4698 = vmatpush1.bf16.msra.mxu0 %v4697_v30  ;;  %4830 = vmatpush1.bf16.msra.mxu1 %v4829_v33  ;;  %v4701_v49 = vpack.c.bf16 %v4084_v23, %v4082_v22  ;;  %v1153_v33 = vrot.slane %v5667_v54, 2  ;;  %s5218_s19 = scalar_lea.vmem %s3943_s27, 128  ;;  %s5289_s21 = smov [#allocation3]  }
  0x44   : > { %v4227_v47 = vld [vmem:[%s8764_s4 + $0x668] sm:$0xff]  ;;  %v4229_v48 = vld [vmem:[%s8764_s4 + $0x678] sm:$0xff]  ;;  %v4833_v50 = vpack.c.bf16 %v4224_v38, %v4222_v35  ;;  %v4086_v52 = vld [vmem:[%s8764_s4 + $0x460] sm:$0xff]  ;;  %4700 = vmatprep.subr.bf16.mxu0 %v4699_v39  ;;  %4832 = vmatprep.subr.bf16.mxu1 %v4831_v40  ;;  %v4703_v61 = vpack.c.bf16 %v4089_v46, %v4087_v41  ;;  %v5710_v35 = vmul.f32 %v5670_v55, %v5479_v25  ;;  %p5219_p0 = scmp.ne.s32.totalorder %s3943_s27, %s5218_s19 }
  0x45   : > { %v4088_v53 = vld [vmem:[%s8764_s4 + $0x470] sm:$0xff]  ;;  %v4835_v51 = vpack.c.bf16 %v4229_v48, %v4227_v47  ;;  %v4091_v62 = vld [vmem:[%s8764_s4 + $0x488] sm:$0xff]  ;;  %v4093_v1 = vld [vmem:[%s8764_s4 + $0x498] sm:$0xff]  ;;  %v5714_v38 = vmul.f32 %v5570_v58, %v5479_v25  ;;  %v5728_v41 = vmul.f32 %v5592_v4, %v5437_v10  ;;  %v5742_v48 = vmul.f32 %v5484_v27, %v5437_v10 }
  0x46   : > { %1272 = vrot.lane.b32.xlu1 %v1261_v42, %s8869_s18  ;;  %1270 = vrot.lane.b32.xlu0 %v1258_v43, %s8869_s18  ;;  %v4228_v60 = vld [vmem:[%s8764_s4 + $0x670] sm:$0xff]  ;;  %v4231_v2 = vld [vmem:[%s8764_s4 + $0x688] sm:$0xff]  ;;  %v4705_v18 = vpack.c.bf16 %v4088_v53, %v4086_v52  ;;  %vm5145_vm14 = vmpackc.low %vm3805_vm13, %vm3805_vm13  ;;  %p5220_p1 = pnand %p5219_p0, %p5409_p6 }
  0x47   : > { %v4233_v3 = vld [vmem:[%s8764_s4 + $0x698] sm:$0xff]  ;;  %v5699_v14 = vld [vmem:[%s5431_s17 + $0x28] sm:$0xff]  ;;  %4702 = vmatpush1.bf16.msra.mxu0 %v4701_v49  ;;  %4834 = vmatpush1.bf16.msra.mxu1 %v4833_v50  ;;  %v4090_v23 = vld [vmem:[%s8764_s4 + $0x480] sm:$0xff] }
  0x48   : > { %v4092_v30 = vld [vmem:[%s8764_s4 + $0x490] sm:$0xff]  ;;  %v4230_v39 = vld [vmem:[%s8764_s4 + $0x680] sm:$0xff]  ;;  %4704 = vmatprep.subr.bf16.mxu0 %v4703_v61  ;;  %4836 = vmatprep.subr.bf16.mxu1 %v4835_v51  ;;  %v4839_v45 = vpack.c.bf16 %v4233_v3, %v4231_v2  ;;  %v4095_v46 = vld [vmem:[%s8764_s4 + $0x4a8] sm:$0xff]  ;;  %v5765_v2 = vmul.f32 %v5499_v34, %v5453_v16  ;;  %v5769_v3 = vmul.f32 %v5621_v28, %v5437_v10  ;;  %p5221_p2 = pneg %p5220_p1 }
  0x49   : > { %v4232_v40 = vld [vmem:[%s8764_s4 + $0x690] sm:$0xff]  ;;  %v5731_v25 = vld [vmem:[%s5431_s17 + $0x20] sm:$0xff]  ;;  %v4097_v47 = vld [vmem:[%s8764_s4 + $0x4b8] sm:$0xff]  ;;  %v4709_v50 = vpack.c.bf16 %v4092_v30, %v4090_v23 }
  0x4a   : > { %1358 = vrot.lane.b32.xlu1 %v1261_v42, %s8867_s20  ;;  %1356 = vrot.lane.b32.xlu0 %v1258_v43, %s8867_s20  ;;  %v5636_v42 = vmul.f32 %v5592_v4, %v5445_v12  ;;  %v5640_v43 = vmul.f32 %v5484_v27, %v5445_v12  ;;  %v5657_v12 = vmul.f32 %v5499_v34, %v5456_v17  ;;  %v4226_v17 = vld [vmem:[%s8764_s4 + $0x660] sm:$0xff]  ;;  %v8797_v49 = vrot.slane %v5731_v25, 1  ;;  %v4235_v52 = vld [vmem:[%s8764_s4 + $0x6a8] sm:$0xff] }
  0x4b   : > { %v4837_v22 = vpack.c.bf16 %v4228_v60, %v4226_v17  ;;  %v4237_v53 = vld [vmem:[%s8764_s4 + $0x6b8] sm:$0xff]  ;;  %v8791_v17 = vrot.slane %v5728_v41, 1  ;;  %v5754_v60 = vmul.f32 %v5595_v5, %v5453_v16  ;;  %4706 = vmatpush1.bf16.msra.mxu0 %v4705_v18  ;;  %v4841_v61 = vpack.c.bf16 %v4232_v40, %v4230_v39  ;;  %v4094_v51 = vld [vmem:[%s8764_s4 + $0x4a0] sm:$0xff]  ;;  %v4236_v30 = vld [vmem:[%s8764_s4 + $0x6b0] sm:$0xff] }
  0x4c   : > { %v840_v63 = vrot.slane %v5636_v42, 1  ;;  %v899_v0 = vrot.slane %v5640_v43, 1  ;;  %v896_v11 = vrot.slane %v5657_v12, 1  ;;  %v8798_v42 = vrot.slane %v5699_v14, 1  ;;  %v4234_v23 = vld [vmem:[%s8764_s4 + $0x6a0] sm:$0xff]  ;;  %v4103_v54 = vld [vmem:[%s8764_s4 + $0x4e8] sm:$0xff] }
  0x4d   : > { %v4707_v43 = vpack.c.bf16 %v4093_v1, %v4091_v62  ;;  %4838 = vmatpush1.bf16.msra.mxu1 %v4837_v22  ;;  %v4096_v62 = vld [vmem:[%s8764_s4 + $0x4b0] sm:$0xff]  ;;  %v8790_v1 = vrot.slane %v5742_v48, 1  ;;  %v1150_v18 = vrot.slane %v5710_v35, 2  ;;  %v4711_v22 = vpack.c.bf16 %v4097_v47, %v4095_v46  ;;  %v4099_v46 = vld [vmem:[%s8764_s4 + $0x4c8] sm:$0xff]  ;;  %v4238_v12 = vld [vmem:[%s8764_s4 + $0x6c0] sm:$0xff] }
  0x4e   : > { %648 = vrot.lane.b32.xlu1 %v5437_v10, %s8869_s18  ;;  %646 = vrot.lane.b32.xlu0 %v5453_v16, %s8869_s18  ;;  %v5785_v39 = vsel %vm836_vm0, %v840_v63, %v8791_v17  ;;  %v8792_v35 = vrot.slane %v5754_v60, 1  ;;  %v4843_v40 = vpack.c.bf16 %v4237_v53, %v4235_v52  ;;  %v8796_v8 = vrot.slane %v5765_v2, 1  ;;  %v4241_v52 = vld [vmem:[%s8764_s4 + $0x6d8] sm:$0xff]  ;;  %v4098_v17 = vld [vmem:[%s8764_s4 + $0x4c0] sm:$0xff] }
  0x4f   : > { %4708 = vmatprep.subr.bf16.mxu0 %v4707_v43  ;;  %4840 = vmatprep.subr.bf16.mxu1 %v4839_v45  ;;  %v5794_v47 = vsel %vm836_vm0, %v899_v0, %v8790_v1  ;;  %v8793_v31 = vrot.slane %v5769_v3, 2  ;;  %v1209_v63 = vrot.slane %v5714_v38, 2  ;;  %v4101_v43 = vld [vmem:[%s8764_s4 + $0x4d8] sm:$0xff]  ;;  %v4239_v45 = vld [vmem:[%s8764_s4 + $0x6c8] sm:$0xff]  ;;  %v5815_v38 = vmul.f32 %v5670_v55, %v5453_v16 }
  0x50   : > { %v5811_v0 = vsel %vm836_vm0, %v837_v6, %v8792_v35  ;;  %v5819_v53 = vmul.f32 %v5570_v58, %v5453_v16  ;;  %4710 = vmatpush1.bf16.msra.mxu0 %v4709_v50  ;;  %v4713_v29 = vpack.c.bf16 %v4096_v62, %v4094_v51  ;;  %v4845_v1 = vpack.c.bf16 %v4236_v30, %v4234_v23  ;;  %v4100_v6 = vld [vmem:[%s8764_s4 + $0x4d0] sm:$0xff] }
  0x51   : > { %4842 = vmatpush1.bf16.msra.mxu1 %v4841_v61  ;;  %v5832_v35 = vsel %vm836_vm0, %v896_v11, %v8796_v8  ;;  %v5843_v50 = vsel %vm836_vm0, %v947_v15, %v8798_v42  ;;  %v4240_v11 = vld [vmem:[%s8764_s4 + $0x6d0] sm:$0xff]  ;;  %v5856_v61 = vsel %vm1149_vm1, %v1153_v33, %v8793_v31  ;;  %v8795_v51 = vrot.slane %v5815_v38, 2  ;;  %4712 = vmatprep.subr.bf16.mxu0 %v4711_v22  ;;  %v4105_v33 = vld [vmem:[%s8764_s4 + $0x4f8] sm:$0xff]  ;;  %v4243_v31 = vld [vmem:[%s8764_s4 + $0x6e8] sm:$0xff] }
  0x52   : > { %735 = vrot.lane.b32.xlu1 %v5437_v10, %s8867_s20  ;;  %733 = vrot.lane.b32.xlu0 %v5453_v16, %s8867_s20  ;;  %8872 = vst [vmem:[#allocation19_spill] sm:$0xff] %v5856_v61  ;;  %v8794_v15 = vrot.slane %v5819_v53, 2  ;;  %v5865_v62 = vsel %vm836_vm0, %v944_v20, %v8797_v49  ;;  %v4715_v23 = vpack.c.bf16 %v4101_v43, %v4099_v46  ;;  %v4245_v20 = vld [vmem:[%s8764_s4 + $0x6f8] sm:$0xff] }
  0x53   : > { %4844 = vmatprep.subr.bf16.mxu1 %v4843_v40  ;;  %v4847_v30 = vpack.c.bf16 %v4241_v52, %v4239_v45  ;;  %v5882_v22 = vsel %vm1149_vm1, %v1150_v18, %v8795_v51  ;;  %v4057_v46 = vld [vmem:[%s8762_s2 + $0x11] ss:$8 sm:$0x3]  ;;  %v1194_v43 = vmul.f32 %v5566_v57, %v5476_v24  ;;  %v4717_v45 = vpack.c.bf16 %v4100_v6, %v4098_v17  ;;  %v4102_v18 = vld [vmem:[%s8764_s4 + $0x4e0] sm:$0xff]  ;;  %v4247_v51 = vld [vmem:[%s8764_s4 + $0x708] sm:$0xff] }
  0x54   : > { %8873 = vst [vmem:[#allocation20_spill] sm:$0xff] %v5882_v22  ;;  %v5887_v40 = vsel %vm1149_vm1, %v1209_v63, %v8794_v15  ;;  %4714 = vmatpush1.bf16.msra.mxu0 %v4713_v29  ;;  %v4849_v52 = vpack.c.bf16 %v4240_v11, %v4238_v12  ;;  %v4104_v63 = vld [vmem:[%s8764_s4 + $0x4f0] sm:$0xff]  ;;  %v4242_v24 = vld [vmem:[%s8764_s4 + $0x6e0] sm:$0xff]  ;;  %v5911_v17 = vld [vmem:[%s5431_s17 + $0x38] sm:$0xf]  ;;  %v4719_v6 = vpack.c.bf16 %v4105_v33, %v4103_v54 }
  0x55   : > { %8874 = vst [vmem:[#allocation21_spill] sm:$0xff] %v5887_v40  ;;  %4846 = vmatpush1.bf16.msra.mxu1 %v4845_v1  ;;  %v4244_v29 = vld [vmem:[%s8764_s4 + $0x6f0] sm:$0xff]  ;;  %4716 = vmatprep.subr.bf16.mxu0 %v4715_v23  ;;  %v4851_v12 = vpack.c.bf16 %v4245_v20, %v4243_v31  ;;  %v4107_v11 = vld [vmem:[%s8764_s4 + $0x508] sm:$0xff]  ;;  %v4109_v15 = vld [vmem:[%s8764_s4 + $0x518] sm:$0xff]  ;;  %v4721_v23 = vpack.c.bf16 %v4104_v63, %v4102_v18  ;;  %v1212_v20 = vrot.slane %v1194_v43, 2 }
  0x56   : > { %652 = vrot.lane.b32.xlu1 %v5699_v14, %s8869_s18  ;;  %650 = vrot.lane.b32.xlu0 %v5731_v25, %s8869_s18  ;;  %v5914_v1 = vld [vmem:[%s5431_s17 + $0x30] sm:$0xf]  ;;  %v4249_v8 = vld [vmem:[%s8764_s4 + $0x718] sm:$0xff]  ;;  %v4853_v31 = vpack.c.bf16 %v4244_v29, %v4242_v24  ;;  %v5936_v33 = vmul.f32 %v5566_v57, %v5437_v10  ;;  %v5939_v49 = vrot.slane %v4057_v46, %v5481_v26  ;;  %s8716_s17 = scalar_lea.hbm %s8774_s14, %s4457_s29 }
  0x57   : > { %4848 = vmatprep.subr.bf16.mxu1 %v4847_v30  ;;  %v4106_v30 = vld [vmem:[%s8764_s4 + $0x500] sm:$0xff]  ;;  %v4108_v54 = vld [vmem:[%s8764_s4 + $0x510] sm:$0xff]  ;;  %v5952_v18 = vrot.slane %v4057_v46, %v5463_v19  ;;  %v4723_v43 = vpack.c.bf16 %v4109_v15, %v4107_v11  ;;  %v4855_v63 = vpack.c.bf16 %v4249_v8, %v4247_v51  ;;  %v4111_v24 = vld [vmem:[%s8764_s4 + $0x528] sm:$0xff] }
  0x58   : > { %4718 = vmatpush1.bf16.msra.mxu0 %v4717_v45  ;;  %v4246_v45 = vld [vmem:[%s8764_s4 + $0x700] sm:$0xff]  ;;  %v8799_v29 = vrot.slane %v5936_v33, 2  ;;  %v4113_v42 = vld [vmem:[%s8764_s4 + $0x538] sm:$0xff]  ;;  %v4251_v40 = vld [vmem:[%s8764_s4 + $0x728] sm:$0xff]  ;;  %v5973_v51 = vmul.f32 %v5939_v49, %v5731_v25  ;;  %v4725_v15 = vpack.c.bf16 %v4108_v54, %v4106_v30 }
  0x59   : > { %4850 = vmatpush1.bf16.msra.mxu1 %v4849_v52  ;;  %v4248_v52 = vld [vmem:[%s8764_s4 + $0x710] sm:$0xff]  ;;  %4720 = vmatprep.subr.bf16.mxu0 %v4719_v6  ;;  %v4253_v46 = vld [vmem:[%s8764_s4 + $0x738] sm:$0xff]  ;;  %v5969_v8 = vmul.f32 %v5952_v18, %v5699_v14  ;;  %v4250_v30 = vld [vmem:[%s8764_s4 + $0x720] sm:$0xff] }
  0x5a   : > { %739 = vrot.lane.b32.xlu1 %v5699_v14, %s8867_s20  ;;  %737 = vrot.lane.b32.xlu0 %v5731_v25, %s8867_s20  ;;  %8876 = vst [vmem:[#allocation23_spill] sm:$0xff] %v5973_v51  ;;  %v4857_v6 = vpack.c.bf16 %v4248_v52, %v4246_v45  ;;  %v4112_v11 = vld [vmem:[%s8764_s4 + $0x530] sm:$0xff]  ;;  %v6007_v45 = vmul.f32 %v5592_v4, %v5699_v14  ;;  %v4121_v61 = vld [vmem:[%s8764_s4 + $0x578] sm:$0xff] }
  0x5b   : > { %4852 = vmatprep.subr.bf16.mxu1 %v4851_v12  ;;  %8875 = vst [vmem:[#allocation22_spill] sm:$0xff] %v5969_v8  ;;  %v4110_v12 = vld [vmem:[%s8764_s4 + $0x520] sm:$0xff]  ;;  %v5984_v8 = vsel %vm1149_vm1, %v1212_v20, %v8799_v29  ;;  %v4252_v54 = vld [vmem:[%s8764_s4 + $0x730] sm:$0xff]  ;;  %v4859_v20 = vpack.c.bf16 %v4253_v46, %v4251_v40  ;;  %v6011_v52 = vmul.f32 %v5592_v4, %v5493_v32  ;;  %v4117_v29 = vld [vmem:[%s8764_s4 + $0x558] sm:$0xff] }
  0x5c   : > { %4722 = vmatpush1.bf16.msra.mxu0 %v4721_v23  ;;  %8877 = vst [vmem:[#allocation24_spill] sm:$0xff] %v5984_v8  ;;  %v5991_v23 = vrot.slane %v5493_v32, 1  ;;  %v4257_v40 = vld [vmem:[%s8764_s4 + $0x758] sm:$0xff]  ;;  %v6028_v32 = vmul.f32 %v5595_v5, %v5731_v25  ;;  %v6032_v4 = vmul.f32 %v5499_v34, %v5731_v25  ;;  %v4861_v46 = vpack.c.bf16 %v4252_v54, %v4250_v30  ;;  %v4116_v51 = vld [vmem:[%s8764_s4 + $0x550] sm:$0xff]  ;;  %v4118_v22 = vld [vmem:[%s8764_s4 + $0x560] sm:$0xff] }
  0x5d   : > { %4854 = vmatpush1.bf16.msra.mxu1 %v4853_v31  ;;  %v5994_v31 = vrot.slane %v5509_v37, 1  ;;  %4724 = vmatprep.subr.bf16.mxu0 %v4723_v43  ;;  %8878 = vst [vmem:[#allocation25_spill] sm:$0xff] %v6011_v52  ;;  %v6024_v43 = vmul.f32 %v5484_v27, %v5699_v14  ;;  %v4114_v27 = vld [vmem:[%s8764_s4 + $0x540] sm:$0xff]  ;;  %v8880_v34 = vrot.slane %v5699_v14, 1  ;;  %v845_v30 = vrot.slane %v6007_v45, 1 }
  0x5e   : > { %963 = vrot.lane.b32.xlu1 %v5843_v50, %s8869_s18  ;;  %961 = vrot.lane.b32.xlu0 %v5865_v62, %s8869_s18  ;;  %v843_v8 = vrot.slane %v6028_v32, 1  ;;  %v902_v45 = vrot.slane %v6032_v4, 1  ;;  %v8885_v4 = vrot.slane %v5742_v48, 1  ;;  %v6114_v48 = vmul.f32 %v5621_v28, %v5563_v56 }
  0x5f   : > { %4856 = vmatprep.subr.bf16.mxu1 %v4855_v63  ;;  %v6036_v63 = vmul.f32 %v5595_v5, %v5509_v37  ;;  %v956_v37 = vsel %vm836_vm0, %v8880_v34, %v5991_v23  ;;  %v8881_v5 = vrot.slane %v5731_v25, 1 }
  0x60   : > { %4726 = vmatpush1.bf16.msra.mxu0 %v4725_v15  ;;  %8889 = vst [vmem:[#allocation30_spill] sm:$0xff] %v6114_v48 }
  0x61   : > { %8879 = vst [vmem:[#allocation26_spill] sm:$0xff] %v6036_v63  ;;  %4858 = vmatpush1.bf16.msra.mxu1 %v4857_v6  ;;  %v954_v15 = vsel %vm836_vm0, %v8881_v5, %v5994_v31  ;;  %v4119_v5 = vld [vmem:[%s8764_s4 + $0x568] sm:$0xff]  ;;  %v904_v6 = vrot.slane %v6024_v43, 1  ;;  %v4733_v43 = vpack.c.bf16 %v4116_v51, %v4114_v27 }
  0x62   : > { %656 = vrot.lane.b32.xlu1 %v5911_v17, %s8869_s18  ;;  %654 = vrot.lane.b32.xlu0 %v5914_v1, %s8869_s18  ;;  %v4735_v51 = vpack.c.bf16 %v4121_v61, %v4119_v5  ;;  %v4263_v5 = vld [vmem:[%s8764_s4 + $0x788] sm:$0xff] }
  0x63   : > { %4860 = vmatprep.subr.bf16.mxu1 %v4859_v20  ;;  %v8882_v20 = vrot.slane %v5728_v41, 1  ;;  %v4120_v41 = vld [vmem:[%s8764_s4 + $0x570] sm:$0xff] }
  0x65   : > { %4862 = vmatpush1.bf16.msra.mxu1 %v4861_v46  ;;  %v8888_v46 = vrot.slane %v5437_v10, 2 }
  0x66   : > { %1049 = vrot.lane.b32.xlu1 %v5843_v50, %s8867_s20  ;;  %1047 = vrot.lane.b32.xlu0 %v5865_v62, %s8867_s20  ;;  %v4727_v50 = vpack.c.bf16 %v4113_v42, %v4111_v24  ;;  %v4115_v62 = vld [vmem:[%s8764_s4 + $0x548] sm:$0xff]  ;;  %v4729_v24 = vpack.c.bf16 %v4112_v11, %v4110_v12  ;;  %v4254_v12 = vld [vmem:[%s8764_s4 + $0x740] sm:$0xff] }
  0x67   : > { %v4255_v42 = vld [vmem:[%s8764_s4 + $0x748] sm:$0xff]  ;;  %v4256_v11 = vld [vmem:[%s8764_s4 + $0x750] sm:$0xff]  ;;  %v4731_v54 = vpack.c.bf16 %v4117_v29, %v4115_v62  ;;  %v4261_v29 = vld [vmem:[%s8764_s4 + $0x778] sm:$0xff]  ;;  %v6082_v62 = vsel %vm836_vm0, %v8882_v20, %v845_v30  ;;  %v6099_v20 = vsel %vm836_vm0, %v8885_v4, %v904_v6 }
  0x68   : > { %4728 = vmatprep.subr.bf16.mxu0 %v4727_v50  ;;  %v4863_v34 = vpack.c.bf16 %v4257_v40, %v4255_v42  ;;  %v4259_v50 = vld [vmem:[%s8764_s4 + $0x768] sm:$0xff]  ;;  %8883 = vst [vmem:[#allocation27_spill] sm:$0xff] %v6082_v62  ;;  %v6087_v42 = vmul.f32 %v5952_v18, %v5911_v17  ;;  %v4865_v32 = vpack.c.bf16 %v4256_v11, %v4254_v12  ;;  %8886 = vst [vmem:[#allocation29_spill] sm:$0xff] %v6099_v20  ;;  %v4258_v12 = vld [vmem:[%s8764_s4 + $0x760] sm:$0xff] }
  0x69   : > { %4730 = vmatpush1.bf16.msra.mxu0 %v4729_v24  ;;  %v8887_v24 = vrot.slane %v5699_v14, 2  ;;  %v4260_v11 = vld [vmem:[%s8764_s4 + $0x770] sm:$0xff]  ;;  %v8890_v40 = vrot.slane %v5754_v60, 1  ;;  %v8892_v62 = vrot.slane %v5731_v25, 2  ;;  %v4265_v60 = vld [vmem:[%s8764_s4 + $0x798] sm:$0xff]  ;;  %v4122_v4 = vld [vmem:[%s8764_s4 + $0x580] sm:$0xff] }
  0x6a   : > { %743 = vrot.lane.b32.xlu1 %v5911_v17, %s8867_s20  ;;  %741 = vrot.lane.b32.xlu0 %v5914_v1, %s8867_s20  ;;  %8884 = vst [vmem:[#allocation28_spill] sm:$0xff] %v6087_v42  ;;  %v4867_v42 = vpack.c.bf16 %v4261_v29, %v4259_v50  ;;  %v8895_v50 = vrot.slane %v5765_v2, 1  ;;  %v8897_v2 = vrot.slane %v6011_v52, 1 }
  0x6b   : > { %v6110_v27 = vsel %vm1149_vm1, %v8888_v46, %v8887_v24  ;;  %4732 = vmatprep.subr.bf16.mxu0 %v4731_v54  ;;  %4864 = vmatprep.subr.bf16.mxu1 %v4863_v34  ;;  %v4123_v24 = vld [vmem:[%s8764_s4 + $0x588] sm:$0xff]  ;;  %v4125_v46 = vld [vmem:[%s8764_s4 + $0x598] sm:$0xff]  ;;  %v6132_v20 = vsel %vm836_vm0, %v8890_v40, %v843_v8  ;;  %v8893_v54 = vrot.slane %v5453_v16, 2  ;;  %v6143_v34 = vmul.f32 %v5670_v55, %v5574_v59 }
  0x6c   : > { %8891 = vst [vmem:[#allocation31_spill] sm:$0xff] %v6132_v20  ;;  %v6154_v29 = vsel %vm836_vm0, %v8895_v50, %v902_v45  ;;  %4866 = vmatpush1.bf16.msra.mxu1 %v4865_v32  ;;  %v4737_v40 = vpack.c.bf16 %v4120_v41, %v4118_v22  ;;  %v4124_v20 = vld [vmem:[%s8764_s4 + $0x590] sm:$0xff]  ;;  %v6169_v50 = vsel %vm836_vm0, %v845_v30, %v8897_v2  ;;  %v4262_v22 = vld [vmem:[%s8764_s4 + $0x780] sm:$0xff]  ;;  %v8898_v41 = vrot.slane %v5506_v36, 1 }
  0x6d   : > { %v6139_v61 = vsel %vm1149_vm1, %v8893_v54, %v8892_v62  ;;  %8894 = vst [vmem:[#allocation32_spill] sm:$0xff] %v6143_v34  ;;  %v6158_v62 = vmul.f32 %v5939_v49, %v5914_v1  ;;  %4734 = vmatpush1.bf16.msra.mxu0 %v4733_v43  ;;  %v4869_v54 = vpack.c.bf16 %v4260_v11, %v4258_v12  ;;  %v4264_v32 = vld [vmem:[%s8764_s4 + $0x790] sm:$0xff]  ;;  %v8900_v30 = vrot.slane %v6036_v63, 1 }
  0x6e   : > { %967 = vrot.lane.b32.xlu1 %v956_v37, %s8869_s18  ;;  %965 = vrot.lane.b32.xlu0 %v954_v15, %s8869_s18  ;;  %v4739_v43 = vpack.c.bf16 %v4125_v46, %v4123_v24  ;;  %v6182_v12 = vsel %vm836_vm0, %v904_v6, %v8898_v41  ;;  %v4871_v11 = vpack.c.bf16 %v4265_v60, %v4263_v5  ;;  %v4127_v24 = vld [vmem:[%s8764_s4 + $0x5a8] sm:$0xff]  ;;  %v4129_v46 = vld [vmem:[%s8764_s4 + $0x5b8] sm:$0xff]  ;;  %v8902_v6 = vrot.slane %v5533_v44, 1 }
  0x6f   : > { %8896 = vst [vmem:[#allocation33_spill] sm:$0xff] %v6158_v62  ;;  %8899 = vst [vmem:[#allocation34_spill] sm:$0xff] %v6182_v12  ;;  %4736 = vmatprep.subr.bf16.mxu0 %v4735_v51  ;;  %4868 = vmatprep.subr.bf16.mxu1 %v4867_v42  ;;  %v4267_v5 = vld [vmem:[%s8764_s4 + $0x7a8] sm:$0xff]  ;;  %v4269_v60 = vld [vmem:[%s8764_s4 + $0x7b8] sm:$0xff]  ;;  %v1198_v41 = vmul.f32 %v5566_v57, %v5699_v14 }
  0x70   : > { %v6199_v2 = vsel %vm836_vm0, %v902_v45, %v8902_v6  ;;  %v1137_v45 = vmul.f32 %v5670_v55, %v5731_v25  ;;  %4870 = vmatpush1.bf16.msra.mxu1 %v4869_v54  ;;  %v4126_v6 = vld [vmem:[%s8764_s4 + $0x5a0] sm:$0xff]  ;;  %v4128_v42 = vld [vmem:[%s8764_s4 + $0x5b0] sm:$0xff]  ;;  %v4743_v55 = vpack.c.bf16 %v4129_v46, %v4127_v24 }
  0x71   : > { %8903 = vst [vmem:[#allocation36_spill] sm:$0xff] %v6199_v2  ;;  %4738 = vmatpush1.bf16.msra.mxu0 %v4737_v40  ;;  %v1217_v40 = vrot.slane %v1198_v41, 2  ;;  %4872 = vmatprep.subr.bf16.mxu1 %v4871_v11  ;;  %v4271_v11 = vld [vmem:[%s8764_s4 + $0x7c8] sm:$0xff]  ;;  %v8912_v41 = vrot.slane %v5599_v7, 2 }
  0x72   : > { %1053 = vrot.lane.b32.xlu1 %v956_v37, %s8867_s20  ;;  %1051 = vrot.lane.b32.xlu0 %v954_v15, %s8867_s20  ;;  %v6187_v37 = vsel %vm836_vm0, %v843_v8, %v8900_v30  ;;  %v1138_v8 = vmul.f32 %v5621_v28, %v5699_v14  ;;  %v4741_v28 = vpack.c.bf16 %v4124_v20, %v4122_v4  ;;  %v4266_v20 = vld [vmem:[%s8764_s4 + $0x7a0] sm:$0xff]  ;;  %v4268_v4 = vld [vmem:[%s8764_s4 + $0x7b0] sm:$0xff]  ;;  %v1156_v54 = vrot.slane %v1137_v45, 2 }
  0x73   : > { %8901 = vst [vmem:[#allocation35_spill] sm:$0xff] %v6187_v37  ;;  %v4873_v30 = vpack.c.bf16 %v4264_v32, %v4262_v22  ;;  %v1197_v15 = vmul.f32 %v5570_v58, %v5731_v25  ;;  %4740 = vmatprep.subr.bf16.mxu0 %v4739_v43  ;;  %v4875_v58 = vpack.c.bf16 %v4269_v60, %v4267_v5  ;;  %v4131_v22 = vld [vmem:[%s8764_s4 + $0x5c8] sm:$0xff]  ;;  %v8904_v32 = vrot.slane %v5769_v3, 2  ;;  %v4133_v43 = vld [vmem:[%s8764_s4 + $0x5d8] sm:$0xff] }
  0x74   : > { %v1158_v51 = vrot.slane %v1138_v8, 2  ;;  %v8906_v8 = vrot.slane %v6114_v48, 2  ;;  %v4273_v3 = vld [vmem:[%s8764_s4 + $0x7d8] sm:$0xff]  ;;  %v8908_v5 = vrot.slane %v5936_v33, 2  ;;  %v6269_v45 = vsel %vm1149_vm1, %v1217_v40, %v8912_v41  ;;  %v4130_v33 = vld [vmem:[%s8764_s4 + $0x5c0] sm:$0xff]  ;;  %v4135_v41 = vld [vmem:[%s8764_s4 + $0x5e8] sm:$0xff] }
  0x75   : > { %v1215_v46 = vrot.slane %v1197_v15, 2  ;;  %8913 = vst [vmem:[#allocation41_spill] sm:$0xff] %v6269_v45  ;;  %4742 = vmatpush1.bf16.msra.mxu0 %v4741_v28  ;;  %4874 = vmatpush1.bf16.msra.mxu1 %v4873_v30  ;;  %v4272_v28 = vld [vmem:[%s8764_s4 + $0x7d0] sm:$0xff]  ;;  %v8916_v30 = vrot.slane %v6143_v34, 2 }
  0x76   : > { %1276 = vrot.lane.b32.xlu1 %v6110_v27, %s8869_s18  ;;  %1274 = vrot.lane.b32.xlu0 %v6139_v61, %s8869_s18  ;;  %v6240_v24 = vsel %vm1149_vm1, %v8904_v32, %v1158_v51  ;;  %v6245_v57 = vsel %vm1149_vm1, %v1158_v51, %v8906_v8  ;;  %v6259_v15 = vsel %vm1149_vm1, %v8908_v5, %v1217_v40  ;;  %v8910_v51 = vrot.slane %v5815_v38, 2  ;;  %v4132_v38 = vld [vmem:[%s8764_s4 + $0x5d0] sm:$0xff] }
  0x77   : > { %8905 = vst [vmem:[#allocation37_spill] sm:$0xff] %v6240_v24  ;;  %8907 = vst [vmem:[#allocation38_spill] sm:$0xff] %v6245_v57  ;;  %v4745_v32 = vpack.c.bf16 %v4128_v42, %v4126_v6  ;;  %v4877_v8 = vpack.c.bf16 %v4268_v4, %v4266_v20  ;;  %v8914_v5 = vrot.slane %v5819_v53, 2  ;;  %v4270_v42 = vld [vmem:[%s8764_s4 + $0x7c0] sm:$0xff]  ;;  %v6295_v53 = vsel %vm1149_vm1, %v1156_v54, %v8916_v30 }
  0x78   : > { %8909 = vst [vmem:[#allocation39_spill] sm:$0xff] %v6259_v15  ;;  %v6264_v60 = vsel %vm1149_vm1, %v8910_v51, %v1156_v54  ;;  %8917 = vst [vmem:[#allocation43_spill] sm:$0xff] %v6295_v53  ;;  %v8918_v6 = vrot.slane %v5612_v21, 2  ;;  %4744 = vmatprep.subr.bf16.mxu0 %v4743_v55  ;;  %4876 = vmatprep.subr.bf16.mxu1 %v4875_v58  ;;  %v4747_v4 = vpack.c.bf16 %v4133_v43, %v4131_v22  ;;  %v4275_v54 = vld [vmem:[%s8764_s4 + $0x7e8] sm:$0xff]  ;;  %v4134_v22 = vld [vmem:[%s8764_s4 + $0x5e0] sm:$0xff] }
  0x79   : > { %8911 = vst [vmem:[#allocation40_spill] sm:$0xff] %v6264_v60  ;;  %v6280_v51 = vsel %vm1149_vm1, %v8914_v5, %v1215_v46  ;;  %v4879_v40 = vpack.c.bf16 %v4273_v3, %v4271_v11  ;;  %v4137_v5 = vld [vmem:[%s8764_s4 + $0x5f8] sm:$0x3f]  ;;  %4746 = vmatpush1.bf16.msra.mxu0 %v4745_v32  ;;  %4878 = vmatpush1.bf16.msra.mxu1 %v4877_v8  ;;  %v4136_v43 = vld [vmem:[%s8764_s4 + $0x5f0] sm:$0x3f]  ;;  %v1268_v11 = vrot.slane %v5563_v56, 2 }
  0x7a   : > { %8915 = vst [vmem:[#allocation42_spill] sm:$0xff] %v6280_v51  ;;  %971 = vrot.lane.b32.xlu1 %v5991_v23, %s8869_s18  ;;  %969 = vrot.lane.b32.xlu0 %v5994_v31, %s8869_s18  ;;  %v6300_v20 = vsel %vm1149_vm1, %v1215_v46, %v8918_v6  ;;  %v4277_v46 = vld [vmem:[%s8764_s4 + $0x7f8] sm:$0x3f]  ;;  %v4749_v55 = vpack.c.bf16 %v4132_v38, %v4130_v33  ;;  %v4274_v3 = vld [vmem:[%s8764_s4 + $0x7e0] sm:$0xff]  ;;  %v1266_v8 = vrot.slane %v5574_v59, 2  ;;  %v8923_v6 = vrot.slane %v5699_v14, 2 }
  0x7b   : > { %8919 = vst [vmem:[#allocation44_spill] sm:$0xff] %v6300_v20  ;;  %v4881_v58 = vpack.c.bf16 %v4272_v28, %v4270_v42  ;;  %v4276_v32 = vld [vmem:[%s8764_s4 + $0x7f0] sm:$0x3f]  ;;  %4748 = vmatprep.subr.bf16.mxu0 %v4747_v4  ;;  %4880 = vmatprep.subr.bf16.mxu1 %v4879_v40  ;;  %v4751_v33 = vpack.c.bf16 %v4137_v5, %v4135_v41  ;;  %v1432_v38 = vld [vmem:[%s8764_s4 + $0x18] sm:$0xff]  ;;  %v4151_v59 = vld [vmem:[%s8764_s4 + $0x208] sm:$0xff]  ;;  %v8924_v40 = vrot.slane %v5731_v25, 2 }
  0x7c   : > { %v4883_v56 = vpack.c.bf16 %v4277_v46, %v4275_v54  ;;  %v4153_v42 = vld [vmem:[%s8764_s4 + $0x218] sm:$0xff]  ;;  %v4754_v28 = vpack.c.bf16 %v4136_v43, %v4134_v22  ;;  %v4886_v30 = vpack.c.bf16 %v4276_v32, %v4274_v3  ;;  %v1269_v4 = vsel %vm1149_vm1, %v8923_v6, %v1268_v11  ;;  %v4071_v21 = vld [vmem:[%s8762_s2 + $0x20] ss:$8 sm:$0x3] }
  0x7d   : > { %4750 = vmatpush1.bf16.msra.mxu0 %v4749_v55  ;;  %4882 = vmatpush1.bf16.msra.mxu1 %v4881_v58  ;;  %v1267_v41 = vsel %vm1149_vm1, %v8924_v40, %v1266_v8  ;;  %v4889_v54 = vpack.c.bf16 %v4153_v42, %v4151_v59  ;;  %v4060_v55 = vld [vmem:[%s8762_s2 + $0x2] ss:$8 sm:$0x3]  ;;  %v4061_v58 = vld [vmem:[%s8762_s2 + $0x13] ss:$8 sm:$0x3]  ;;  %v605_v43 = vmul.f32 %v5939_v49, %v5434_v9 }
  0x7e   : > { %1362 = vrot.lane.b32.xlu1 %v6110_v27, %s8867_s20  ;;  %1360 = vrot.lane.b32.xlu0 %v6139_v61, %s8867_s20  ;;  %v8920_v27 = vmov 0  ;;  %v1430_v61 = vld [vmem:[%s8764_s4 + $0x8] sm:$0xff]  ;;  %v4059_v3 = vld [vmem:[%s8762_s2 + $0x12] ss:$8 sm:$0x3]  ;;  %v6413_v59 = vrot.slane %v4060_v55, %v5481_v26  ;;  %v6416_v42 = vrot.slane %v4060_v55, %v5463_v19  ;;  %v6457_v55 = vmul.f32 %v5939_v49, %v5453_v16 }
  0x7f   : > { %v8921_v27 = vsel %vm6334_vm3, 4294967295, %v8920_v27  ;;  %4753 = vmatprep.subr.msk.bf16.mxu0 %vm6334_vm3, %v4751_v33  ;;  %4885 = vmatprep.subr.msk.bf16.mxu1 %vm6334_vm3, %v4883_v56  ;;  %v4757_v5 = vpack.c.bf16 %v1432_v38, %v1430_v61  ;;  %v4064_v33 = vld [vmem:[%s8762_s2 + $0x4] ss:$8 sm:$0x3]  ;;  %v6434_v6 = vrot.slane %v4059_v3, %v5481_v26  ;;  %v6512_v63 = vrot.slane %v4071_v21, %v5481_v26 }
  0x80   : > { %8922 = vst [vmem:[#allocation45_spill] sm:$0xff] %v8921_v27  ;;  %8925 = vst [vmem:[#allocation46_spill] sm:$0xff] %v6413_v59  ;;  %v4066_v40 = vld [vmem:[%s8762_s2 + $0x5] ss:$8 sm:$0x3] }
  0x81   : > { %4756 = vmatpush1.bf16.msk.msra.mxu0 %vm6334_vm3, %v4754_v28  ;;  %4888 = vmatpush1.bf16.msk.msra.mxu1 %vm6334_vm3, %v4886_v30  ;;  %v6422_v28 = vrot.slane %v4061_v58, %v5463_v19  ;;  %v4065_v30 = vld [vmem:[%s8762_s2 + $0x15] ss:$8 sm:$0x3]  ;;  %v6479_v34 = vrot.slane %v4066_v40, %v5463_v19  ;;  %v4072_v48 = vld [vmem:[%s8762_s2 + $0x10] ss:$8 sm:$0x3] }
  0x82   : > { %1057 = vrot.lane.b32.xlu1 %v5991_v23, %s8867_s20  ;;  %1055 = vrot.lane.b32.xlu0 %v5994_v31, %s8867_s20  ;;  %v564_v23 = vld [vmem:[%s8762_s2] ss:$8 sm:$0x3]  ;;  %v6469_v27 = vrot.slane %v4065_v30, %v5481_v26  ;;  %8933 = vst [vmem:[#allocation54_spill] sm:$0xff] %v6512_v63  ;;  %v6523_v2 = vrot.slane %v4072_v48, %v5481_v26 }
  0x83   : > { %4758 = vmatprep.subr.bf16.mxu0 %v4757_v5  ;;  %4890 = vmatprep.subr.bf16.mxu1 %v4889_v54  ;;  %v6380_v31 = vrot.slane %v564_v23, %v5481_v26  ;;  %v573_v46 = vrot.slane %v564_v23, %v5463_v19  ;;  %v6446_v5 = vrot.slane %v4064_v33, %v5463_v19  ;;  %v4070_v54 = vld [vmem:[%s8762_s2 + $0x7] ss:$8 sm:$0x3] }
  0x84   : > { %v6496_v53 = vrot.slane %v4070_v54, %v5463_v19  ;;  %v6507_v44 = vrot.slane %v4070_v54, %v5481_v26  ;;  %8935 = vst [vmem:[#allocation56_spill] sm:$0xff] %v6523_v2 }
  0x85   : > { %v576_v22 = vmul.f32 %v6380_v31, %v5434_v9  ;;  %v577_v32 = vmul.f32 %v573_v46, %v5448_v13  ;;  %v6406_v56 = vmul.f32 %v573_v46, %v5437_v10  ;;  %v6410_v9 = vmul.f32 %v5952_v18, %v5437_v10 }
  0x86   : > { %1280 = vrot.lane.b32.xlu1 %v1269_v4, %s8869_s18  ;;  %1278 = vrot.lane.b32.xlu0 %v1267_v41, %s8869_s18  ;;  %v6453_v23 = vmul.f32 %v6380_v31, %v5453_v16  ;;  %v6476_v16 = vmul.f32 %v6380_v31, %v5731_v25  ;;  %8929 = vst [vmem:[#allocation50_spill] sm:$0xff] %v6496_v53  ;;  %8932 = vst [vmem:[#allocation53_spill] sm:$0xff] %v6507_v44 }
  0x87   : > { %v6499_v45 = vmul.f32 %v573_v46, %v5911_v17  ;;  %v6515_v17 = vrot.slane %v4072_v48, %v5463_v19 }
  0x89   : > { %8930 = vst [vmem:[#allocation51_spill] sm:$0xff] %v6499_v45  ;;  %8934 = vst [vmem:[#allocation55_spill] sm:$0xff] %v6515_v17 }
  0x8a   : > { %1366 = vrot.lane.b32.xlu1 %v1269_v4, %s8867_s20  ;;  %1364 = vrot.lane.b32.xlu0 %v1267_v41, %s8867_s20  ;;  %v6437_v4 = vrot.slane %v4059_v3, %v5463_v19  ;;  %v4067_v41 = vld [vmem:[%s8762_s2 + $0x16] ss:$8 sm:$0x3]  ;;  %v6466_v3 = vrot.slane %v4064_v33, %v5481_v26  ;;  %v6485_v33 = vrot.slane %v4066_v40, %v5481_v26 }
  0x8b   : > { %v6482_v7 = vrot.slane %v4067_v41, %v5463_v19 }
  0x8c   : > { %8927 = vst [vmem:[#allocation48_spill] sm:$0xff] %v6485_v33 }
  0x8e   : > { %1284 = vrot.lane.b32.xlu1 %v1268_v11, %s8869_s18  ;;  %1282 = vrot.lane.b32.xlu0 %v1266_v8, %s8869_s18 }
  0x92   : > { %1370 = vrot.lane.b32.xlu1 %v1268_v11, %s8867_s20  ;;  %1368 = vrot.lane.b32.xlu0 %v1266_v8, %s8867_s20  ;;  %v4058_v11 = vld [vmem:[%s8762_s2 + $0x1] ss:$8 sm:$0x3]  ;;  %v606_v8 = vmul.f32 %v5952_v18, %v5448_v13  ;;  %v6419_v13 = vrot.slane %v4061_v58, %v5481_v26  ;;  %v6460_v58 = vmul.f32 %v573_v46, %v5699_v14 }
  0x93   : > { %v6428_v10 = vrot.slane %v4058_v11, %v5481_v26  ;;  %v6431_v18 = vrot.slane %v4058_v11, %v5463_v19  ;;  %v6463_v11 = vrot.slane %v4065_v30, %v5463_v19  ;;  %v6488_v30 = vrot.slane %v4067_v41, %v5481_v26 }
  0x94   : > { %8926 = vst [vmem:[#allocation47_spill] sm:$0xff] %v6419_v13  ;;  %v6504_v41 = vrot.slane %v4071_v21, %v5463_v19 }
  0x95   : > { %8928 = vst [vmem:[#allocation49_spill] sm:$0xff] %v6488_v30 }
  0x96   : > { %8931 = vst [vmem:[#allocation52_spill] sm:$0xff] %v6504_v41 }
  0xa8   : > { %v730_v61 = vpop.permute.xlu1 %729  ;;  %v643_v38 = vpop.permute.xlu0 %642 }
  0xac   : > { %v732_v49 = vpop.permute.xlu1 %731  ;;  %v645_v14 = vpop.permute.xlu0 %644 }
  0xad   : > { %v746_v25 = vsel %vm745_vm4, %v730_v61, %v732_v49  ;;  %v659_v20 = vsel %vm658_vm5, %v643_v38, %v645_v14  ;;  %v672_v57 = vmul.f32 %v645_v14, %v6431_v18  ;;  %v701_v38 = vmul.f32 %v6437_v4, %v645_v14 }
  0xae   : > { %v671_v40 = vmul.f32 %v659_v20, %v6428_v10  ;;  %v700_v61 = vmul.f32 %v6434_v6, %v659_v20  ;;  %v758_v46 = vmul.f32 %v746_v25, %v6413_v59  ;;  %v759_v36 = vmul.f32 %v732_v49, %v6416_v42 }
  0xaf   : > { %v680_v51 = vadd.f32 %v672_v57, %v577_v32  ;;  %v787_v54 = vmul.f32 %v6419_v13, %v746_v25  ;;  %v788_v20 = vmul.f32 %v6422_v28, %v732_v49  ;;  %v709_v14 = vadd.f32 %v701_v38, %v606_v8  ;;  %v4073_v32 = vld [vmem:[%s8762_s2 + $0x21] ss:$8 sm:$0x3]  ;;  %v6562_v38 = vld [vmem:[%s8764_s4 + $0x210] sm:$0xff] }
  0xb0   : > { %v679_v52 = vadd.f32 %v671_v40, %v576_v22  ;;  %v960_v60 = vpop.permute.xlu1 %959  ;;  %v958_v15 = vpop.permute.xlu0 %957  ;;  %v708_v24 = vadd.f32 %v700_v61, %v605_v43  ;;  %v6557_v61 = vld [vmem:[%s8764_s4 + $0x200] sm:$0xff] }
  0xb1   : > { %v767_v21 = vadd.f32 %v759_v36, %v680_v51  ;;  %v973_v62 = vsel %vm658_vm5, %v958_v15, %v960_v60  ;;  %v796_v12 = vadd.f32 %v788_v20, %v709_v14  ;;  %v986_v22 = vmul.f32 %v960_v60, %v6446_v5 }
  0xb2   : > { %v766_v45 = vadd.f32 %v758_v46, %v679_v52  ;;  %v795_v37 = vadd.f32 %v787_v54, %v708_v24  ;;  %v1015_v57 = vmul.f32 %v6463_v11, %v960_v60  ;;  %v985_v36 = vmul.f32 %v973_v62, %v6466_v3 }
  0xb3   : > { %v860_v43 = vadd.f32 %v5785_v39, %v767_v21  ;;  %v1014_v15 = vmul.f32 %v6469_v27, %v973_v62  ;;  %v919_v24 = vadd.f32 %v5794_v47, %v796_v12  ;;  %v6541_v39 = vld [vmem:[%s8764_s4] sm:$0xff]  ;;  %v6565_v14 = vrot.slane %v4073_v32, %v5463_v19  ;;  %v6648_v21 = vld [vmem:[%s8764_s4 + $0x258] sm:$0xff] }
  0xb4   : > { %v859_v52 = vadd.f32 %v5811_v0, %v766_v45  ;;  %v1046_v48 = vpop.permute.xlu1 %1045  ;;  %v1044_v51 = vpop.permute.xlu0 %1043  ;;  %v918_v8 = vadd.f32 %v5832_v35, %v795_v37  ;;  %v6546_v0 = vld [vmem:[%s8764_s4 + $0x10] sm:$0xff]  ;;  %v6550_v35 = vrot.slane %v4073_v32, %v5481_v26  ;;  %v6582_v32 = vld [vmem:[%s8764_s4 + $0x38] sm:$0xff]  ;;  %v6653_v19 = vld [vmem:[%s8764_s4 + $0x40] sm:$0xff] }
  0xb5   : > { %v1072_v60 = vmul.f32 %v1046_v48, %v6479_v34  ;;  %v1101_v49 = vmul.f32 %v6482_v7, %v1046_v48  ;;  %v994_v62 = vadd.f32 %v986_v22, %v860_v43  ;;  %v1059_v47 = vsel %vm745_vm4, %v1044_v51, %v1046_v48  ;;  %8937 = vst [vmem:[#allocation58_spill] sm:$0xff] %v6565_v14  ;;  %v6572_v22 = vld [vmem:[%s8764_s4 + $0x28] sm:$0xff]  ;;  %v6666_v26 = vld [vmem:[%s8764_s4 + $0x240] sm:$0xff] }
  0xb6   : > { %v993_v45 = vadd.f32 %v985_v36, %v859_v52  ;;  %8936 = vst [vmem:[#allocation57_spill] sm:$0xff] %v6550_v35  ;;  %v1023_v12 = vadd.f32 %v1015_v57, %v919_v24  ;;  %v1022_v37 = vadd.f32 %v1014_v15, %v918_v8  ;;  %v1071_v25 = vmul.f32 %v1059_v47, %v6485_v33  ;;  %v6587_v48 = vld [vmem:[%s8764_s4 + $0x228] sm:$0xff] }
  0xb7   : > { %v1100_v40 = vmul.f32 %v6488_v30, %v1059_v47  ;;  %v1080_v46 = vadd.f32 %v1072_v60, %v994_v62  ;;  %v6576_v57 = vmul.f32 %v6380_v31, %v5914_v1  ;;  %v6592_v1 = vld [vmem:[%s8764_s4 + $0x238] sm:$0xff]  ;;  %v8939_v31 = vld [vmem:[#allocation19_spill] sm:$0xff]  ;;  %v6631_v60 = vld [vmem:[%s8764_s4 + $0x48] sm:$0xff] }
  0xb8   : > { %v1273_v54 = vpop.permute.xlu1 %1272  ;;  %v1271_v20 = vpop.permute.xlu0 %1270  ;;  %v1109_v43 = vadd.f32 %v1101_v49, %v1023_v12  ;;  %v1079_v52 = vadd.f32 %v1071_v25, %v993_v45  ;;  %v8940_v49 = vld [vmem:[#allocation20_spill] sm:$0xff]  ;;  %v8941_v45 = vld [vmem:[#allocation21_spill] sm:$0xff]  ;;  %v6606_v25 = vld [vmem:[%s8764_s4 + $0x20] sm:$0xff] }
  0xb9   : > { %8938 = vst [vmem:[#allocation59_spill] sm:$0xff] %v6576_v57  ;;  %v1108_v36 = vadd.f32 %v1100_v40, %v1022_v37  ;;  %v1299_v15 = vmul.f32 %v1273_v54, %v6496_v53  ;;  %v1173_v51 = vadd.f32 %v8939_v31, %v1080_v46  ;;  %v1328_v24 = vmul.f32 %v6504_v41, %v1273_v54  ;;  %v6611_v40 = vld [vmem:[%s8764_s4 + $0x30] sm:$0xff]  ;;  %v6616_v46 = vld [vmem:[%s8764_s4 + $0x220] sm:$0xff]  ;;  %v6760_v41 = vld [vmem:[%s8764_s4 + $0x98] sm:$0xff] }
  0xba   : > { %v1286_v8 = vsel %vm658_vm5, %v1271_v20, %v1273_v54  ;;  %v1172_v62 = vadd.f32 %v8940_v49, %v1079_v52  ;;  %v6708_v53 = vld [vmem:[%s8764_s4 + $0x60] sm:$0xff]  ;;  %v6902_v33 = vld [vmem:[%s8764_s4 + $0x2c8] sm:$0xff] }
  0xbb   : > { %v1231_v47 = vadd.f32 %v8941_v45, %v1108_v36  ;;  %v1298_v12 = vmul.f32 %v1286_v8, %v6507_v44  ;;  %v1327_v37 = vmul.f32 %v6512_v63, %v1286_v8  ;;  %v1307_v54 = vadd.f32 %v1299_v15, %v1173_v51  ;;  %v8942_v36 = vld [vmem:[#allocation24_spill] sm:$0xff]  ;;  %v6626_v45 = vld [vmem:[%s8764_s4 + $0x230] sm:$0xff]  ;;  %v6970_v30 = vld [vmem:[%s8764_s4 + $0xe0] sm:$0xff] }
  0xbc   : > { %v1359_v20 = vpop.permute.xlu1 %1358  ;;  %v1357_v52 = vpop.permute.xlu0 %1356  ;;  %v1232_v31 = vadd.f32 %v8942_v36, %v1109_v43  ;;  %v6636_v43 = vld [vmem:[%s8764_s4 + $0x58] sm:$0xff]  ;;  %v6643_v8 = vld [vmem:[%s8764_s4 + $0x248] sm:$0xff]  ;;  %v6671_v44 = vld [vmem:[%s8764_s4 + $0x250] sm:$0xff] }
  0xbd   : > { %v1306_v15 = vadd.f32 %v1298_v12, %v1172_v62  ;;  %v1335_v51 = vadd.f32 %v1327_v37, %v1231_v47  ;;  %v1385_v36 = vmul.f32 %v1359_v20, %v6515_v17  ;;  %v1372_v49 = vsel %vm745_vm4, %v1357_v52, %v1359_v20  ;;  %v6661_v52 = vld [vmem:[%s8764_s4 + $0x50] sm:$0xff]  ;;  %v6689_v17 = vld [vmem:[%s8764_s4 + $0x78] sm:$0xff] }
  0xbe   : > { %v1384_v62 = vmul.f32 %v1372_v49, %v6523_v2  ;;  %v1413_v47 = vmul.f32 %v6550_v35, %v1372_v49  ;;  %v1336_v12 = vadd.f32 %v1328_v24, %v1232_v31  ;;  %v1414_v37 = vmul.f32 %v6565_v14, %v1359_v20  ;;  %v6684_v49 = vld [vmem:[%s8764_s4 + $0x68] sm:$0xff]  ;;  %v6728_v31 = vld [vmem:[%s8764_s4 + $0x270] sm:$0xff] }
  0xbf   : > { %v6673_v2 = vadd.f32 %v1385_v36, %v1307_v54  ;;  %v4763_v24 = vpack.c.bf16 %v6611_v40, %v6606_v25  ;;  %v4895_v20 = vpack.c.bf16 %v6626_v45, %v6616_v46  ;;  %v6694_v25 = vld [vmem:[%s8764_s4 + $0x268] sm:$0xff]  ;;  %v8956_v14 = vpack.c.bf16 %v6661_v52, %v6653_v19  ;;  %v6912_v19 = vld [vmem:[%s8764_s4 + $0xc0] sm:$0xff] }
  0xc0   : > { %v6696_v40 = vadd.f32 %v1384_v62, %v1306_v15  ;;  %v649_v46 = vpop.permute.xlu1 %648  ;;  %v647_v54 = vpop.permute.xlu0 %646  ;;  %v1422_v45 = vadd.f32 %v1414_v37, %v1336_v12  ;;  %v1421_v36 = vadd.f32 %v1413_v47, %v1335_v51  ;;  %v6713_v15 = vld [vmem:[%s8764_s4 + $0x70] sm:$0xff]  ;;  %v6723_v37 = vld [vmem:[%s8764_s4 + $0x260] sm:$0xff]  ;;  %v8946_v12 = vpack.c.bf16 %v6562_v38, %v6557_v61 }
  0xc1   : > { %8943 = vst [vmem:[#allocation19_spill] sm:$0xff] %v6673_v2  ;;  %v6703_v2 = vld [vmem:[%s8764_s4 + $0x278] sm:$0xff]  ;;  %v674_v51 = vmul.f32 %v649_v46, %v6431_v18  ;;  %v703_v62 = vmul.f32 %v6437_v4, %v649_v46  ;;  %v660_v47 = vsel %vm658_vm5, %v647_v54, %v649_v46  ;;  %v8945_v54 = vpack.c.bf16 %v6546_v0, %v6541_v39 }
  0xc2   : > { %8944 = vst [vmem:[#allocation20_spill] sm:$0xff] %v6696_v40  ;;  %v673_v40 = vmul.f32 %v660_v47, %v6428_v10  ;;  %v702_v35 = vmul.f32 %v6434_v6, %v660_v47  ;;  %4140 = vmatprep.mubr.msk.f32.mxu0 %vm745_vm4, %v1422_v45  ;;  %4280 = vmatprep.mubr.msk.f32.mxu1 %vm745_vm4, %v1422_v45  ;;  %v6745_v47 = vld [vmem:[%s8764_s4 + $0x88] sm:$0xff] }
  0xc3   : > { %1641 = vmatmul.mubr.f32.vlgmr.msra.gmra.mrb[0].mxu0 %v1421_v36  ;;  %1973 = vmatmul.mubr.f32.vlgmr.msra.gmra.mrb[0].mxu1 %v1421_v36  ;;  %v682_v45 = vadd.f32 %v674_v51, %v6406_v56  ;;  %v711_v46 = vadd.f32 %v703_v62, %v6410_v9  ;;  %v6765_v56 = vld [vmem:[%s8764_s4 + $0x288] sm:$0xff]  ;;  %v6770_v9 = vld [vmem:[%s8764_s4 + $0x298] sm:$0xff]  ;;  %v8947_v38 = vpack.c.bf16 %v6582_v32, %v6572_v22  ;;  %v6784_v62 = vld [vmem:[%s8764_s4 + $0x80] sm:$0xff] }
  0xc4   : > { %v736_v63 = vpop.permute.xlu1 %735  ;;  %v734_v36 = vpop.permute.xlu0 %733  ;;  %4760 = vmatpush1.bf16.msra.mxu0 %v8945_v54  ;;  %4892 = vmatpush1.bf16.msra.mxu1 %v8946_v12  ;;  %v8948_v51 = vpack.c.bf16 %v6592_v1, %v6587_v48  ;;  %v6789_v12 = vld [vmem:[%s8764_s4 + $0x90] sm:$0xff]  ;;  %v710_v54 = vadd.f32 %v702_v35, %v6457_v55  ;;  %v8957_v57 = vpack.c.bf16 %v6671_v44, %v6666_v26 }
  0xc5   : > { %v761_v39 = vmul.f32 %v736_v63, %v6416_v42  ;;  %v790_v0 = vmul.f32 %v6422_v28, %v736_v63  ;;  %v747_v61 = vsel %vm745_vm4, %v734_v36, %v736_v63  ;;  %4762 = vmatprep.subr.bf16.mxu0 %v8947_v38  ;;  %v681_v63 = vadd.f32 %v673_v40, %v6453_v23  ;;  %v6859_v36 = vld [vmem:[%s8764_s4 + $0xb0] sm:$0xff] }
  0xc6   : > { %4894 = vmatprep.subr.bf16.mxu1 %v8948_v51  ;;  %v760_v22 = vmul.f32 %v747_v61, %v6413_v59  ;;  %v789_v32 = vmul.f32 %v6419_v13, %v747_v61  ;;  %v6802_v51 = vld [vmem:[%s8764_s4 + $0x280] sm:$0xff]  ;;  %v8959_v52 = vpack.c.bf16 %v6703_v2, %v6694_v25  ;;  %v6965_v25 = vld [vmem:[%s8764_s4 + $0x2f8] sm:$0xff] }
  0xc7   : > { %v769_v48 = vadd.f32 %v761_v39, %v682_v45  ;;  %v798_v1 = vadd.f32 %v790_v0, %v711_v46  ;;  %v6809_v45 = vld [vmem:[%s8764_s4 + $0x290] sm:$0xff]  ;;  %v6814_v39 = vld [vmem:[%s8764_s4 + $0xa8] sm:$0xff]  ;;  %v6819_v0 = vld [vmem:[%s8764_s4 + $0xb8] sm:$0xff] }
  0xc8   : > { %v768_v23 = vadd.f32 %v760_v22, %v681_v63  ;;  %v797_v40 = vadd.f32 %v789_v32, %v710_v54  ;;  %v653_v55 = vpop.permute.xlu1 %652  ;;  %v651_v35 = vpop.permute.xlu0 %650  ;;  %4764 = vmatpush1.bf16.msra.mxu0 %v4763_v24  ;;  %4896 = vmatpush1.bf16.msra.mxu1 %v4895_v20  ;;  %v8949_v63 = vld [vmem:[#allocation27_spill] sm:$0xff]  ;;  %v8950_v22 = vpack.c.bf16 %v6636_v43, %v6631_v60  ;;  %v6833_v32 = vld [vmem:[%s8764_s4 + $0x2a8] sm:$0xff]  ;;  %v6838_v46 = vld [vmem:[%s8764_s4 + $0x2b8] sm:$0xff] }
  0xc9   : > { %v676_v24 = vmul.f32 %v653_v55, %v6431_v18  ;;  %v705_v20 = vmul.f32 %v6437_v4, %v653_v55  ;;  %v661_v61 = vsel %vm658_vm5, %v651_v35, %v653_v55  ;;  %v6825_v54 = vadd.f32 %v8949_v63, %v769_v48  ;;  %v8951_v48 = vld [vmem:[#allocation29_spill] sm:$0xff]  ;;  %v8952_v63 = vld [vmem:[#allocation31_spill] sm:$0xff] }
  0xca   : > { %4766 = vmatprep.subr.bf16.mxu0 %v8950_v22  ;;  %v675_v38 = vmul.f32 %v661_v61, %v6428_v10  ;;  %v704_v55 = vmul.f32 %v6434_v6, %v661_v61  ;;  %v6843_v35 = vadd.f32 %v8951_v48, %v798_v1  ;;  %v6846_v60 = vadd.f32 %v8952_v63, %v768_v23  ;;  %v6854_v22 = vld [vmem:[%s8764_s4 + $0xa0] sm:$0xff]  ;;  %v8954_v23 = vld [vmem:[#allocation22_spill] sm:$0xff]  ;;  %v6877_v63 = vld [vmem:[%s8764_s4 + $0x2b0] sm:$0xff] }
  0xcb   : > { %v8953_v43 = vpack.c.bf16 %v6648_v21, %v6643_v8  ;;  %v6864_v1 = vld [vmem:[%s8764_s4 + $0x2a0] sm:$0xff]  ;;  %v713_v61 = vadd.f32 %v705_v20, %v8954_v23  ;;  %v6868_v21 = vadd.f32 %v6154_v29, %v797_v40  ;;  %v6887_v29 = vld [vmem:[%s8764_s4 + $0xd8] sm:$0xff]  ;;  %v684_v40 = vadd.f32 %v676_v24, %v6460_v58  ;;  %v6926_v24 = vld [vmem:[%s8764_s4 + $0xd0] sm:$0xff] }
  0xcc   : > { %v8955_v20 = vld [vmem:[#allocation23_spill] sm:$0xff]  ;;  %v740_v48 = vpop.permute.xlu1 %739  ;;  %v738_v8 = vpop.permute.xlu0 %737  ;;  %4768 = vmatpush1.bf16.msra.mxu0 %v8956_v14  ;;  %v6907_v58 = vld [vmem:[%s8764_s4 + $0x2d8] sm:$0xff] }
  0xcd   : > { %4898 = vmatprep.subr.bf16.mxu1 %v8953_v43  ;;  %v6882_v43 = vld [vmem:[%s8764_s4 + $0xc8] sm:$0xff]  ;;  %v712_v23 = vadd.f32 %v704_v55, %v8955_v20  ;;  %v763_v26 = vmul.f32 %v740_v48, %v6416_v42  ;;  %v792_v44 = vmul.f32 %v6422_v28, %v740_v48  ;;  %v748_v14 = vsel %vm745_vm4, %v738_v8, %v740_v48  ;;  %v6931_v55 = vld [vmem:[%s8764_s4 + $0x2c0] sm:$0xff]  ;;  %v6936_v8 = vld [vmem:[%s8764_s4 + $0x2d0] sm:$0xff] }
  0xce   : > { %4900 = vmatpush1.bf16.msra.mxu1 %v8957_v57  ;;  %v8958_v57 = vpack.c.bf16 %v6689_v17, %v6684_v49  ;;  %v683_v17 = vadd.f32 %v675_v38, %v6476_v16  ;;  %v762_v2 = vmul.f32 %v748_v14, %v6413_v59  ;;  %v791_v49 = vmul.f32 %v6419_v13, %v748_v14  ;;  %v6946_v48 = vld [vmem:[%s8764_s4 + $0xe8] sm:$0xff]  ;;  %v6951_v20 = vld [vmem:[%s8764_s4 + $0xf8] sm:$0xff]  ;;  %v6988_v59 = vld [vmem:[%s8764_s4 + $0x2e0] sm:$0xff] }
  0xcf   : > { %4902 = vmatprep.subr.bf16.mxu1 %v8959_v52  ;;  %v6956_v16 = vld [vmem:[%s8764_s4 + $0x2e8] sm:$0xff]  ;;  %v771_v38 = vadd.f32 %v763_v26, %v684_v40  ;;  %v800_v14 = vadd.f32 %v792_v44, %v713_v61  ;;  %v6975_v61 = vld [vmem:[%s8764_s4 + $0xf0] sm:$0xff]  ;;  %v8960_v44 = vpack.c.bf16 %v6713_v15, %v6708_v53  ;;  %v8961_v52 = vpack.c.bf16 %v6728_v31, %v6723_v37 }
  0xd0   : > { %4770 = vmatprep.subr.bf16.mxu0 %v8958_v57  ;;  %v4911_v57 = vpack.c.bf16 %v6877_v63, %v6864_v1  ;;  %v770_v40 = vadd.f32 %v762_v2, %v683_v17  ;;  %v799_v1 = vadd.f32 %v791_v49, %v712_v23  ;;  %v964_v63 = vpop.permute.xlu1 %963  ;;  %v962_v26 = vpop.permute.xlu0 %961  ;;  %v4913_v13 = vpack.c.bf16 %v6907_v58, %v6902_v33  ;;  %v7005_v37 = vld [vmem:[%s8764_s4 + $0x2f0] sm:$0xff]  ;;  %v7030_v49 = vld [vmem:[%s8764_s4 + $0x308] sm:$0xff] }
  0xd1   : > { %4772 = vmatpush1.bf16.msra.mxu0 %v8960_v44  ;;  %v8962_v23 = vpack.c.bf16 %v6760_v41, %v6745_v47  ;;  %v8963_v53 = vpack.c.bf16 %v6770_v9, %v6765_v56  ;;  %v7010_v41 = vld [vmem:[%s8764_s4 + $0x108] sm:$0xff]  ;;  %v7015_v47 = vld [vmem:[%s8764_s4 + $0x118] sm:$0xff]  ;;  %v7018_v56 = vadd.f32 %v6169_v50, %v771_v38  ;;  %v988_v50 = vmul.f32 %v964_v63, %v6446_v5  ;;  %v7053_v2 = vld [vmem:[%s8764_s4 + $0x110] sm:$0xff] }
  0xd2   : > { %4904 = vmatpush1.bf16.msra.mxu1 %v8961_v52  ;;  %v8964_v9 = vld [vmem:[#allocation34_spill] sm:$0xff]  ;;  %v974_v38 = vsel %vm658_vm5, %v962_v26, %v964_v63  ;;  %v1017_v17 = vmul.f32 %v6463_v11, %v964_v63  ;;  %v7069_v63 = vld [vmem:[%s8764_s4 + $0x300] sm:$0xff] }
  0xd3   : > { %4774 = vmatprep.subr.bf16.mxu0 %v8962_v23  ;;  %4906 = vmatprep.subr.bf16.mxu1 %v8963_v53  ;;  %v7021_v58 = vadd.f32 %v8964_v9, %v800_v14  ;;  %v7035_v52 = vld [vmem:[%s8764_s4 + $0x318] sm:$0xff]  ;;  %v8965_v14 = vld [vmem:[#allocation35_spill] sm:$0xff]  ;;  %v8966_v23 = vld [vmem:[#allocation36_spill] sm:$0xff] }
  0xd4   : > { %v7040_v44 = vadd.f32 %v8965_v14, %v770_v40  ;;  %v7043_v53 = vadd.f32 %v8966_v23, %v799_v1  ;;  %v7048_v9 = vld [vmem:[%s8764_s4 + $0x100] sm:$0xff]  ;;  %v657_v33 = vpop.permute.xlu1 %656  ;;  %v655_v26 = vpop.permute.xlu0 %654  ;;  %v8967_v40 = vpack.c.bf16 %v6789_v12, %v6784_v62  ;;  %v8968_v1 = vpack.c.bf16 %v6809_v45, %v6802_v51  ;;  %v7074_v62 = vld [vmem:[%s8764_s4 + $0x310] sm:$0xff] }
  0xd5   : > { %v707_v12 = vmul.f32 %v6437_v4, %v657_v33  ;;  %v662_v51 = vsel %vm658_vm5, %v655_v26, %v657_v33  ;;  %v8969_v45 = vpack.c.bf16 %v6819_v0, %v6814_v39  ;;  %v987_v23 = vmul.f32 %v974_v38, %v6466_v3  ;;  %v8971_v0 = vld [vmem:[#allocation28_spill] sm:$0xff] }
  0xd6   : > { %4776 = vmatpush1.bf16.msra.mxu0 %v8967_v40  ;;  %4908 = vmatpush1.bf16.msra.mxu1 %v8968_v1  ;;  %v8970_v40 = vpack.c.bf16 %v6838_v46, %v6833_v32  ;;  %v1016_v14 = vmul.f32 %v6469_v27, %v974_v38  ;;  %v706_v15 = vmul.f32 %v6434_v6, %v662_v51  ;;  %v8972_v1 = vld [vmem:[#allocation33_spill] sm:$0xff] }
  0xd7   : > { %4778 = vmatprep.subr.bf16.mxu0 %v8969_v45  ;;  %v996_v26 = vadd.f32 %v988_v50, %v6825_v54  ;;  %v678_v39 = vmul.f32 %v657_v33, %v6431_v18  ;;  %v715_v45 = vadd.f32 %v707_v12, %v8971_v0  ;;  %v1025_v32 = vadd.f32 %v1017_v17, %v6843_v35  ;;  %v7105_v18 = vld [vmem:[%s8764_s4 + $0x128] sm:$0xff]  ;;  %v7110_v54 = vld [vmem:[%s8764_s4 + $0x138] sm:$0xff]  ;;  %v8976_v50 = vld [vmem:[#allocation49_spill] sm:$0xff] }
  0xd8   : > { %4910 = vmatprep.subr.bf16.mxu1 %v8970_v40  ;;  %v677_v40 = vmul.f32 %v662_v51, %v6428_v10  ;;  %v714_v38 = vadd.f32 %v706_v15, %v8972_v1  ;;  %v1050_v31 = vpop.permute.xlu1 %1049  ;;  %v1048_v6 = vpop.permute.xlu0 %1047  ;;  %v8973_v4 = vpack.c.bf16 %v6859_v36, %v6854_v22  ;;  %v8974_v36 = vpack.c.bf16 %v6887_v29, %v6882_v43  ;;  %v8975_v33 = vld [vmem:[#allocation48_spill] sm:$0xff]  ;;  %v8977_v51 = vld [vmem:[#allocation51_spill] sm:$0xff] }
  0xd9   : > { %v1074_v10 = vmul.f32 %v1050_v31, %v6479_v34  ;;  %v1103_v35 = vmul.f32 %v6482_v7, %v1050_v31  ;;  %v1060_v15 = vsel %vm745_vm4, %v1048_v6, %v1050_v31  ;;  %v995_v22 = vadd.f32 %v987_v23, %v6846_v60  ;;  %v8978_v6 = vld [vmem:[#allocation59_spill] sm:$0xff]  ;;  %v4189_v23 = vld [vmem:[%s8764_s4 + $0x338] sm:$0xff] }
  0xda   : > { %4780 = vmatpush1.bf16.msra.mxu0 %v8973_v4  ;;  %4912 = vmatpush1.bf16.msra.mxu1 %v4911_v57  ;;  %v1024_v57 = vadd.f32 %v1016_v14, %v6868_v21  ;;  %v1073_v17 = vmul.f32 %v1060_v15, %v8975_v33  ;;  %v1102_v12 = vmul.f32 %v8976_v50, %v1060_v15  ;;  %v4187_v14 = vld [vmem:[%s8764_s4 + $0x328] sm:$0xff]  ;;  %v8985_v15 = vld [vmem:[#allocation39_spill] sm:$0xff] }
  0xdb   : > { %4782 = vmatprep.subr.bf16.mxu0 %v8974_v36  ;;  %4914 = vmatprep.subr.bf16.mxu1 %v4913_v13  ;;  %v686_v1 = vadd.f32 %v678_v39, %v8977_v51  ;;  %v1082_v4 = vadd.f32 %v1074_v10, %v996_v26  ;;  %v1111_v0 = vadd.f32 %v1103_v35, %v1025_v32  ;;  %v8984_v10 = vld [vmem:[#allocation47_spill] sm:$0xff]  ;;  %v8988_v51 = vld [vmem:[#allocation42_spill] sm:$0xff] }
  0xdc   : > { %v4793_v31 = vpack.c.bf16 %v7110_v54, %v7105_v18  ;;  %v685_v46 = vadd.f32 %v677_v40, %v8978_v6  ;;  %v1081_v43 = vadd.f32 %v1073_v17, %v995_v22  ;;  %v1110_v29 = vadd.f32 %v1102_v12, %v1024_v57  ;;  %v744_v13 = vpop.permute.xlu1 %743  ;;  %v742_v36 = vpop.permute.xlu0 %741  ;;  %v8986_v57 = vld [vmem:[#allocation40_spill] sm:$0xff]  ;;  %v1476_v54 = vld [vmem:[%s8764_s4 + $0x178] sm:$0xff] }
  0xdd   : > { %v8979_v60 = vpack.c.bf16 %v6926_v24, %v6912_v19  ;;  %v8980_v21 = vpack.c.bf16 %v6936_v8, %v6931_v55  ;;  %v765_v26 = vmul.f32 %v744_v13, %v6416_v42  ;;  %v794_v39 = vmul.f32 %v6422_v28, %v744_v13  ;;  %v8981_v19 = vld [vmem:[#allocation37_spill] sm:$0xff]  ;;  %v7150_v8 = vld [vmem:[%s8764_s4 + $0x120] sm:$0xff]  ;;  %v8983_v28 = vld [vmem:[#allocation46_spill] sm:$0xff] }
  0xde   : > { %v749_v32 = vsel %vm745_vm4, %v742_v36, %v744_v13  ;;  %v7142_v24 = vadd.f32 %v8981_v19, %v1082_v4  ;;  %v8982_v55 = vpack.c.bf16 %v6951_v20, %v6946_v48  ;;  %v7155_v42 = vld [vmem:[%s8764_s4 + $0x130] sm:$0xff]  ;;  %v7160_v22 = vadd.f32 %v8985_v15, %v1111_v0  ;;  %v4186_v13 = vld [vmem:[%s8764_s4 + $0x320] sm:$0xff] }
  0xdf   : > { %4784 = vmatpush1.bf16.msra.mxu0 %v8979_v60  ;;  %4916 = vmatpush1.bf16.msra.mxu1 %v8980_v21  ;;  %v764_v40 = vmul.f32 %v749_v32, %v8983_v28  ;;  %v793_v35 = vmul.f32 %v8984_v10, %v749_v32  ;;  %v7163_v48 = vadd.f32 %v8986_v57, %v1081_v43  ;;  %v8994_v19 = vld [vmem:[#allocation15_spill] sm:$0xff]  ;;  %v8999_v10 = vld [vmem:[#allocation16_spill] sm:$0xff] }
  0xe0   : > { %4786 = vmatprep.subr.bf16.mxu0 %v8982_v55  ;;  %v8987_v20 = vpack.c.bf16 %v6965_v25, %v6956_v16  ;;  %v773_v17 = vadd.f32 %v765_v26, %v686_v1  ;;  %v802_v12 = vadd.f32 %v794_v39, %v715_v45  ;;  %v7169_v4 = vadd.f32 %v8988_v51, %v1110_v29  ;;  %v968_v60 = vpop.permute.xlu1 %967  ;;  %v966_v21 = vpop.permute.xlu0 %965  ;;  %v4188_v45 = vld [vmem:[%s8764_s4 + $0x330] sm:$0xff]  ;;  %v4193_v26 = vld [vmem:[%s8764_s4 + $0x358] sm:$0xff] }
  0xe1   : > { %v4925_v6 = vpack.c.bf16 %v4189_v23, %v4187_v14  ;;  %v772_v36 = vadd.f32 %v764_v40, %v685_v46  ;;  %v801_v0 = vadd.f32 %v793_v35, %v714_v38  ;;  %v8989_v43 = vpack.c.bf16 %v6975_v61, %v6970_v30  ;;  %v1470_v46 = vld [vmem:[%s8764_s4 + $0x148] sm:$0xff]  ;;  %v1472_v30 = vld [vmem:[%s8764_s4 + $0x158] sm:$0xff]  ;;  %v8991_v38 = vld [vmem:[#allocation25_spill] sm:$0xff] }
  0xe2   : > { %4918 = vmatprep.subr.bf16.mxu1 %v8987_v20  ;;  %v8990_v25 = vpack.c.bf16 %v7005_v37, %v6988_v59  ;;  %v4795_v16 = vpack.c.bf16 %v7155_v42, %v7150_v8  ;;  %v990_v61 = vmul.f32 %v968_v60, %v6446_v5  ;;  %v1019_v59 = vmul.f32 %v6463_v11, %v968_v60  ;;  %v4191_v23 = vld [vmem:[%s8764_s4 + $0x348] sm:$0xff]  ;;  %v8996_v42 = vld [vmem:[#allocation26_spill] sm:$0xff] }
  0xe3   : > { %4788 = vmatpush1.bf16.msra.mxu0 %v8989_v43  ;;  %v975_v37 = vsel %vm658_vm5, %v966_v21, %v968_v60  ;;  %v8992_v1 = vrot.slane %v8991_v38, 1  ;;  %v8993_v14 = vpack.c.bf16 %v7015_v47, %v7010_v41  ;;  %v8995_v55 = vrot.slane %v8994_v19, 1  ;;  %v4201_v19 = vld [vmem:[%s8764_s4 + $0x398] sm:$0xff] }
  0xe4   : > { %4920 = vmatpush1.bf16.msra.mxu1 %v8990_v25  ;;  %v989_v39 = vmul.f32 %v975_v37, %v6466_v3  ;;  %v1018_v32 = vmul.f32 %v6469_v27, %v975_v37  ;;  %v8997_v28 = vrot.slane %v8996_v42, 1  ;;  %v8998_v47 = vpack.c.bf16 %v7035_v52, %v7030_v49  ;;  %v1054_v51 = vpop.permute.xlu1 %1053  ;;  %v1052_v60 = vpop.permute.xlu0 %1051  ;;  %v1469_v52 = vld [vmem:[%s8764_s4 + $0x140] sm:$0xff] }
  0xe5   : > { %v7196_v29 = vadd.f32 %v8992_v1, %v773_v17  ;;  %4790 = vmatprep.subr.bf16.mxu0 %v8993_v14  ;;  %v7211_v8 = vadd.f32 %v8995_v55, %v802_v12  ;;  %v1027_v40 = vadd.f32 %v1019_v59, %v7021_v58  ;;  %v9000_v35 = vrot.slane %v8999_v10, 1  ;;  %v4194_v1 = vld [vmem:[%s8764_s4 + $0x360] sm:$0xff]  ;;  %v4196_v14 = vld [vmem:[%s8764_s4 + $0x370] sm:$0xff]  ;;  %v9003_v55 = vld [vmem:[#allocation38_spill] sm:$0xff] }
  0xe6   : > { %v7215_v41 = vadd.f32 %v8997_v28, %v772_v36  ;;  %4922 = vmatprep.subr.bf16.mxu1 %v8998_v47  ;;  %v4927_v57 = vpack.c.bf16 %v4188_v45, %v4186_v13  ;;  %v4797_v20 = vpack.c.bf16 %v1472_v30, %v1470_v46  ;;  %v998_v17 = vadd.f32 %v990_v61, %v7018_v56  ;;  %v1471_v56 = vld [vmem:[%s8764_s4 + $0x150] sm:$0xff]  ;;  %v9005_v10 = vld [vmem:[#allocation43_spill] sm:$0xff] }
  0xe7   : > { %v7223_v15 = vadd.f32 %v9000_v35, %v801_v0  ;;  %v1026_v12 = vadd.f32 %v1018_v32, %v7043_v53  ;;  %v9001_v36 = vpack.c.bf16 %v7053_v2, %v7048_v9  ;;  %v9002_v49 = vpack.c.bf16 %v7074_v62, %v7069_v63  ;;  %v4190_v9 = vld [vmem:[%s8764_s4 + $0x340] sm:$0xff]  ;;  %v4192_v63 = vld [vmem:[%s8764_s4 + $0x350] sm:$0xff]  ;;  %v1474_v62 = vld [vmem:[%s8764_s4 + $0x168] sm:$0xff] }
  0xe8   : > { %v4929_v58 = vpack.c.bf16 %v4193_v26, %v4191_v23  ;;  %v1076_v53 = vmul.f32 %v1054_v51, %v6479_v34  ;;  %v1105_v13 = vmul.f32 %v6482_v7, %v1054_v51  ;;  %v1061_v2 = vsel %vm745_vm4, %v1052_v60, %v1054_v51  ;;  %v1475_v46 = vld [vmem:[%s8764_s4 + $0x170] sm:$0xff]  ;;  %v7272_v59 = vpop.permute.xlu1 %1276  ;;  %v1275_v37 = vpop.permute.xlu0 %1274  ;;  %v1478_v23 = vld [vmem:[%s8764_s4 + $0x188] sm:$0xff]  ;;  %v4198_v60 = vld [vmem:[%s8764_s4 + $0x380] sm:$0xff] }
  0xe9   : > { %4792 = vmatpush1.bf16.msra.mxu0 %v9001_v36  ;;  %4924 = vmatpush1.bf16.msra.mxu1 %v9002_v49  ;;  %v997_v0 = vadd.f32 %v989_v39, %v7040_v44  ;;  %v1075_v21 = vmul.f32 %v1061_v2, %v8975_v33  ;;  %v1104_v18 = vmul.f32 %v8976_v50, %v1061_v2  ;;  %v1473_v44 = vld [vmem:[%s8764_s4 + $0x160] sm:$0xff]  ;;  %v4199_v32 = vld [vmem:[%s8764_s4 + $0x388] sm:$0xff]  ;;  %v9004_v28 = vld [vmem:[#allocation41_spill] sm:$0xff] }
  0xea   : > { %4794 = vmatprep.subr.bf16.mxu0 %v4793_v31  ;;  %4926 = vmatprep.subr.bf16.mxu1 %v4925_v6  ;;  %v4195_v31 = vld [vmem:[%s8764_s4 + $0x368] sm:$0xff]  ;;  %v4197_v6 = vld [vmem:[%s8764_s4 + $0x378] sm:$0xff]  ;;  %v1084_v43 = vadd.f32 %v1076_v53, %v998_v17  ;;  %v1113_v25 = vadd.f32 %v1105_v13, %v1027_v40  ;;  %v4799_v45 = vpack.c.bf16 %v1471_v56, %v1469_v52  ;;  %v1479_v51 = vld [vmem:[%s8764_s4 + $0x190] sm:$0xff] }
  0xeb   : > { %v1083_v30 = vadd.f32 %v1075_v21, %v997_v0  ;;  %v1112_v61 = vadd.f32 %v1104_v18, %v1026_v12  ;;  %v4931_v38 = vpack.c.bf16 %v4192_v63, %v4190_v9  ;;  %v4801_v26 = vpack.c.bf16 %v1476_v54, %v1474_v62  ;;  %v1477_v12 = vld [vmem:[%s8764_s4 + $0x180] sm:$0xff]  ;;  %v4200_v53 = vld [vmem:[%s8764_s4 + $0x390] sm:$0xff]  ;;  %v7323_v13 = vld [vmem:[%s8764_s4 + $0x1a8] sm:$0xff] }
  0xec   : > { %v4933_v39 = vpack.c.bf16 %v4197_v6, %v4195_v31  ;;  %v7293_v42 = vadd.f32 %v9003_v55, %v1084_v43  ;;  %v7296_v47 = vadd.f32 %v9004_v28, %v1113_v25  ;;  %v7300_v40 = vsel %vm658_vm5, %v1275_v37, %v7272_v59  ;;  %v972_v36 = vpop.permute.xlu1 %971  ;;  %v970_v49 = vpop.permute.xlu0 %969  ;;  %v7328_v2 = vld [vmem:[%s8764_s4 + $0x1b8] sm:$0xff]  ;;  %v9007_v9 = vld [vmem:[#allocation52_spill] sm:$0xff]  ;;  %v7355_v43 = vld [vmem:[%s8764_s4 + $0x1b0] sm:$0xff] }
  0xed   : > { %4796 = vmatpush1.bf16.msra.mxu0 %v4795_v16  ;;  %4928 = vmatpush1.bf16.msra.mxu1 %v4927_v57  ;;  %v1480_v16 = vld [vmem:[%s8764_s4 + $0x198] sm:$0xff]  ;;  %v7303_v35 = vadd.f32 %v9005_v10, %v1083_v30  ;;  %v9006_v57 = vld [vmem:[#allocation44_spill] sm:$0xff]  ;;  %v4803_v17 = vpack.c.bf16 %v1475_v46, %v1473_v44  ;;  %v4937_v56 = vpack.c.bf16 %v4201_v19, %v4199_v32  ;;  %v4204_v30 = vld [vmem:[%s8764_s4 + $0x3b0] sm:$0xff] }
  0xee   : > { %4798 = vmatprep.subr.bf16.mxu0 %v4797_v20  ;;  %4930 = vmatprep.subr.bf16.mxu1 %v4929_v58  ;;  %v7306_v20 = vadd.f32 %v9006_v57, %v1112_v61  ;;  %v4935_v58 = vpack.c.bf16 %v4196_v14, %v4194_v1  ;;  %v4805_v52 = vpack.c.bf16 %v1480_v16, %v1478_v23  ;;  %v7337_v21 = vld [vmem:[%s8764_s4 + $0x3a8] sm:$0xff]  ;;  %v7342_v18 = vld [vmem:[%s8764_s4 + $0x3b8] sm:$0xff]  ;;  %v1485_v19 = vld [vmem:[%s8764_s4 + $0x1c0] sm:$0xff] }
  0xef   : > { %v1330_v63 = vmul.f32 %v9007_v9, %v7272_v59  ;;  %v1021_v62 = vmul.f32 %v6463_v11, %v972_v36  ;;  %v976_v0 = vsel %vm658_vm5, %v970_v49, %v972_v36  ;;  %v9008_v54 = vld [vmem:[#allocation54_spill] sm:$0xff]  ;;  %v7350_v11 = vld [vmem:[%s8764_s4 + $0x1a0] sm:$0xff]  ;;  %v4939_v44 = vpack.c.bf16 %v4200_v53, %v4198_v60  ;;  %v7369_v61 = vld [vmem:[%s8764_s4 + $0x1c8] sm:$0xff] }
  0xf0   : > { %v1329_v31 = vmul.f32 %v9008_v54, %v7300_v40  ;;  %v1020_v6 = vmul.f32 %v6469_v27, %v976_v0  ;;  %v4809_v46 = vpack.c.bf16 %v7328_v2, %v7323_v13  ;;  %v4202_v27 = vld [vmem:[%s8764_s4 + $0x3a0] sm:$0xff]  ;;  %v1361_v1 = vpop.permute.xlu0 %1360  ;;  %v4941_v14 = vpack.c.bf16 %v7342_v18, %v7337_v21  ;;  %v1488_v23 = vld [vmem:[%s8764_s4 + $0x1d8] sm:$0xff]  ;;  %v1487_v55 = vld [vmem:[%s8764_s4 + $0x1d0] sm:$0xff] }
  0xf1   : > { %4800 = vmatpush1.bf16.msra.mxu0 %v4799_v45  ;;  %4932 = vmatpush1.bf16.msra.mxu1 %v4931_v38  ;;  %v1029_v25 = vadd.f32 %v1021_v62, %v7211_v8  ;;  %v4807_v45 = vpack.c.bf16 %v1479_v51, %v1477_v12  ;;  %v992_v8 = vmul.f32 %v972_v36, %v6446_v5  ;;  %v7373_v38 = vpop.permute.xlu1 %1362  ;;  %v7388_v5 = vld [vmem:[%s8764_s4 + $0x3d8] sm:$0xff]  ;;  %v9010_v10 = vld [vmem:[#allocation57_spill] sm:$0xff]  ;;  %v4211_v21 = vld [vmem:[%s8764_s4 + $0x3e8] sm:$0xff] }
  0xf2   : > { %4802 = vmatprep.subr.bf16.mxu0 %v4801_v26  ;;  %4934 = vmatprep.subr.bf16.mxu1 %v4933_v39  ;;  %v1028_v37 = vadd.f32 %v1020_v6, %v7223_v15  ;;  %v7383_v26 = vld [vmem:[%s8764_s4 + $0x3c8] sm:$0xff]  ;;  %v1338_v15 = vadd.f32 %v1330_v63, %v7160_v22  ;;  %v9009_v39 = vld [vmem:[#allocation58_spill] sm:$0xff]  ;;  %v7395_v32 = vsel %vm745_vm4, %v1361_v1, %v7373_v38  ;;  %v4208_v53 = vld [vmem:[%s8764_s4 + $0x3d0] sm:$0xff] }
  0xf3   : > { %v1416_v16 = vmul.f32 %v9009_v39, %v7373_v38  ;;  %v1337_v28 = vadd.f32 %v1329_v31, %v7169_v4  ;;  %v991_v22 = vmul.f32 %v976_v0, %v6466_v3  ;;  %v1415_v57 = vmul.f32 %v9010_v10, %v7395_v32  ;;  %v1490_v63 = vld [vmem:[%s8764_s4 + $0x1e8] sm:$0xff]  ;;  %v1492_v62 = vld [vmem:[%s8764_s4 + $0x1f8] sm:$0x3f]  ;;  %v4210_v1 = vld [vmem:[%s8764_s4 + $0x3e0] sm:$0xff] }
  0xf4   : > { %v4943_v51 = vpack.c.bf16 %v4204_v30, %v4202_v27  ;;  %v4813_v60 = vpack.c.bf16 %v1488_v23, %v7369_v61  ;;  %v4945_v36 = vpack.c.bf16 %v7388_v5, %v7383_v26  ;;  %v1000_v49 = vadd.f32 %v992_v8, %v7196_v29  ;;  %v4213_v18 = vld [vmem:[%s8764_s4 + $0x3f8] sm:$0x3f]  ;;  %v9013_v26 = vld [vmem:[#allocation17_spill] sm:$0xff] }
  0xf5   : > { %4804 = vmatpush1.bf16.msra.mxu0 %v4803_v17  ;;  %4936 = vmatpush1.bf16.msra.mxu1 %v4935_v58  ;;  %v4811_v17 = vpack.c.bf16 %v7355_v43, %v7350_v11  ;;  %v1424_v12 = vadd.f32 %v1416_v16, %v1338_v15  ;;  %v1058_v58 = vpop.permute.xlu1 %1057  ;;  %v1423_v4 = vadd.f32 %v1415_v57, %v1337_v28  ;;  %v9011_v61 = vld [vmem:[#allocation30_spill] sm:$0xff]  ;;  %v9014_v5 = vrot.slane %v9013_v26, 2  ;;  %v9015_v16 = vld [vmem:[#allocation32_spill] sm:$0xff] }
  0xf6   : > { %4806 = vmatprep.subr.bf16.mxu0 %v4805_v52  ;;  %4938 = vmatprep.subr.bf16.mxu1 %v4937_v56  ;;  %v1056_v52 = vpop.permute.xlu0 %1055  ;;  %v4815_v3 = vpack.c.bf16 %v1487_v55, %v1485_v19  ;;  %v4206_v56 = vld [vmem:[%s8764_s4 + $0x3c0] sm:$0xff]  ;;  %v1078_v13 = vmul.f32 %v1058_v58, %v6479_v34  ;;  %v1107_v2 = vmul.f32 %v6482_v7, %v1058_v58  ;;  %v9016_v19 = vrot.slane %v9015_v16, 2  ;;  %v9017_v28 = vld [vmem:[#allocation18_spill] sm:$0xff] }
  0xf7   : > { %v1062_v29 = vsel %vm745_vm4, %v1056_v52, %v1058_v58  ;;  %4141 = vmatprep.mubr.msk.f32.mxu0 %vm745_vm4, %v1424_v12  ;;  %4281 = vmatprep.mubr.msk.f32.mxu1 %vm745_vm4, %v1424_v12  ;;  %v999_v0 = vadd.f32 %v991_v22, %v7215_v41  ;;  %v4947_v11 = vpack.c.bf16 %v4208_v53, %v4206_v56  ;;  %v9018_v22 = vrot.slane %v9017_v28, 2 }
  0xf8   : > { %v1077_v34 = vmul.f32 %v1062_v29, %v8975_v33  ;;  %v1106_v7 = vmul.f32 %v8976_v50, %v1062_v29  ;;  %1647 = vmatmul.mubr.f32.gmra.mrb[2].mxu0 %v1423_v4  ;;  %1979 = vmatmul.mubr.f32.gmra.mrb[2].mxu1 %v1423_v4  ;;  %v1086_v31 = vadd.f32 %v1078_v13, %v1000_v49 }
  0xf9   : > { %4808 = vmatpush1.bf16.msra.mxu0 %v4807_v45  ;;  %4940 = vmatpush1.bf16.msra.mxu1 %v4939_v44  ;;  %v1115_v6 = vadd.f32 %v1107_v2, %v1029_v25  ;;  %v1281_v33 = vpop.permute.xlu1 %1280  ;;  %v4817_v50 = vpack.c.bf16 %v1492_v62, %v1490_v63  ;;  %v1489_v44 = vld [vmem:[%s8764_s4 + $0x1e0] sm:$0xff]  ;;  %v9012_v25 = vrot.slane %v9011_v61, 2  ;;  %v4949_v8 = vpack.c.bf16 %v4213_v18, %v4211_v21  ;;  %v9020_v18 = vld [vmem:[#allocation50_spill] sm:$0xff] }
  0xfa   : > { %4810 = vmatprep.subr.bf16.mxu0 %v4809_v46  ;;  %4942 = vmatprep.subr.bf16.mxu1 %v4941_v14  ;;  %v1085_v41 = vadd.f32 %v1077_v34, %v999_v0  ;;  %v1114_v43 = vadd.f32 %v1106_v7, %v1028_v37  ;;  %v1279_v45 = vpop.permute.xlu0 %1278  ;;  %v1332_v27 = vmul.f32 %v9007_v9, %v1281_v33  ;;  %v1491_v37 = vld [vmem:[%s8764_s4 + $0x1f0] sm:$0x3f] }
  0xfb   : > { %v1288_v30 = vsel %vm658_vm5, %v1279_v45, %v1281_v33  ;;  %v7446_v46 = vadd.f32 %v9012_v25, %v1086_v31  ;;  %v4212_v14 = vld [vmem:[%s8764_s4 + $0x3f0] sm:$0x3f]  ;;  %v1238_v15 = vadd.f32 %v9014_v5, %v1115_v6  ;;  %v1301_v31 = vmul.f32 %v7272_v59, %v9020_v18  ;;  %v9024_v59 = vld [vmem:[#allocation56_spill] sm:$0xff] }
  0xfc   : > { %v1331_v23 = vmul.f32 %v9008_v54, %v1288_v30  ;;  %v7462_v55 = vadd.f32 %v9016_v19, %v1085_v41  ;;  %v1237_v57 = vadd.f32 %v9018_v22, %v1114_v43  ;;  %v1340_v49 = vadd.f32 %v1332_v27, %v7296_v47  ;;  %v9021_v41 = vld [vmem:[#allocation55_spill] sm:$0xff]  ;;  %v9022_v43 = vld [vmem:[#allocation53_spill] sm:$0xff]  ;;  %v9025_v25 = vld [vmem:[#allocation20_spill] sm:$0xff] }
  0xfd   : > { %4812 = vmatpush1.bf16.msra.mxu0 %v4811_v17  ;;  %4944 = vmatpush1.bf16.msra.mxu1 %v4943_v51  ;;  %v1367_v17 = vpop.permute.xlu1 %1366  ;;  %v4820_v51 = vpack.c.bf16 %v1491_v37, %v1489_v44  ;;  %v1309_v45 = vadd.f32 %v1301_v31, %v7142_v24  ;;  %v1302_v61 = vmul.f32 %v1288_v30, %v9022_v43  ;;  %v2101_v31 = vld [vmem:[%s8765_s5 + $0x8] sm:$0xff] }
  0xfe   : > { %4814 = vmatprep.subr.bf16.mxu0 %v4813_v60  ;;  %4946 = vmatprep.subr.bf16.mxu1 %v4945_v36  ;;  %v1365_v12 = vpop.permute.xlu0 %1364  ;;  %v4952_v60 = vpack.c.bf16 %v4212_v14, %v4210_v1  ;;  %v1418_v58 = vmul.f32 %v9009_v39, %v1367_v17  ;;  %v1339_v36 = vadd.f32 %v1331_v23, %v7306_v20 }
  0xff   : > { %v1374_v52 = vsel %vm745_vm4, %v1365_v12, %v1367_v17  ;;  %v1389_v27 = vmul.f32 %v1367_v17, %v9021_v41  ;;  %v1310_v30 = vadd.f32 %v1302_v61, %v7303_v35  ;;  %v4336_v61 = vld [vmem:[%s8767_s7 + $0x298] sm:$0xff] }
 0x100   : > { %v1417_v56 = vmul.f32 %v9010_v10, %v1374_v52 }
 0x101   : > { %4816 = vmatpush1.bf16.msra.mxu0 %v4815_v3  ;;  %4948 = vmatpush1.bf16.msra.mxu1 %v4947_v11  ;;  %v1426_v3 = vadd.f32 %v1418_v58, %v1340_v49  ;;  %v1285_v53 = vpop.permute.xlu1 %1284 }
 0x102   : > { %4819 = vmatprep.subr.msk.bf16.mxu0 %vm6334_vm3, %v4817_v50  ;;  %4951 = vmatprep.subr.msk.bf16.mxu1 %vm6334_vm3, %v4949_v8  ;;  %v1283_v13 = vpop.permute.xlu0 %1282  ;;  %v1425_v2 = vadd.f32 %v1417_v56, %v1339_v36  ;;  %v1334_v47 = vmul.f32 %v9007_v9, %v1285_v53  ;;  %v9023_v50 = vld [vmem:[#allocation19_spill] sm:$0xff] }
 0x103   : > { %v1289_v29 = vsel %vm658_vm5, %v1283_v13, %v1285_v53  ;;  %4142 = vmatprep.mubr.msk.f32.mxu0 %vm745_vm4, %v1426_v3  ;;  %4282 = vmatprep.mubr.msk.f32.mxu1 %vm745_vm4, %v1426_v3 }
 0x104   : > { %v1333_v20 = vmul.f32 %v9008_v54, %v1289_v29  ;;  %1653 = vmatmul.mubr.f32.gmra.mrb[4].mxu0 %v1425_v2  ;;  %1985 = vmatmul.mubr.f32.gmra.mrb[4].mxu1 %v1425_v2  ;;  %v1342_v0 = vadd.f32 %v1334_v47, %v1238_v15  ;;  %v1387_v54 = vmul.f32 %v7373_v38, %v9021_v41 }
 0x105   : > { %4822 = vmatpush1.bf16.msk.msra.mxu0 %vm6334_vm3, %v4820_v51  ;;  %4954 = vmatpush1.bf16.msk.msra.mxu1 %vm6334_vm3, %v4952_v60  ;;  %v1371_v63 = vpop.permute.xlu1 %1370  ;;  %v1386_v38 = vmul.f32 %v7395_v32, %v9024_v59  ;;  %v1388_v32 = vmul.f32 %v1374_v52, %v9024_v59  ;;  %v1304_v1 = vmul.f32 %v1289_v29, %v9022_v43 }
 0x106   : > { %v1369_v62 = vpop.permute.xlu0 %1368  ;;  %v1420_v34 = vmul.f32 %v9009_v39, %v1371_v63  ;;  %v1341_v21 = vadd.f32 %v1333_v20, %v1237_v57  ;;  %v1300_v39 = vmul.f32 %v7300_v40, %v9022_v43  ;;  %v1395_v44 = vadd.f32 %v1387_v54, %v1309_v45  ;;  %v2844_v54 = vld [vmem:[%s8767_s7 + $0x80] sm:$0xff] }
 0x107   : > { %v1375_v7 = vsel %vm745_vm4, %v1369_v62, %v1371_v63  ;;  %v1396_v23 = vadd.f32 %v1388_v32, %v1310_v30  ;;  %v1312_v5 = vadd.f32 %v1304_v1, %v7462_v55  ;;  %v4317_v45 = vld [vmem:[%s8767_s7 + $0x200] sm:$0xff]  ;;  %v2831_v1 = vld [vmem:[%s8767_s7 + $0x18] sm:$0xff] }
 0x108   : > { %v1419_v9 = vmul.f32 %v9010_v10, %v1375_v7  ;;  %v1428_v6 = vadd.f32 %v1420_v34, %v1342_v0  ;;  %v1303_v10 = vmul.f32 %v1281_v33, %v9020_v18  ;;  %v1308_v40 = vadd.f32 %v1300_v39, %v7163_v48  ;;  %v2845_v39 = vld [vmem:[%s8767_s7 + $0x88] sm:$0xff] }
 0x109   : > { %v1305_v33 = vmul.f32 %v1285_v53, %v9020_v18  ;;  %v1391_v48 = vmul.f32 %v1371_v63, %v9021_v41  ;;  %v1390_v14 = vmul.f32 %v1375_v7, %v9024_v59  ;;  %v9026_v7 = vmov 0  ;;  %v4294_v18 = vld [vmem:[%s8765_s5 + $0x10] sm:$0xff]  ;;  %v4334_v41 = vld [vmem:[%s8767_s7 + $0x288] sm:$0xff] }
 0x10a   : > { %v1427_v11 = vadd.f32 %v1419_v9, %v1341_v21  ;;  %4143 = vmatprep.mubr.msk.f32.mxu0 %vm745_vm4, %v1428_v6  ;;  %4283 = vmatprep.mubr.msk.f32.mxu1 %vm745_vm4, %v1428_v6  ;;  %v1311_v24 = vadd.f32 %v1303_v10, %v7293_v42  ;;  %v1394_v8 = vadd.f32 %v1386_v38, %v1308_v40  ;;  %v9027_v7 = vsel %vm7526_vm7, 4294967295, %v9026_v7  ;;  %v2100_v9 = vld [vmem:[%s8765_s5] sm:$0xff]  ;;  %v4295_v6 = vld [vmem:[%s8765_s5 + $0x18] sm:$0xff]  ;;  %v4318_v10 = vld [vmem:[%s8767_s7 + $0x208] sm:$0xff] }
 0x10b   : > { %v1313_v42 = vadd.f32 %v1305_v33, %v7446_v46  ;;  %v1398_v35 = vadd.f32 %v1390_v14, %v1312_v5  ;;  %v8838_v46 = vmov 0.0   ;;  %9028 = vst [vmem:[#allocation21_spill] sm:$0xff] %v9027_v7  ;;  %v4977_v59 = vpack.c.bf16 %v4318_v10, %v4317_v45  ;;  %v2828_v38 = vld [vmem:[%s8767_s7] sm:$0xff] }
 0x10c   : > { %1659 = vmatmul.mubr.f32.gmra.mrb[6].mxu0 %v1427_v11  ;;  %1991 = vmatmul.mubr.f32.gmra.mrb[6].mxu1 %v1427_v11  ;;  %v1397_v37 = vadd.f32 %v1389_v27, %v1311_v24  ;;  %v4333_v11 = vld [vmem:[%s8767_s7 + $0x280] sm:$0xff]  ;;  %v4335_v27 = vld [vmem:[%s8767_s7 + $0x290] sm:$0xff]  ;;  %v2847_v24 = vld [vmem:[%s8767_s7 + $0x98] sm:$0xff] }
 0x10d   : > { %4146 = vmatprep.mubr.msk.f32.mxu0 %vm745_vm4, %v9023_v50  ;;  %4286 = vmatprep.mubr.msk.f32.mxu1 %vm745_vm4, %v9023_v50  ;;  %v1399_v26 = vadd.f32 %v1391_v48, %v1313_v42  ;;  %v4975_v43 = vpack.c.bf16 %v4334_v41, %v4333_v11  ;;  %v5008_v50 = vpack.c.bf16 %v2845_v39, %v2844_v54  ;;  %v2830_v48 = vld [vmem:[%s8767_s7 + $0x10] sm:$0xff]  ;;  %v4337_v14 = vld [vmem:[%s8767_s7 + $0x2a0] sm:$0xff]  ;;  %v2286_v54 = vld [vmem:[%s8766_s6 + $0x18] sm:$0xff] }
 0x10e   : > { %v4979_v33 = vpack.c.bf16 %v4336_v61, %v4335_v27  ;;  %v5014_v42 = vpack.c.bf16 %v2831_v1, %v2830_v48 }
 0x110   : > { %1748 = vmatmul.mubr.f32.vlgmr.msra.gmra.mrb[0].mxu0 %v9025_v25  ;;  %2068 = vmatmul.mubr.f32.vlgmr.msra.gmra.mrb[0].mxu1 %v9025_v25  ;;  %v2846_v25 = vld [vmem:[%s8767_s7 + $0x90] sm:$0xff] }
 0x111   : > { %4147 = vmatprep.mubr.msk.f32.mxu0 %vm745_vm4, %v1395_v44  ;;  %4287 = vmatprep.mubr.msk.f32.mxu1 %vm745_vm4, %v1395_v44  ;;  %v2829_v44 = vld [vmem:[%s8767_s7 + $0x8] sm:$0xff]  ;;  %v5012_v32 = vpack.c.bf16 %v2847_v24, %v2846_v25  ;;  %v9030_v24 = vld [vmem:[#allocation13_spill] sm:$0xff] }
 0x112   : > { %v5010_v40 = vpack.c.bf16 %v2829_v44, %v2828_v38  ;;  %v7675_v44 = vld [vmem:[%s8763_s3 + $0x17] ss:$8 sm:$0x3] }
 0x114   : > { %1754 = vmatmul.mubr.f32.gmra.mrb[2].mxu0 %v1394_v8  ;;  %2074 = vmatmul.mubr.f32.gmra.mrb[2].mxu1 %v1394_v8  ;;  %v4319_v8 = vld [vmem:[%s8767_s7 + $0x210] sm:$0xff] }
 0x115   : > { %4148 = vmatprep.mubr.msk.f32.mxu0 %vm745_vm4, %v1397_v37  ;;  %4288 = vmatprep.mubr.msk.f32.mxu1 %vm745_vm4, %v1397_v37  ;;  %v4320_v37 = vld [vmem:[%s8767_s7 + $0x218] sm:$0xff] }
 0x116   : > { %v4981_v30 = vpack.c.bf16 %v4320_v37, %v4319_v8 }
 0x118   : > { %1760 = vmatmul.mubr.f32.gmra.mrb[4].mxu0 %v1396_v23  ;;  %2080 = vmatmul.mubr.f32.gmra.mrb[4].mxu1 %v1396_v23  ;;  %v4338_v23 = vld [vmem:[%s8767_s7 + $0x2a8] sm:$0xff] }
 0x119   : > { %4149 = vmatprep.mubr.msk.f32.mxu0 %vm745_vm4, %v1399_v26  ;;  %4289 = vmatprep.mubr.msk.f32.mxu1 %vm745_vm4, %v1399_v26  ;;  %v2848_v26 = vld [vmem:[%s8767_s7 + $0xa0] sm:$0xff]  ;;  %v4983_v5 = vpack.c.bf16 %v4338_v23, %v4337_v14 }
 0x11c   : > { %1766 = vmatmul.mubr.f32.gmra.mrb[6].mxu0 %v1398_v35  ;;  %2086 = vmatmul.mubr.f32.gmra.mrb[6].mxu1 %v1398_v35  ;;  %v2849_v35 = vld [vmem:[%s8767_s7 + $0xa8] sm:$0xff] }
 0x11d   : > { %2180 = vmatprep.mubr.f32.mxu0 %v8838_v46  ;;  %2266 = vmatprep.mubr.f32.mxu1 %v8838_v46 }
 0x1e3   : > { %v1749_v15 = vpop.f32.mrb[0].mxu0  ;;  %v2069_v16 = vpop.f32.mrb[0].mxu1 }
 0x1e4   : > { %v2092_v19 = vmax.f32 %v1749_v15, %v2069_v16  ;;  %v1751_v28 = vpop.f32.mrb[1].mxu0  ;;  %v2071_v22 = vpop.f32.mrb[1].mxu1  ;;  %v4321_v15 = vld [vmem:[%s8767_s7 + $0x220] sm:$0xff]  ;;  %v4322_v16 = vld [vmem:[%s8767_s7 + $0x228] sm:$0xff] }
 0x1e5   : > { %v2093_v55 = vmax.f32 %v1751_v28, %v2071_v22  ;;  %v4985_v28 = vpack.c.bf16 %v4322_v16, %v4321_v15  ;;  %v2832_v22 = vld [vmem:[%s8767_s7 + $0x20] sm:$0xff] }
 0x1e7   : > { %v1755_v57 = vpop.f32.mrb[2].mxu0  ;;  %v2075_v17 = vpop.f32.mrb[2].mxu1 }
 0x1e8   : > { %v2094_v12 = vmax.f32 %v1755_v57, %v2075_v17  ;;  %v1757_v51 = vpop.f32.mrb[3].mxu0  ;;  %v2077_v60 = vpop.f32.mrb[3].mxu1  ;;  %v2283_v57 = vld [vmem:[%s8766_s6] sm:$0xff] }
 0x1e9   : > { %v2095_v49 = vmax.f32 %v1757_v51, %v2077_v60  ;;  %v4340_v51 = vld [vmem:[%s8767_s7 + $0x2b8] sm:$0xff]  ;;  %v2850_v60 = vld [vmem:[%s8767_s7 + $0xb0] sm:$0xff] }
 0x1ea   : > { %v4957_v58 = vpack.c.bf16 %v2094_v12, %v2092_v19  ;;  %v5016_v19 = vpack.c.bf16 %v2849_v35, %v2848_v26  ;;  %v4339_v12 = vld [vmem:[%s8767_s7 + $0x2b0] sm:$0xff] }
 0x1eb   : > { %v4955_v52 = vpack.c.bf16 %v2095_v49, %v2093_v55  ;;  %v1761_v36 = vpop.f32.mrb[4].mxu0  ;;  %v2081_v56 = vpop.f32.mrb[4].mxu1  ;;  %v2833_v55 = vld [vmem:[%s8767_s7 + $0x28] sm:$0xff] }
 0x1ec   : > { %v2096_v3 = vmax.f32 %v1761_v36, %v2081_v56  ;;  %v1763_v53 = vpop.f32.mrb[5].mxu0  ;;  %v2083_v13 = vpop.f32.mrb[5].mxu1  ;;  %v5018_v17 = vpack.c.bf16 %v2833_v55, %v2832_v22  ;;  %v2851_v36 = vld [vmem:[%s8767_s7 + $0xb8] sm:$0xff]  ;;  %v4323_v56 = vld [vmem:[%s8767_s7 + $0x230] sm:$0xff]  ;;  %v4341_v55 = vld [vmem:[%s8767_s7 + $0x2c0] sm:$0xff] }
 0x1ed   : > { %v2097_v2 = vmax.f32 %v1763_v53, %v2083_v13  ;;  %4956 = vmatprep.subr.bf16.mxu0 %v4955_v52  ;;  %4966 = vmatprep.subr.bf16.mxu1 %v4955_v52  ;;  %v4987_v52 = vpack.c.bf16 %v4340_v51, %v4339_v12 }
 0x1ee   : > { %4958 = vmatpush1.bf16.msra.mxu0 %v4957_v58  ;;  %4968 = vmatpush1.bf16.msra.mxu1 %v4957_v58 }
 0x1ef   : > { %v1767_v47 = vpop.f32.mrb[6].mxu0  ;;  %v2087_v29 = vpop.f32.mrb[6].mxu1 }
 0x1f0   : > { %v2098_v20 = vmax.f32 %v1767_v47, %v2087_v29  ;;  %v1769_v63 = vpop.f32.mrb[7].mxu0  ;;  %v2089_v62 = vpop.f32.mrb[7].mxu1  ;;  %v2284_v47 = vld [vmem:[%s8766_s6 + $0x8] sm:$0xff]  ;;  %v5020_v29 = vpack.c.bf16 %v2851_v36, %v2850_v60 }
 0x1f1   : > { %v2099_v0 = vmax.f32 %v1769_v63, %v2089_v62  ;;  %v2834_v63 = vld [vmem:[%s8767_s7 + $0x30] sm:$0xff]  ;;  %v2835_v62 = vld [vmem:[%s8767_s7 + $0x38] sm:$0xff] }
 0x1f2   : > { %v4962_v34 = vpack.c.bf16 %v2098_v20, %v2096_v3  ;;  %v4324_v3 = vld [vmem:[%s8767_s7 + $0x238] sm:$0xff] }
 0x1f3   : > { %v4959_v21 = vpack.c.bf16 %v2099_v0, %v2097_v2  ;;  %v4989_v20 = vpack.c.bf16 %v4324_v3, %v4323_v56 }
 0x1f5   : > { %4961 = vmatprep.subr.msk.bf16.mxu0 %vm7526_vm7, %v4959_v21  ;;  %4971 = vmatprep.subr.msk.bf16.mxu1 %vm7526_vm7, %v4959_v21  ;;  %v4305_v21 = vld [vmem:[%s8763_s3 + $0x3] ss:$8 sm:$0x3] }
 0x1f6   : > { %4964 = vmatpush1.bf16.msk.msra.mxu0 %vm7526_vm7, %v4962_v34  ;;  %4974 = vmatpush1.bf16.msk.msra.mxu1 %vm7526_vm7, %v4962_v34  ;;  %v5022_v34 = vpack.c.bf16 %v2835_v62, %v2834_v63 }
 0x1f7   : > { %4976 = vmatprep.subr.bf16.mxu0 %v4975_v43  ;;  %5009 = vmatprep.subr.bf16.mxu1 %v5008_v50  ;;  %v4311_v43 = vld [vmem:[%s8763_s3 + $0x6] ss:$8 sm:$0x3] }
 0x1f8   : > { %v7690_v48 = vrot.slane %v4311_v43, %v9030_v24 }
 0x1f9   : > { %4292 = vmatmul.mubr.msk.f32.vlgmr.msra.gmra.mrb[8].mxu0 %vm2102_vm8, %v2100_v9  ;;  %4298 = vmatmul.mubr.msk.f32.vlgmr.msra.gmra.mrb[8].mxu1 %vm2102_vm8, %v4294_v18  ;;  %v2285_v18 = vld [vmem:[%s8766_s6 + $0x10] sm:$0xff] }
 0x1fa   : > { %2186 = vmatprep.mubr.f32.mxu0 %v8838_v46  ;;  %2272 = vmatprep.mubr.f32.mxu1 %v8838_v46 }
 0x1fb   : > { %4978 = vmatpush3.bf16.msra.mxu0 %v4977_v59  ;;  %5011 = vmatpush3.bf16.msra.mxu1 %v5010_v40  ;;  %v9029_v59 = vld [vmem:[#allocation14_spill] sm:$0xff] }
 0x1fc   : > { %4980 = vmatprep.subr.bf16.mxu0 %v4979_v33  ;;  %5013 = vmatprep.subr.bf16.mxu1 %v5012_v32  ;;  %v2458_v38 = vrot.slane %v4305_v21, %v9029_v59  ;;  %v2462_v33 = vrot.slane %v4305_v21, %v9030_v24  ;;  %v7687_v37 = vrot.slane %v4311_v43, %v9029_v59 }
 0x1fd   : > { %4293 = vmatmul.mubr.msk.f32.gmra.mrb[10].mxu0 %vm2102_vm8, %v2101_v31  ;;  %4299 = vmatmul.mubr.msk.f32.gmra.mrb[10].mxu1 %vm2102_vm8, %v4295_v6  ;;  %v4306_v31 = vld [vmem:[%s8763_s3 + $0x14] ss:$8 sm:$0x3] }
 0x1fe   : > { %v2493_v61 = vrot.slane %v4306_v31, %v9029_v59  ;;  %v2497_v32 = vrot.slane %v4306_v31, %v9030_v24  ;;  %v4344_v31 = vld [vmem:[%s8767_s7 + $0x2d8] sm:$0xff] }
 0x1ff   : > { %4982 = vmatpush3.bf16.msra.mxu0 %v4981_v30  ;;  %5015 = vmatpush3.bf16.msra.mxu1 %v5014_v42  ;;  %v7694_v30 = vrot.slane %v7675_v44, %v9029_v59 }
 0x200   : > { %4984 = vmatprep.subr.bf16.mxu0 %v4983_v5  ;;  %5017 = vmatprep.subr.bf16.mxu1 %v5016_v19 }
 0x203   : > { %4986 = vmatpush3.bf16.msra.mxu0 %v4985_v28  ;;  %5019 = vmatpush3.bf16.msra.mxu1 %v5018_v17 }
 0x204   : > { %4988 = vmatprep.subr.bf16.mxu0 %v4987_v52  ;;  %5021 = vmatprep.subr.bf16.mxu1 %v5020_v29  ;;  %v4325_v52 = vld [vmem:[%s8767_s7 + $0x240] sm:$0xff] }
 0x207   : > { %4990 = vmatpush3.bf16.msra.mxu0 %v4989_v20  ;;  %5023 = vmatpush3.bf16.msra.mxu1 %v5022_v34 }
 0x2cc   : > { %v2182_v49 = vpop.f32.mrb[8].mxu0  ;;  %v2268_v58 = vpop.f32.mrb[8].mxu1 }
 0x2cd   : > { %v2279_v53 = vmax.f32 %v2182_v49, %v2268_v58  ;;  %v2184_v13 = vpop.f32.mrb[9].mxu0  ;;  %v2270_v2 = vpop.f32.mrb[9].mxu1  ;;  %v2852_v49 = vld [vmem:[%s8767_s7 + $0xc0] sm:$0xff]  ;;  %v2853_v58 = vld [vmem:[%s8767_s7 + $0xc8] sm:$0xff] }
 0x2ce   : > { %v2280_v0 = vmax.f32 %v2184_v13, %v2270_v2  ;;  %v4326_v13 = vld [vmem:[%s8767_s7 + $0x248] sm:$0xff]  ;;  %v2836_v2 = vld [vmem:[%s8767_s7 + $0x40] sm:$0xff] }
 0x2cf   : > { %v2287_v9 = vadd.f32 %v2283_v57, %v2279_v53  ;;  %v4342_v57 = vld [vmem:[%s8767_s7 + $0x2c8] sm:$0xff] }
 0x2d0   : > { %v2288_v6 = vadd.f32 %v2284_v47, %v2280_v0  ;;  %v2188_v11 = vpop.f32.mrb[10].mxu0  ;;  %v2274_v41 = vpop.f32.mrb[10].mxu1  ;;  %v2837_v47 = vld [vmem:[%s8767_s7 + $0x48] sm:$0xff] }
 0x2d1   : > { %v7669_v39 = vmax.f32 %v2287_v9, 0.0  ;;  %v2281_v45 = vmax.f32 %v2188_v11, %v2274_v41  ;;  %v2190_v10 = vpop.f32.mrb[11].mxu0  ;;  %v2276_v50 = vpop.f32.mrb[11].mxu1  ;;  %v4991_v9 = vpack.c.bf16 %v4342_v57, %v4341_v55  ;;  %v5024_v41 = vpack.c.bf16 %v2853_v58, %v2852_v49  ;;  %v4345_v49 = vld [vmem:[%s8767_s7 + $0x2e0] sm:$0xff] }
 0x2d2   : > { %v7677_v27 = vmax.f32 %v2288_v6, 0.0  ;;  %v2282_v40 = vmax.f32 %v2190_v10, %v2276_v50  ;;  %v2854_v6 = vld [vmem:[%s8767_s7 + $0xd0] sm:$0xff]  ;;  %v5026_v43 = vpack.c.bf16 %v2837_v47, %v2836_v2  ;;  %v4328_v50 = vld [vmem:[%s8767_s7 + $0x258] sm:$0xff] }
 0x2d3   : > { %v2289_v25 = vadd.f32 %v2285_v18, %v2281_v45  ;;  %2353 = vrot.lane.b32.xlu0 %v7669_v39, %s8869_s18  ;;  %v2535_v42 = vrot.slane %v7669_v39, 1  ;;  %v2723_v14 = vrot.slane %v7669_v39, 2  ;;  %v2465_v23 = vmul.f32 %v2458_v38, %v7669_v39  ;;  %v4343_v18 = vld [vmem:[%s8767_s7 + $0x2d0] sm:$0xff]  ;;  %v2855_v45 = vld [vmem:[%s8767_s7 + $0xd8] sm:$0xff]  ;;  %4992 = vmatprep.subr.bf16.mxu0 %v4991_v9 }
 0x2d4   : > { %v2290_v8 = vadd.f32 %v2286_v54, %v2282_v40  ;;  %2355 = vrot.lane.b32.xlu1 %v7677_v27, %s8869_s18  ;;  %v2538_v5 = vrot.slane %v7677_v27, 1  ;;  %v2726_v35 = vrot.slane %v7677_v27, 2  ;;  %v2500_v15 = vmul.f32 %v2493_v61, %v7669_v39  ;;  %v4327_v10 = vld [vmem:[%s8767_s7 + $0x250] sm:$0xff]  ;;  %5025 = vmatprep.subr.bf16.mxu1 %v5024_v41  ;;  %v2840_v41 = vld [vmem:[%s8767_s7 + $0x60] sm:$0xff] }
 0x2d5   : > { %v7696_v1 = vmax.f32 %v2289_v25, 0.0  ;;  %v2466_v28 = vmul.f32 %v2462_v33, %v7677_v27  ;;  %v2501_v51 = vmul.f32 %v2497_v32, %v7677_v27  ;;  %v2473_v3 = vrot.slane %v2465_v23, 1  ;;  %5027 = vmatpush3.bf16.msra.mxu1 %v5026_v43 }
 0x2d6   : > { %v7701_v26 = vmax.f32 %v2290_v8, 0.0  ;;  %v2508_v63 = vrot.slane %v2500_v15, 1  ;;  %v4993_v54 = vpack.c.bf16 %v4326_v13, %v4325_v52  ;;  %v4995_v8 = vpack.c.bf16 %v4344_v31, %v4343_v18 }
 0x2d7   : > { %2409 = vrot.lane.b32.xlu0 %v7669_v39, %s8867_s20  ;;  %v7709_v16 = vrot.slane %v7696_v1, 1  ;;  %v7712_v19 = vrot.slane %v7696_v1, 2  ;;  %v7716_v22 = vmul.f32 %v2458_v38, %v7696_v1  ;;  %v7734_v60 = vmul.f32 %v2493_v61, %v7696_v1 }
 0x2d8   : > { %2411 = vrot.lane.b32.xlu1 %v7677_v27, %s8867_s20  ;;  %v7727_v17 = vrot.slane %v7701_v26, 1  ;;  %v7730_v12 = vrot.slane %v7701_v26, 2  ;;  %v7775_v34 = vmul.f32 %v2462_v33, %v7701_v26  ;;  %v7778_v21 = vmul.f32 %v2497_v32, %v7701_v26  ;;  %v2838_v33 = vld [vmem:[%s8767_s7 + $0x50] sm:$0xff]  ;;  %v2839_v32 = vld [vmem:[%s8767_s7 + $0x58] sm:$0xff]  ;;  %4994 = vmatpush3.bf16.msra.mxu0 %v4993_v54  ;;  %v2841_v54 = vld [vmem:[%s8767_s7 + $0x68] sm:$0xff] }
 0x2d9   : > { %v2537_v36 = vsel %vm836_vm0, %v2535_v42, %v7709_v16  ;;  %v7749_v56 = vsel %vm1149_vm1, %v2723_v14, %v7712_v19  ;;  %v8845_v53 = vrot.slane %v7716_v22, 1  ;;  %v8844_v62 = vrot.slane %v7734_v60, 1  ;;  %4996 = vmatprep.subr.bf16.mxu0 %v4995_v8  ;;  %v2859_v8 = vld [vmem:[%s8767_s7 + $0xf8] sm:$0x3f] }
 0x2da   : > { %v2540_v29 = vsel %vm836_vm0, %v2538_v5, %v7727_v17  ;;  %v7765_v20 = vsel %vm1149_vm1, %v2726_v35, %v7730_v12  ;;  %v2476_v38 = vrot.slane %v2466_v28, 1  ;;  %v2511_v40 = vrot.slane %v2501_v51, 1 }
 0x2db   : > { %2541 = vrot.lane.b32.xlu0 %v2537_v36, %s8869_s18  ;;  %v7772_v0 = vsel %vm836_vm0, %v2473_v3, %v8845_v53  ;;  %v7793_v11 = vsel %vm836_vm0, %v2508_v63, %v8844_v62  ;;  %v8847_v61 = vrot.slane %v7775_v34, 1  ;;  %v8846_v25 = vrot.slane %v7778_v21, 1  ;;  %v2857_v3 = vld [vmem:[%s8767_s7 + $0xe8] sm:$0xff] }
 0x2dc   : > { %2543 = vrot.lane.b32.xlu1 %v2540_v29, %s8869_s18  ;;  %v2685_v42 = vrot.slane %v7675_v44, %v9030_v24  ;;  %v5028_v5 = vpack.c.bf16 %v2855_v45, %v2854_v6  ;;  %v4997_v35 = vpack.c.bf16 %v4328_v50, %v4327_v10  ;;  %v5030_v15 = vpack.c.bf16 %v2839_v32, %v2838_v33  ;;  %v4330_v63 = vld [vmem:[%s8767_s7 + $0x268] sm:$0xff]  ;;  %v4347_v10 = vld [vmem:[%s8767_s7 + $0x2f0] sm:$0xff]  ;;  %v4348_v50 = vld [vmem:[%s8767_s7 + $0x2f8] sm:$0x3f] }
 0x2dd   : > { %v7818_v14 = vsel %vm836_vm0, %v2476_v38, %v8847_v61  ;;  %v7823_v23 = vsel %vm836_vm0, %v2511_v40, %v8846_v25  ;;  %v2653_v44 = vmul.f32 %v7687_v37, %v7669_v39  ;;  %v2654_v28 = vmul.f32 %v7690_v48, %v7677_v27  ;;  %v2858_v38 = vld [vmem:[%s8767_s7 + $0xf0] sm:$0xff] }
 0x2de   : > { %5029 = vmatprep.subr.bf16.mxu1 %v5028_v5  ;;  %v7832_v55 = vmul.f32 %v7687_v37, %v7696_v1  ;;  %v7836_v57 = vmul.f32 %v7690_v48, %v7701_v26  ;;  %v2688_v51 = vmul.f32 %v7694_v30, %v7669_v39  ;;  %4998 = vmatpush3.bf16.msra.mxu0 %v4997_v35  ;;  %v4346_v48 = vld [vmem:[%s8767_s7 + $0x2e8] sm:$0xff]  ;;  %v4332_v5 = vld [vmem:[%s8767_s7 + $0x278] sm:$0xff] }
 0x2df   : > { %2597 = vrot.lane.b32.xlu0 %v2537_v36, %s8867_s20  ;;  %v2689_v58 = vmul.f32 %v2685_v42, %v7677_v27  ;;  %v7846_v52 = vmul.f32 %v7694_v30, %v7696_v1  ;;  %v7849_v37 = vmul.f32 %v2685_v42, %v7701_v26  ;;  %v2856_v36 = vld [vmem:[%s8767_s7 + $0xe0] sm:$0xff]  ;;  %5031 = vmatpush3.bf16.msra.mxu1 %v5030_v15  ;;  %v2661_v30 = vrot.slane %v2653_v44, 2  ;;  %v4331_v42 = vld [vmem:[%s8767_s7 + $0x270] sm:$0xff] }
 0x2e0   : > { %2599 = vrot.lane.b32.xlu1 %v2540_v29, %s8867_s20  ;;  %9031 = vst [vmem:[#allocation24_spill] sm:$0xff] %v7832_v55  ;;  %v8840_v13 = vrot.slane %v7832_v55, 2  ;;  %v2664_v2 = vrot.slane %v2654_v28, 2  ;;  %v8843_v47 = vrot.slane %v7836_v57, 2  ;;  %v4329_v29 = vld [vmem:[%s8767_s7 + $0x260] sm:$0xff]  ;;  %v2696_v9 = vrot.slane %v2688_v51, 2 }
 0x2e1   : > { %v8841_v18 = vrot.slane %v7846_v52, 2  ;;  %v2699_v31 = vrot.slane %v2689_v58, 2  ;;  %v8842_v6 = vrot.slane %v7849_v37, 2  ;;  %v4999_v32 = vpack.c.bf16 %v4346_v48, %v4345_v49  ;;  %v2842_v28 = vld [vmem:[%s8767_s7 + $0x70] sm:$0xff]  ;;  %v2843_v51 = vld [vmem:[%s8767_s7 + $0x78] sm:$0xff]  ;;  %v4403_v49 = vld [vmem:[%s8767_s7 + $0x380] sm:$0xff] }
 0x2e2   : > { %v7883_v43 = vsel %vm1149_vm1, %v2661_v30, %v8840_v13  ;;  %v7888_v45 = vsel %vm1149_vm1, %v2664_v2, %v8843_v47  ;;  %v5032_v35 = vpack.c.bf16 %v2857_v3, %v2856_v36  ;;  %v5001_v15 = vpack.c.bf16 %v4330_v63, %v4329_v29  ;;  %v4371_v58 = vld [vmem:[%s8767_s7 + $0x180] sm:$0xff]  ;;  %v4372_v48 = vld [vmem:[%s8767_s7 + $0x188] sm:$0xff] }
 0x2e3   : > { %2729 = vrot.lane.b32.xlu0 %v7749_v56, %s8869_s18  ;;  %v7902_v40 = vsel %vm1149_vm1, %v2696_v9, %v8841_v18  ;;  %v7907_v33 = vsel %vm1149_vm1, %v2699_v31, %v8842_v6  ;;  %v5034_v44 = vpack.c.bf16 %v2841_v54, %v2840_v41  ;;  %5000 = vmatprep.subr.bf16.mxu0 %v4999_v32  ;;  %v4301_v63 = vld [vmem:[%s8763_s3 + $0x1] ss:$8 sm:$0x3]  ;;  %v4300_v9 = vld [vmem:[%s8763_s3 + $0x11] ss:$8 sm:$0x3] }
 0x2e4   : > { %2731 = vrot.lane.b32.xlu1 %v7765_v20, %s8869_s18  ;;  %5033 = vmatprep.subr.bf16.mxu1 %v5032_v35  ;;  %v5003_v36 = vpack.c.bf16 %v4348_v50, %v4347_v10  ;;  %v5036_v3 = vpack.c.bf16 %v2859_v8, %v2858_v38  ;;  %v5006_v30 = vpack.c.bf16 %v4332_v5, %v4331_v42  ;;  %v4303_v31 = vld [vmem:[%s8763_s3 + $0x2] ss:$8 sm:$0x3]  ;;  %v4304_v50 = vld [vmem:[%s8763_s3 + $0x13] ss:$8 sm:$0x3] }
 0x2e5   : > { %5002 = vmatpush3.bf16.msra.mxu0 %v5001_v15  ;;  %5035 = vmatpush3.bf16.msra.mxu1 %v5034_v44  ;;  %v5074_v29 = vpack.c.bf16 %v4372_v48, %v4371_v58  ;;  %v7993_v54 = vrot.slane %v4301_v63, %v9029_v59  ;;  %v8002_v32 = vrot.slane %v4300_v9, %v9030_v24  ;;  %v4307_v44 = vld [vmem:[%s8763_s3 + $0x4] ss:$8 sm:$0x3] }
 0x2e6   : > { %5005 = vmatprep.subr.msk.bf16.mxu0 %vm6334_vm3, %v5003_v36  ;;  %5038 = vmatprep.subr.msk.bf16.mxu1 %vm6334_vm3, %v5036_v3  ;;  %v8008_v42 = vrot.slane %v4300_v9, %v9029_v59  ;;  %v8011_v35 = vrot.slane %v4303_v31, %v9029_v59  ;;  %v8014_v15 = vrot.slane %v4303_v31, %v9030_v24 }
 0x2e7   : > { %2785 = vrot.lane.b32.xlu0 %v7749_v56, %s8867_s20  ;;  %v4404_v56 = vld [vmem:[%s8767_s7 + $0x388] sm:$0xff]  ;;  %v8026_v58 = vrot.slane %v4304_v50, %v9030_v24 }
 0x2e8   : > { %2787 = vrot.lane.b32.xlu1 %v7765_v20, %s8867_s20  ;;  %v5039_v20 = vpack.c.bf16 %v2843_v51, %v2842_v28  ;;  %v5041_v2 = vpack.c.bf16 %v4404_v56, %v4403_v49  ;;  %v4308_v28 = vld [vmem:[%s8763_s3 + $0x15] ss:$8 sm:$0x3]  ;;  %v2328_v9 = vmul.f32 %v8008_v42, %v7669_v39 }
 0x2e9   : > { %5007 = vmatpush3.bf16.msra.mxu0 %v5006_v30  ;;  %v8033_v30 = vrot.slane %v4304_v50, %v9029_v59 }
 0x2ea   : > { %5040 = vmatpush3.bf16.msra.mxu1 %v5039_v20  ;;  %5042 = vmatprep.subr.bf16.mxu0 %v5041_v2  ;;  %v2329_v20 = vmul.f32 %v8002_v32, %v7677_v27 }
 0x2eb   : > { %2357 = vrot.lane.b32.xlu0 %v7696_v1, %s8869_s18  ;;  %5075 = vmatprep.subr.bf16.mxu1 %v5074_v29  ;;  %v8038_v29 = vrot.slane %v4307_v44, %v9029_v59 }
 0x2ec   : > { %2359 = vrot.lane.b32.xlu1 %v7701_v26, %s8869_s18 }
 0x2ef   : > { %2413 = vrot.lane.b32.xlu0 %v7696_v1, %s8867_s20 }
 0x2f0   : > { %2415 = vrot.lane.b32.xlu1 %v7701_v26, %s8867_s20 }
 0x2f3   : > { %2545 = vrot.lane.b32.xlu0 %v7709_v16, %s8869_s18 }
 0x2f4   : > { %2547 = vrot.lane.b32.xlu1 %v7727_v17, %s8869_s18 }
 0x2f7   : > { %2601 = vrot.lane.b32.xlu0 %v7709_v16, %s8867_s20  ;;  %v4302_v16 = vld [vmem:[%s8763_s3 + $0x12] ss:$8 sm:$0x3] }
 0x2f8   : > { %2603 = vrot.lane.b32.xlu1 %v7727_v17, %s8867_s20  ;;  %v2295_v17 = vld [vmem:[%s8763_s3] ss:$8 sm:$0x3]  ;;  %v7996_v10 = vrot.slane %v4302_v16, %v9029_v59 }
 0x2f9   : > { %v7990_v41 = vrot.slane %v2295_v17, %v9030_v24  ;;  %v8005_v8 = vrot.slane %v2295_v17, %v9029_v59 }
 0x2fb   : > { %2733 = vrot.lane.b32.xlu0 %v7712_v19, %s8869_s18  ;;  %v2308_v48 = vmul.f32 %v7990_v41, %v7677_v27  ;;  %v2307_v17 = vmul.f32 %v8005_v8, %v7669_v39  ;;  %v8051_v27 = vrot.slane %v4308_v28, %v9030_v24  ;;  %v4310_v39 = vld [vmem:[%s8763_s3 + $0x16] ss:$8 sm:$0x3] }
 0x2fc   : > { %2735 = vrot.lane.b32.xlu1 %v7730_v12, %s8869_s18  ;;  %v8071_v53 = vrot.slane %v4310_v39, %v9029_v59  ;;  %s5222_s18 = sshll.u32 %s5289_s21, 4  ;;  %s5223_s18 = int_to_ptr.vmem [resolvable:$false] %s5222_s18 }
 0x2fd   : > { %p5225_p3 = scmp.lt.s32.totalorder %s3943_s27, %s5223_s18 }
 0x2ff   : > { %2789 = vrot.lane.b32.xlu0 %v7712_v19, %s8867_s20  ;;  %v7981_v19 = vrot.slane %v4301_v63, %v9030_v24  ;;  %v8041_v63 = vrot.slane %v4307_v44, %v9030_v24 }
 0x300   : > { %2791 = vrot.lane.b32.xlu1 %v7730_v12, %s8867_s20  ;;  %v7984_v12 = vrot.slane %v4302_v16, %v9030_v24  ;;  %v8044_v16 = vrot.slane %v4308_v28, %v9029_v59  ;;  %s551_s20 = scalar_lea.vmem %s8761_s1, %s4055_s25 }
 0x345   : > { %v2354_v38 = vpop.permute.xlu0 %2353 }
 0x346   : > { %v2356_v5 = vpop.permute.xlu1 %2355 }
 0x347   : > { %v2361_v51 = vsel %vm658_vm5, %v2354_v38, %v2356_v5  ;;  %v2368_v49 = vmul.f32 %v2356_v5, %v7981_v19  ;;  %v2389_v56 = vmul.f32 %v7984_v12, %v2356_v5  ;;  %v4309_v38 = vld [vmem:[%s8763_s3 + $0x5] ss:$8 sm:$0x3] }
 0x348   : > { %v2367_v36 = vmul.f32 %v2361_v51, %v7993_v54  ;;  %v2388_v3 = vmul.f32 %v7996_v10, %v2361_v51 }
 0x349   : > { %v2410_v2 = vpop.permute.xlu0 %2409  ;;  %v2372_v31 = vadd.f32 %v2368_v49, %v2308_v48  ;;  %v2393_v5 = vadd.f32 %v2389_v56, %v2329_v20  ;;  %v8065_v56 = vrot.slane %v4309_v38, %v9029_v59  ;;  %v8068_v20 = vrot.slane %v4309_v38, %v9030_v24  ;;  %v4315_v38 = vld [vmem:[%s8763_s3 + $0x10] ss:$8 sm:$0x3] }
 0x34a   : > { %v2412_v50 = vpop.permute.xlu1 %2411  ;;  %v2371_v49 = vadd.f32 %v2367_v36, %v2307_v17  ;;  %v2392_v48 = vadd.f32 %v2388_v3, %v2328_v9  ;;  %v8074_v36 = vrot.slane %v4310_v39, %v9030_v24  ;;  %v8118_v4 = vrot.slane %v4315_v38, %v9030_v24 }
 0x34b   : > { %v2417_v44 = vsel %vm745_vm4, %v2410_v2, %v2412_v50  ;;  %v2424_v51 = vmul.f32 %v2412_v50, %v8014_v15  ;;  %v2445_v46 = vmul.f32 %v8026_v58, %v2412_v50 }
 0x34c   : > { %v2423_v28 = vmul.f32 %v2417_v44, %v8011_v35  ;;  %v2444_v13 = vmul.f32 %v8033_v30, %v2417_v44 }
 0x34d   : > { %v2428_v18 = vadd.f32 %v2424_v51, %v2372_v31  ;;  %v2449_v6 = vadd.f32 %v2445_v46, %v2393_v5  ;;  %v2542_v47 = vpop.permute.xlu0 %2541  ;;  %v4313_v46 = vld [vmem:[%s8763_s3 + $0x7] ss:$8 sm:$0x3] }
 0x34e   : > { %v2427_v2 = vadd.f32 %v2423_v28, %v2371_v49  ;;  %v2448_v50 = vadd.f32 %v2444_v13, %v2392_v48  ;;  %v2544_v62 = vpop.permute.xlu1 %2543  ;;  %v4314_v13 = vld [vmem:[%s8763_s3 + $0x20] ss:$8 sm:$0x3]  ;;  %v8098_v51 = vrot.slane %v4313_v46, %v9030_v24 }
 0x34f   : > { %v2484_v3 = vadd.f32 %v7818_v14, %v2428_v18  ;;  %v2519_v17 = vadd.f32 %v7823_v23, %v2449_v6  ;;  %v2549_v9 = vsel %vm658_vm5, %v2542_v47, %v2544_v62  ;;  %v2556_v31 = vmul.f32 %v2544_v62, %v8041_v63 }
 0x350   : > { %v2483_v5 = vadd.f32 %v7772_v0, %v2427_v2  ;;  %v2518_v44 = vadd.f32 %v7793_v11, %v2448_v50  ;;  %v2555_v14 = vmul.f32 %v2549_v9, %v8038_v29  ;;  %v2576_v23 = vmul.f32 %v8044_v16, %v2549_v9 }
 0x351   : > { %v2577_v47 = vmul.f32 %v8051_v27, %v2544_v62  ;;  %v2598_v18 = vpop.permute.xlu0 %2597  ;;  %v8095_v6 = vrot.slane %v4313_v46, %v9029_v59  ;;  %v2560_v39 = vadd.f32 %v2556_v31, %v2484_v3  ;;  %v8101_v48 = vrot.slane %v4314_v13, %v9029_v59  ;;  %v4316_v62 = vld [vmem:[%s8763_s3 + $0x21] ss:$8 sm:$0x3] }
 0x352   : > { %v2600_v49 = vpop.permute.xlu1 %2599  ;;  %v8104_v0 = vrot.slane %v4314_v13, %v9030_v24  ;;  %v8107_v11 = vrot.slane %v4315_v38, %v9029_v59  ;;  %v2559_v3 = vadd.f32 %v2555_v14, %v2483_v5  ;;  %v2580_v9 = vadd.f32 %v2576_v23, %v2518_v44  ;;  %v8133_v44 = vld [vmem:[%s8767_s7 + $0x300] sm:$0xff] }
 0x353   : > { %v2581_v28 = vadd.f32 %v2577_v47, %v2519_v17  ;;  %v2605_v2 = vsel %vm745_vm4, %v2598_v18, %v2600_v49  ;;  %v2612_v50 = vmul.f32 %v2600_v49, %v8068_v20  ;;  %v2633_v46 = vmul.f32 %v8074_v36, %v2600_v49  ;;  %v8143_v38 = vld [vmem:[%s8767_s7 + $0x100] sm:$0xff] }
 0x354   : > { %v2611_v31 = vmul.f32 %v2605_v2, %v8065_v56  ;;  %v2632_v13 = vmul.f32 %v8071_v53, %v2605_v2  ;;  %v8121_v17 = vrot.slane %v4316_v62, %v9029_v59  ;;  %v8124_v49 = vrot.slane %v4316_v62, %v9030_v24  ;;  %v8138_v59 = vld [vmem:[%s8767_s7 + $0x308] sm:$0xff]  ;;  %v8157_v62 = vld [vmem:[%s8767_s7 + $0x390] sm:$0xff] }
 0x355   : > { %v2616_v25 = vadd.f32 %v2612_v50, %v2560_v39  ;;  %v2637_v61 = vadd.f32 %v2633_v46, %v2581_v28  ;;  %v2730_v7 = vpop.permute.xlu0 %2729  ;;  %v8128_v5 = vmul.f32 %v8005_v8, %v7696_v1  ;;  %v8152_v39 = vld [vmem:[%s8767_s7 + $0x108] sm:$0xff]  ;;  %v8171_v50 = vmul.f32 %v8008_v42, %v7696_v1  ;;  %v8199_v42 = vld [vmem:[%s8767_s7 + $0x318] sm:$0xff] }
 0x356   : > { %v2615_v47 = vadd.f32 %v2611_v31, %v2559_v3  ;;  %v2636_v18 = vadd.f32 %v2632_v13, %v2580_v9  ;;  %v2732_v55 = vpop.permute.xlu1 %2731  ;;  %v2310_v46 = vmul.f32 %v7990_v41, %v7701_v26  ;;  %v8177_v3 = vmul.f32 %v8002_v32, %v7701_v26  ;;  %v8194_v32 = vld [vmem:[%s8767_s7 + $0x310] sm:$0xff] }
 0x357   : > { %v2672_v24 = vadd.f32 %v7888_v45, %v2616_v25  ;;  %v2707_v8 = vadd.f32 %v7907_v33, %v2637_v61  ;;  %v2737_v14 = vsel %vm658_vm5, %v2730_v7, %v2732_v55  ;;  %v2744_v23 = vmul.f32 %v2732_v55, %v8098_v51  ;;  %v8162_v25 = vld [vmem:[%s8767_s7 + $0x398] sm:$0xff]  ;;  %v8204_v31 = vld [vmem:[%s8767_s7 + $0x110] sm:$0xff] }
 0x358   : > { %v2671_v61 = vadd.f32 %v7883_v43, %v2615_v47  ;;  %v2706_v7 = vadd.f32 %v7902_v40, %v2636_v18  ;;  %v2743_v45 = vmul.f32 %v2737_v14, %v8095_v6  ;;  %v2764_v33 = vmul.f32 %v8101_v48, %v2737_v14  ;;  %v4373_v43 = vld [vmem:[%s8767_s7 + $0x190] sm:$0xff] }
 0x359   : > { %v2765_v28 = vmul.f32 %v8104_v0, %v2732_v55  ;;  %v2786_v2 = vpop.permute.xlu0 %2785  ;;  %v4374_v55 = vld [vmem:[%s8767_s7 + $0x198] sm:$0xff]  ;;  %v2748_v40 = vadd.f32 %v2744_v23, %v2672_v24  ;;  %v5043_v1 = vpack.c.bf16 %v8138_v59, %v8133_v44  ;;  %v5076_v41 = vpack.c.bf16 %v8152_v39, %v8143_v38  ;;  %v8217_v38 = vld [vmem:[%s8767_s7 + $0x3a0] sm:$0xff]  ;;  %v8222_v24 = vld [vmem:[%s8767_s7 + $0x3a8] sm:$0xff] }
 0x35a   : > { %v2788_v9 = vpop.permute.xlu1 %2787  ;;  %v5045_v26 = vpack.c.bf16 %v8162_v25, %v8157_v62  ;;  %v8212_v59 = vld [vmem:[%s8767_s7 + $0x118] sm:$0xff]  ;;  %v2768_v14 = vadd.f32 %v2764_v33, %v2706_v7  ;;  %v8229_v62 = vld [vmem:[%s8767_s7 + $0x1a0] sm:$0xff]  ;;  %v8234_v25 = vld [vmem:[%s8767_s7 + $0x1a8] sm:$0xff]  ;;  %v5078_v33 = vpack.c.bf16 %v4374_v55, %v4373_v43 }
 0x35b   : > { %v2769_v13 = vadd.f32 %v2765_v28, %v2707_v8  ;;  %v2793_v47 = vsel %vm745_vm4, %v2786_v2, %v2788_v9  ;;  %v2800_v18 = vmul.f32 %v2788_v9, %v8118_v4  ;;  %v2821_v44 = vmul.f32 %v8124_v49, %v2788_v9  ;;  %v8239_v28 = vld [vmem:[%s8767_s7 + $0x320] sm:$0xff]  ;;  %v8250_v9 = vld [vmem:[%s8767_s7 + $0x328] sm:$0xff] }
 0x35c   : > { %v2747_v8 = vadd.f32 %v2743_v45, %v2671_v61  ;;  %v2799_v23 = vmul.f32 %v2793_v47, %v8107_v11  ;;  %v2820_v39 = vmul.f32 %v8121_v17, %v2793_v47  ;;  %v5047_v2 = vpack.c.bf16 %v8199_v42, %v8194_v32  ;;  %v8255_v47 = vld [vmem:[%s8767_s7 + $0x120] sm:$0xff] }
 0x35d   : > { %v8241_v61 = vadd.f32 %v2800_v18, %v2748_v40  ;;  %v8243_v7 = vadd.f32 %v2821_v44, %v2769_v13  ;;  %v2358_v45 = vpop.permute.xlu0 %2357  ;;  %v8260_v40 = vld [vmem:[%s8767_s7 + $0x128] sm:$0xff]  ;;  %v5080_v32 = vpack.c.bf16 %v8212_v59, %v8204_v31  ;;  %v5049_v42 = vpack.c.bf16 %v8222_v24, %v8217_v38  ;;  %v8273_v18 = vld [vmem:[%s8767_s7 + $0x3b0] sm:$0xff]  ;;  %v8278_v44 = vld [vmem:[%s8767_s7 + $0x3b8] sm:$0xff] }
 0x35e   : > { %v8262_v13 = vadd.f32 %v2799_v23, %v2747_v8  ;;  %v8264_v43 = vadd.f32 %v2820_v39, %v2768_v14  ;;  %v2360_v55 = vpop.permute.xlu1 %2359  ;;  %v8283_v8 = vld [vmem:[%s8767_s7 + $0x1b0] sm:$0xff]  ;;  %v8295_v24 = vld [vmem:[%s8767_s7 + $0x1b8] sm:$0xff]  ;;  %v5082_v39 = vpack.c.bf16 %v8234_v25, %v8229_v62 }
 0x35f   : > { %9032 = vst [vmem:[#allocation27_spill] sm:$0xff] %v8241_v61  ;;  %v2362_v31 = vsel %vm658_vm5, %v2358_v45, %v2360_v55  ;;  %v2370_v59 = vmul.f32 %v2360_v55, %v7981_v19  ;;  %v2391_v38 = vmul.f32 %v7984_v12, %v2360_v55  ;;  %4350 = vmatprep.mubr.msk.f32.mxu0 %vm745_vm4, %v8243_v7  ;;  %v8300_v14 = vld [vmem:[%s8767_s7 + $0x330] sm:$0xff]  ;;  %v8305_v19 = vld [vmem:[%s8767_s7 + $0x338] sm:$0xff] }
 0x360   : > { %9033 = vst [vmem:[#allocation29_spill] sm:$0xff] %v8262_v13  ;;  %4353 = vmatprep.mubr.msk.f32.mxu1 %vm745_vm4, %v8241_v61  ;;  %v2369_v12 = vmul.f32 %v2362_v31, %v7993_v54  ;;  %v2390_v23 = vmul.f32 %v7996_v10, %v2362_v31  ;;  %2967 = vmatmul.mubr.f32.vlgmr.msra.gmra.mrb[12].mxu0 %v8264_v43  ;;  %v8331_v62 = vld [vmem:[%s8767_s7 + $0x138] sm:$0xff] }
 0x361   : > { %3051 = vmatmul.mubr.f32.vlgmr.msra.gmra.mrb[12].mxu1 %v8262_v13  ;;  %5044 = vmatpush3.bf16.msra.mxu0 %v5043_v1  ;;  %v2414_v45 = vpop.permute.xlu0 %2413  ;;  %v5051_v55 = vpack.c.bf16 %v8250_v9, %v8239_v28  ;;  %v5084_v61 = vpack.c.bf16 %v8260_v40, %v8255_v47  ;;  %v5053_v54 = vpack.c.bf16 %v8278_v44, %v8273_v18  ;;  %v8345_v9 = vld [vmem:[%s8767_s7 + $0x3c8] sm:$0xff] }
 0x362   : > { %5077 = vmatpush3.bf16.msra.mxu1 %v5076_v41  ;;  %v2374_v10 = vadd.f32 %v2370_v59, %v2310_v46  ;;  %v2416_v31 = vpop.permute.xlu1 %2415  ;;  %5046 = vmatprep.subr.bf16.mxu0 %v5045_v26  ;;  %v5086_v13 = vpack.c.bf16 %v8295_v24, %v8283_v8  ;;  %v5055_v1 = vpack.c.bf16 %v8305_v19, %v8300_v14  ;;  %v8326_v41 = vld [vmem:[%s8767_s7 + $0x130] sm:$0xff]  ;;  %v4379_v59 = vld [vmem:[%s8767_s7 + $0x1c0] sm:$0xff]  ;;  %v4416_v19 = vld [vmem:[%s8767_s7 + $0x3e8] sm:$0xff] }
 0x363   : > { %5079 = vmatprep.subr.bf16.mxu1 %v5078_v33  ;;  %v2395_v46 = vadd.f32 %v2391_v38, %v8177_v3  ;;  %v2418_v26 = vsel %vm745_vm4, %v2414_v45, %v2416_v31  ;;  %v2426_v25 = vmul.f32 %v2416_v31, %v8014_v15  ;;  %v2447_v28 = vmul.f32 %v8026_v58, %v2416_v31  ;;  %v8340_v33 = vld [vmem:[%s8767_s7 + $0x3c0] sm:$0xff]  ;;  %v4364_v31 = vld [vmem:[%s8767_s7 + $0x148] sm:$0xff] }
 0x364   : > { %v2373_v47 = vadd.f32 %v2369_v12, %v8128_v5  ;;  %v2394_v3 = vadd.f32 %v2390_v23, %v8171_v50  ;;  %v2425_v40 = vmul.f32 %v2418_v26, %v8011_v35  ;;  %v2446_v15 = vmul.f32 %v8033_v30, %v2418_v26  ;;  %v4380_v5 = vld [vmem:[%s8767_s7 + $0x1c8] sm:$0xff]  ;;  %v8374_v24 = vld [vmem:[%s8767_s7 + $0x140] sm:$0xff] }
 0x365   : > { %v2430_v18 = vadd.f32 %v2426_v25, %v2374_v10  ;;  %v2451_v58 = vadd.f32 %v2447_v28, %v2395_v46  ;;  %5048 = vmatpush3.bf16.msra.mxu0 %v5047_v2  ;;  %v2546_v44 = vpop.permute.xlu0 %2545  ;;  %v5088_v8 = vpack.c.bf16 %v8331_v62, %v8326_v41  ;;  %v5057_v30 = vpack.c.bf16 %v8345_v9, %v8340_v33  ;;  %v8364_v2 = vld [vmem:[%s8767_s7 + $0x340] sm:$0xff]  ;;  %v8388_v41 = vld [vmem:[%s8767_s7 + $0x3d0] sm:$0xff] }
 0x366   : > { %5081 = vmatpush3.bf16.msra.mxu1 %v5080_v32  ;;  %v2429_v50 = vadd.f32 %v2425_v40, %v2373_v47  ;;  %v2450_v35 = vadd.f32 %v2446_v15, %v2394_v3  ;;  %v2548_v38 = vpop.permute.xlu1 %2547  ;;  %5050 = vmatprep.subr.bf16.mxu0 %v5049_v42  ;;  %v8369_v32 = vld [vmem:[%s8767_s7 + $0x348] sm:$0xff]  ;;  %v9034_v42 = vrot.slane %v7775_v34, 1  ;;  %v9035_v23 = vrot.slane %v7778_v21, 1  ;;  %v8393_v34 = vld [vmem:[%s8767_s7 + $0x3d8] sm:$0xff]  ;;  %v4415_v14 = vld [vmem:[%s8767_s7 + $0x3e0] sm:$0xff] }
 0x367   : > { %5083 = vmatprep.subr.bf16.mxu1 %v5082_v39  ;;  %v2550_v45 = vsel %vm658_vm5, %v2546_v44, %v2548_v38  ;;  %v2558_v10 = vmul.f32 %v2548_v38, %v8041_v63  ;;  %v9036_v21 = vrot.slane %v7716_v22, 1  ;;  %v9037_v46 = vrot.slane %v7734_v60, 1  ;;  %v4398_v15 = vld [vmem:[%s8767_s7 + $0x358] sm:$0xff] }
 0x368   : > { %v2486_v12 = vadd.f32 %v9034_v42, %v2430_v18  ;;  %v2521_v39 = vadd.f32 %v9035_v23, %v2451_v58  ;;  %v2557_v26 = vmul.f32 %v2550_v45, %v8038_v29  ;;  %v2578_v25 = vmul.f32 %v8044_v16, %v2550_v45  ;;  %v4381_v29 = vld [vmem:[%s8767_s7 + $0x1d0] sm:$0xff]  ;;  %v4382_v16 = vld [vmem:[%s8767_s7 + $0x1d8] sm:$0xff]  ;;  %v4399_v45 = vld [vmem:[%s8767_s7 + $0x360] sm:$0xff] }
 0x369   : > { %v2485_v62 = vadd.f32 %v9036_v21, %v2429_v50  ;;  %v2520_v63 = vadd.f32 %v9037_v46, %v2450_v35  ;;  %v2579_v28 = vmul.f32 %v8051_v27, %v2548_v38  ;;  %5052 = vmatpush3.bf16.msra.mxu0 %v5051_v55  ;;  %v2602_v33 = vpop.permute.xlu0 %2601  ;;  %v5090_v9 = vpack.c.bf16 %v4380_v5, %v4379_v59  ;;  %v4365_v35 = vld [vmem:[%s8767_s7 + $0x150] sm:$0xff]  ;;  %v4366_v38 = vld [vmem:[%s8767_s7 + $0x158] sm:$0xff]  ;;  %v9041_v46 = vld [vmem:[#allocation24_spill] sm:$0xff] }
 0x36a   : > { %5085 = vmatpush3.bf16.msra.mxu1 %v5084_v61  ;;  %v5059_v47 = vpack.c.bf16 %v8369_v32, %v8364_v2  ;;  %v2562_v3 = vadd.f32 %v2558_v10, %v2486_v12  ;;  %v2604_v40 = vpop.permute.xlu1 %2603  ;;  %5054 = vmatprep.subr.bf16.mxu0 %v5053_v54  ;;  %v5092_v22 = vpack.c.bf16 %v4364_v31, %v8374_v24  ;;  %v4397_v54 = vld [vmem:[%s8767_s7 + $0x350] sm:$0xff]  ;;  %v9039_v42 = vrot.slane %v7849_v37, 2 }
 0x36b   : > { %5087 = vmatprep.subr.bf16.mxu1 %v5086_v13  ;;  %v5061_v60 = vpack.c.bf16 %v8393_v34, %v8388_v41  ;;  %v2583_v27 = vadd.f32 %v2579_v28, %v2521_v39  ;;  %v2606_v61 = vsel %vm745_vm4, %v2602_v33, %v2604_v40  ;;  %v2614_v55 = vmul.f32 %v2604_v40, %v8068_v20  ;;  %v4384_v39 = vld [vmem:[%s8767_s7 + $0x1e8] sm:$0xff] }
 0x36c   : > { %v2635_v13 = vmul.f32 %v8074_v36, %v2604_v40  ;;  %v2561_v18 = vadd.f32 %v2557_v26, %v2485_v62  ;;  %v2582_v58 = vadd.f32 %v2578_v25, %v2520_v63  ;;  %v2613_v44 = vmul.f32 %v2606_v61, %v8065_v56  ;;  %v4417_v40 = vld [vmem:[%s8767_s7 + $0x3f0] sm:$0xff] }
 0x36d   : > { %v2634_v59 = vmul.f32 %v8071_v53, %v2606_v61  ;;  %v2618_v5 = vadd.f32 %v2614_v55, %v2562_v3  ;;  %5056 = vmatpush3.bf16.msra.mxu0 %v5055_v1  ;;  %v2734_v20 = vpop.permute.xlu0 %2733  ;;  %v5094_v36 = vpack.c.bf16 %v4382_v16, %v4381_v29  ;;  %v5063_v32 = vpack.c.bf16 %v4398_v15, %v4397_v54  ;;  %v4383_v1 = vld [vmem:[%s8767_s7 + $0x1e0] sm:$0xff]  ;;  %v4402_v15 = vld [vmem:[%s8767_s7 + $0x378] sm:$0xff] }
 0x36e   : > { %v2639_v50 = vadd.f32 %v2635_v13, %v2583_v27  ;;  %5089 = vmatpush3.bf16.msra.mxu1 %v5088_v8  ;;  %v2617_v56 = vadd.f32 %v2613_v44, %v2561_v18  ;;  %v2736_v53 = vpop.permute.xlu1 %2735  ;;  %5058 = vmatprep.subr.bf16.mxu0 %v5057_v30  ;;  %v9038_v8 = vrot.slane %v7836_v57, 2  ;;  %v4400_v57 = vld [vmem:[%s8767_s7 + $0x368] sm:$0xff]  ;;  %v5096_v21 = vpack.c.bf16 %v4366_v38, %v4365_v35  ;;  %v4418_v27 = vld [vmem:[%s8767_s7 + $0x3f8] sm:$0x3f]  ;;  %v4369_v18 = vld [vmem:[%s8767_s7 + $0x170] sm:$0xff] }
 0x36f   : > { %v2638_v2 = vadd.f32 %v2634_v59, %v2582_v58  ;;  %5091 = vmatprep.subr.bf16.mxu1 %v5090_v9  ;;  %v2738_v12 = vsel %vm658_vm5, %v2734_v20, %v2736_v53  ;;  %v2746_v23 = vmul.f32 %v2736_v53, %v8098_v51  ;;  %v2767_v31 = vmul.f32 %v8104_v0, %v2736_v53  ;;  %v4370_v58 = vld [vmem:[%s8767_s7 + $0x178] sm:$0xff]  ;;  %v9043_v20 = vld [vmem:[#allocation27_spill] sm:$0xff]  ;;  %v9045_v35 = vld [vmem:[#allocation29_spill] sm:$0xff] }
 0x370   : > { %v2674_v24 = vadd.f32 %v9038_v8, %v2618_v5  ;;  %v2709_v30 = vadd.f32 %v9039_v42, %v2639_v50  ;;  %v2745_v10 = vmul.f32 %v2738_v12, %v8095_v6  ;;  %v2766_v37 = vmul.f32 %v8101_v48, %v2738_v12  ;;  %v4367_v48 = vld [vmem:[%s8767_s7 + $0x160] sm:$0xff] }
 0x371   : > { %v9040_v51 = vrot.slane %v7846_v52, 2  ;;  %5060 = vmatpush3.bf16.msra.mxu0 %v5059_v47  ;;  %v2790_v34 = vpop.permute.xlu0 %2789  ;;  %v5065_v62 = vpack.c.bf16 %v4416_v19, %v4415_v14  ;;  %v9042_v63 = vrot.slane %v9041_v46, 2  ;;  %v5098_v6 = vpack.c.bf16 %v4384_v39, %v4383_v1  ;;  %v4368_v52 = vld [vmem:[%s8767_s7 + $0x168] sm:$0xff] }
 0x372   : > { %5093 = vmatpush3.bf16.msra.mxu1 %v5092_v22  ;;  %v2750_v25 = vadd.f32 %v2746_v23, %v2674_v24  ;;  %v2792_v28 = vpop.permute.xlu1 %2791  ;;  %5062 = vmatprep.subr.bf16.mxu0 %v5061_v60  ;;  %v5067_v33 = vpack.c.bf16 %v4400_v57, %v4399_v45  ;;  %v2771_v0 = vadd.f32 %v2767_v31, %v2709_v30  ;;  %v9046_v38 = vmov 0.0  }
 0x373   : > { %v2708_v41 = vadd.f32 %v9040_v51, %v2638_v2  ;;  %v2673_v26 = vadd.f32 %v9042_v63, %v2617_v56  ;;  %5095 = vmatprep.subr.bf16.mxu1 %v5094_v36  ;;  %v2794_v9 = vsel %vm745_vm4, %v2790_v34, %v2792_v28  ;;  %v2802_v47 = vmul.f32 %v2792_v28, %v8118_v4  ;;  %v4385_v4 = vld [vmem:[%s8767_s7 + $0x1f0] sm:$0xff]  ;;  %v3684_v36 = vld [vmem:[%s8771_s11 + $0x8] sm:$0xff] }
 0x374   : > { %v2823_v3 = vmul.f32 %v8124_v49, %v2792_v28  ;;  %v2801_v22 = vmul.f32 %v2794_v9, %v8107_v11  ;;  %v2822_v60 = vmul.f32 %v8121_v17, %v2794_v9  ;;  %v4386_v49 = vld [vmem:[%s8767_s7 + $0x1f8] sm:$0x3f]  ;;  %v5100_v11 = vpack.c.bf16 %v4368_v52, %v4367_v48  ;;  %v4401_v17 = vld [vmem:[%s8767_s7 + $0x370] sm:$0xff]  ;;  %v4427_v48 = vld [vmem:[%s8768_s8 + $0x8] sm:$0x7f] }
 0x375   : > { %v2770_v29 = vadd.f32 %v2766_v37, %v2708_v41  ;;  %v2749_v16 = vadd.f32 %v2745_v10, %v2673_v26  ;;  %v2806_v61 = vadd.f32 %v2802_v47, %v2750_v25  ;;  %5064 = vmatpush3.bf16.msra.mxu0 %v5063_v32  ;;  %v5069_v44 = vpack.c.bf16 %v4418_v27, %v4417_v40  ;;  %v3448_v52 = vld [vmem:[%s8770_s10] sm:$0xff]  ;;  %v3450_v27 = vld [vmem:[%s8770_s10 + $0x10] sm:$0xff] }
 0x376   : > { %v2827_v55 = vadd.f32 %v2823_v3, %v2771_v0  ;;  %5097 = vmatpush3.bf16.msra.mxu1 %v5096_v21  ;;  %5066 = vmatprep.subr.bf16.mxu0 %v5065_v62  ;;  %v5102_v59 = vpack.c.bf16 %v4386_v49, %v4385_v4  ;;  %v5072_v5 = vpack.c.bf16 %v4402_v15, %v4401_v17  ;;  %v4430_v47 = vld [vmem:[%s8769_s9] ss:$0 sm:$0xff]  ;;  %v3451_v4 = vld [vmem:[%s8770_s10 + $0x18] sm:$0xff] }
 0x377   : > { %5099 = vmatprep.subr.bf16.mxu1 %v5098_v6  ;;  %v2826_v13 = vadd.f32 %v2822_v60, %v2770_v29  ;;  %v2805_v54 = vadd.f32 %v2801_v22, %v2749_v16  ;;  %4354 = vmatprep.mubr.msk.f32.mxu1 %vm745_vm4, %v2806_v61  ;;  %v5105_v50 = vpack.c.bf16 %v4370_v58, %v4369_v18  ;;  %v3449_v16 = vld [vmem:[%s8770_s10 + $0x8] sm:$0xff]  ;;  %v3452_v49 = vld [vmem:[%s8770_s10 + $0x20] sm:$0xff]  ;;  %v3459_v15 = vld [vmem:[%s8770_s10 + $0x58] sm:$0xff] }
 0x378   : > { %4351 = vmatprep.mubr.msk.f32.mxu0 %vm745_vm4, %v2827_v55  ;;  %v3456_v17 = vld [vmem:[%s8770_s10 + $0x40] sm:$0xff]  ;;  %v3461_v58 = vld [vmem:[%s8770_s10 + $0x68] sm:$0xff] }
 0x379   : > { %2972 = vmatmul.mubr.f32.gmra.mrb[14].mxu0 %v2826_v13  ;;  %3056 = vmatmul.mubr.f32.gmra.mrb[14].mxu1 %v2805_v54  ;;  %v3460_v18 = vld [vmem:[%s8770_s10 + $0x60] sm:$0xff] }
 0x37a   : > { %5068 = vmatpush3.bf16.msra.mxu0 %v5067_v33  ;;  %5101 = vmatpush3.bf16.msra.mxu1 %v5100_v11  ;;  %v3285_v33 = vld [vmem:[%s8768_s8] sm:$0x7f]  ;;  %v3455_v11 = vld [vmem:[%s8770_s10 + $0x38] sm:$0xff] }
 0x37b   : > { %4420 = vmatprep.mubr.msk.f32.mxu0 %vm745_vm4, %v8243_v7  ;;  %4423 = vmatprep.mubr.msk.f32.mxu1 %vm745_vm4, %v9043_v20  ;;  %v5286_v7 = vmov 0.0|0.0   ;;  %v3680_v20 = vld [vmem:[%s8772_s12 + $0x8] sm:$0xff] }
 0x37c   : > { %5071 = vmatprep.subr.msk.bf16.mxu0 %vm6334_vm3, %v5069_v44  ;;  %5104 = vmatprep.subr.msk.bf16.mxu1 %vm6334_vm3, %v5102_v59  ;;  %v3462_v44 = vld [vmem:[%s8770_s10 + $0x70] sm:$0xff]  ;;  %v3463_v59 = vld [vmem:[%s8770_s10 + $0x78] sm:$0xff] }
 0x37e   : > { %5073 = vmatpush3.bf16.msra.mxu0 %v5072_v5  ;;  %5106 = vmatpush3.bf16.msra.mxu1 %v5105_v50  ;;  %v3464_v5 = vld [vmem:[%s8770_s10 + $0x80] sm:$0xff]  ;;  %v3465_v50 = vld [vmem:[%s8770_s10 + $0x88] sm:$0xf] }
 0x37f   : > { %5107 = vmatprep.subr.bf16.mxu0 %v5286_v7  ;;  %5111 = vmatprep.subr.bf16.mxu1 %v5286_v7 }
 0x381   : > { %3195 = vmatmul.mubr.f32.vlgmr.msra.gmra.mrb[16].mxu0 %v8264_v43  ;;  %3273 = vmatmul.mubr.f32.vlgmr.msra.gmra.mrb[16].mxu1 %v9045_v35  ;;  %v3683_v35 = vld [vmem:[%s8771_s11] sm:$0xff] }
 0x382   : > { %4421 = vmatprep.mubr.msk.f32.mxu0 %vm745_vm4, %v2827_v55  ;;  %4424 = vmatprep.mubr.msk.f32.mxu1 %vm745_vm4, %v2806_v61  ;;  %v3453_v61 = vld [vmem:[%s8770_s10 + $0x28] sm:$0xff]  ;;  %v3454_v55 = vld [vmem:[%s8770_s10 + $0x30] sm:$0xff] }
 0x385   : > { %3200 = vmatmul.mubr.f32.gmra.mrb[18].mxu0 %v2826_v13  ;;  %3278 = vmatmul.mubr.f32.gmra.mrb[18].mxu1 %v2805_v54  ;;  %v3457_v13 = vld [vmem:[%s8770_s10 + $0x48] sm:$0xff]  ;;  %v3458_v54 = vld [vmem:[%s8770_s10 + $0x50] sm:$0xff] }
 0x386   : > { %4645 = vmatprep.mubr.msk.f32.mxu0 %vm5287_vm9, %v9046_v38  ;;  %4652 = vmatprep.mubr.msk.f32.mxu1 %vm5287_vm9, %v9046_v38 }
 0x433   : > { %v4493_v43 = vpop.f32.mrb[12].mxu0 }
 0x434   : > { %v4531_v56 = vpop.f32.mrb[12].mxu1  ;;  %v4494_v2 = vpop.f32.mrb[13].mxu0 }
 0x435   : > { %v4532_v53 = vpop.f32.mrb[13].mxu1  ;;  %v4495_v32 = vadd.f32 %v4494_v2, %v4493_v43 }
 0x436   : > { %v4533_v14 = vadd.f32 %v4532_v53, %v4531_v56 }
 0x438   : > { %v3053_v19 = vadd.f32 %v4533_v14, %v4495_v32  ;;  %v3685_v32 = vld [vmem:[%s8771_s11 + $0x10] sm:$0xff] }
 0x44c   : > { %v4496_v1 = vpop.f32.mrb[14].mxu0  ;;  %v4534_v8 = vpop.f32.mrb[14].mxu1 }
 0x44d   : > { %v4497_v24 = vpop.f32.mrb[15].mxu0  ;;  %v4535_v42 = vpop.f32.mrb[15].mxu1 }
 0x44e   : > { %v4498_v30 = vadd.f32 %v4497_v24, %v4496_v1  ;;  %v4536_v12 = vadd.f32 %v4535_v42, %v4534_v8  ;;  %v3688_v42 = vld [vmem:[%s8771_s11 + $0x28] sm:$0xff] }
 0x450   : > { %v3058_v23 = vadd.f32 %v4536_v12, %v4498_v30  ;;  %v3687_v30 = vld [vmem:[%s8771_s11 + $0x20] sm:$0xff] }
 0x454   : > { %v4569_v39 = vpop.f32.mrb[16].mxu0  ;;  %v4607_v45 = vpop.f32.mrb[16].mxu1 }
 0x455   : > { %v4570_v57 = vpop.f32.mrb[17].mxu0  ;;  %v4608_v10 = vpop.f32.mrb[17].mxu1 }
 0x456   : > { %v4571_v37 = vadd.f32 %v4570_v57, %v4569_v39  ;;  %v4609_v31 = vadd.f32 %v4608_v10, %v4607_v45  ;;  %v3690_v10 = vld [vmem:[%s8771_s11 + $0x38] sm:$0xff] }
 0x458   : > { %v3275_v51 = vadd.f32 %v4609_v31, %v4571_v37  ;;  %v4572_v41 = vpop.f32.mrb[18].mxu0  ;;  %v4610_v34 = vpop.f32.mrb[18].mxu1  ;;  %v3689_v37 = vld [vmem:[%s8771_s11 + $0x30] sm:$0xff] }
 0x459   : > { %v4573_v21 = vpop.f32.mrb[19].mxu0  ;;  %v4611_v62 = vpop.f32.mrb[19].mxu1 }
 0x45a   : > { %v3283_v46 = vmax.f32 %v3053_v19, %v3275_v51  ;;  %v4574_v63 = vadd.f32 %v4573_v21, %v4572_v41  ;;  %v4612_v26 = vadd.f32 %v4611_v62, %v4610_v34  ;;  %v3692_v62 = vld [vmem:[%s8771_s11 + $0x48] sm:$0xff] }
 0x45c   : > { %v3280_v25 = vadd.f32 %v4612_v26, %v4574_v63 }
 0x45e   : > { %v3284_v28 = vmax.f32 %v3058_v23, %v3280_v25 }
 0x460   : > { %v5108_v6 = vpack.c.bf16 %v3284_v28, %v3283_v46  ;;  %v3691_v46 = vld [vmem:[%s8771_s11 + $0x40] sm:$0xff] }
 0x462   : > { %5110 = vmatpush3.bf16.msk.msra.mxu0 %vm6334_vm3, %v5108_v6  ;;  %5114 = vmatpush3.bf16.msk.msra.mxu1 %vm6334_vm3, %v5108_v6 }
 0x463   : > { %5115 = vmatprep.subr.bf16.mxu1 %v5286_v7 }
 0x465   : > { %4646 = vmatmul.mubr.msk.f32.vlgmr.msra.gmra.mrb[20].mxu0 %vm3286_vm10, %v3285_v33  ;;  %4653 = vmatmul.mubr.msk.f32.vlgmr.msra.gmra.mrb[20].mxu1 %vm3286_vm10, %v4427_v48  ;;  %v3694_v33 = vld [vmem:[%s8771_s11 + $0x58] sm:$0xff]  ;;  %v3693_v48 = vld [vmem:[%s8771_s11 + $0x50] sm:$0xff] }
 0x466   : > { %4657 = vmatprep.mubr.msk.f32.mxu0 %vm3466_vm11, %v3448_v52  ;;  %4451 = vmatprep.mubr.msk.f32.mxu1 %vm3719_vm12, %v3680_v20 }
 0x538   : > { %v3359_v0 = vpop.f32.mrb[20].mxu0  ;;  %v3434_v9 = vpop.f32.mrb[20].mxu1 }
 0x539   : > { %v3438_v3 = vmax.f32 %v3359_v0, %v3434_v9  ;;  %v4647_v40 = vpop.f32.mrb[21].mxu0  ;;  %v4654_v22 = vpop.f32.mrb[21].mxu1 }
 0x53a   : > { %v3696_v40 = vld [vmem:[%s8771_s11 + $0x68] sm:$0xff]  ;;  %v3695_v22 = vld [vmem:[%s8771_s11 + $0x60] sm:$0xff] }
 0x53b   : > { %v3446_v60 = vadd.f32 %v4430_v47, %v3438_v3 }
 0x53d   : > { %v3447_v29 = vmax.f32 %v3446_v60, 0.0 }
 0x53f   : > { %4655 = vmatprep.subr.msk.mxu0 %vm836_vm0, %v3447_v29 }
 0x540   : > { %4656 = vmatpush3.msk.msra.mxu0 %vm836_vm0, %v3447_v29 }
 0x541   : > { %4658 = vmatmul.mubr.msk.f32.vlgmr.msra.gmra.mrb[22].mxu0 %vm3466_vm11, %v3449_v16  ;;  %5143 = vmatprep.subr.bf16.mxu0 %v5286_v7 }
 0x542   : > { %4660 = vmatprep.mubr.msk.f32.mxu0 %vm3466_vm11, %v3450_v27 }
 0x545   : > { %4661 = vmatmul.mubr.msk.f32.gmra.mrb[24].mxu0 %vm3466_vm11, %v3451_v4 }
 0x546   : > { %4663 = vmatprep.mubr.msk.f32.mxu0 %vm3466_vm11, %v3452_v49  ;;  %v3698_v49 = vld [vmem:[%s8771_s11 + $0x78] sm:$0xff] }
 0x549   : > { %4664 = vmatmul.mubr.msk.f32.gmra.mrb[26].mxu0 %vm3466_vm11, %v3453_v61  ;;  %v3697_v61 = vld [vmem:[%s8771_s11 + $0x70] sm:$0xff] }
 0x54a   : > { %4666 = vmatprep.mubr.msk.f32.mxu0 %vm3466_vm11, %v3454_v55 }
 0x54d   : > { %4667 = vmatmul.mubr.msk.f32.gmra.mrb[28].mxu0 %vm3466_vm11, %v3455_v11 }
 0x54e   : > { %4669 = vmatprep.mubr.msk.f32.mxu0 %vm3466_vm11, %v3456_v17 }
 0x551   : > { %4670 = vmatmul.mubr.msk.f32.gmra.mrb[30].mxu0 %vm3466_vm11, %v3457_v13 }
 0x552   : > { %4672 = vmatprep.mubr.msk.f32.mxu0 %vm3466_vm11, %v3458_v54 }
 0x555   : > { %4673 = vmatmul.mubr.msk.f32.gmra.mrb[32].mxu0 %vm3466_vm11, %v3459_v15  ;;  %v3700_v15 = vld [vmem:[%s8771_s11 + $0x88] sm:$0xf] }
 0x556   : > { %4675 = vmatprep.mubr.msk.f32.mxu0 %vm3466_vm11, %v3460_v18  ;;  %v3699_v18 = vld [vmem:[%s8771_s11 + $0x80] sm:$0xff] }
 0x559   : > { %4676 = vmatmul.mubr.msk.f32.gmra.mrb[34].mxu0 %vm3466_vm11, %v3461_v58 }
 0x55a   : > { %4678 = vmatprep.mubr.msk.f32.mxu0 %vm3466_vm11, %v3462_v44 }
 0x55d   : > { %4679 = vmatmul.mubr.msk.f32.gmra.mrb[36].mxu0 %vm3466_vm11, %v3463_v59 }
 0x55e   : > { %4681 = vmatprep.mubr.msk.f32.mxu0 %vm3466_vm11, %v3464_v5 }
 0x561   : > { %4682 = vmatmul.mubr.msk.f32.gmra.mrb[38].mxu0 %vm3466_vm11, %v3465_v50 }
 0x562   : > { %4688 = vmatprep.mubr.msk.f32.mxu0 %vm5287_vm9, %v9046_v38  ;;  %v3686_v38 = vld [vmem:[%s8771_s11 + $0x18] sm:$0xff] }
 0x614   : > { %v4659_v43 = vpop.f32.mrb[22].mxu0 }
 0x615   : > { %v3702_v56 = vmul.f32 %v4659_v43, %v3684_v36  ;;  %v3590_v2 = vpop.f32.mrb[23].mxu0  ;;  %v3682_v43 = vld [vmem:[%s8772_s12 + $0x18] sm:$0x3] }
 0x616   : > { %v3701_v53 = vmul.f32 %v3683_v35, %v3590_v2  ;;  %v3679_v35 = vld [vmem:[%s8772_s12] sm:$0xff] }
 0x618   : > { %v5116_v14 = vpack.c.bf16 %v3702_v56, %v3701_v53  ;;  %v4662_v19 = vpop.f32.mrb[24].mxu0 }
 0x619   : > { %v3704_v1 = vmul.f32 %v4662_v19, %v3686_v38  ;;  %v3600_v8 = vpop.f32.mrb[25].mxu0 }
 0x61a   : > { %v3703_v24 = vmul.f32 %v3685_v32, %v3600_v8  ;;  %5117 = vmatpush1.bf16.msra.mxu1 %v5116_v14  ;;  %v3804_v14 = vld [vmem:[%s8773_s13] sm:$0xff] }
 0x61b   : > { %5118 = vmatprep.subr.bf16.mxu1 %v5286_v7 }
 0x61c   : > { %v5119_v12 = vpack.c.bf16 %v3704_v1, %v3703_v24  ;;  %v4665_v23 = vpop.f32.mrb[26].mxu0 }
 0x61d   : > { %v3706_v39 = vmul.f32 %v4665_v23, %v3688_v42  ;;  %v3610_v45 = vpop.f32.mrb[27].mxu0 }
 0x61e   : > { %v3705_v57 = vmul.f32 %v3687_v30, %v3610_v45  ;;  %5120 = vmatpush1.bf16.msra.mxu1 %v5119_v12 }
 0x61f   : > { %5121 = vmatprep.subr.bf16.mxu1 %v5286_v7 }
 0x620   : > { %v5122_v31 = vpack.c.bf16 %v3706_v39, %v3705_v57  ;;  %v4668_v51 = vpop.f32.mrb[28].mxu0  ;;  %v5288_v39 = vmov 0  }
 0x621   : > { %v3708_v41 = vmul.f32 %v4668_v51, %v3690_v10  ;;  %v3620_v34 = vpop.f32.mrb[29].mxu0  ;;  %5209 = vset.pattern.permute.xlu0 %v5288_v39 }
 0x622   : > { %v3707_v21 = vmul.f32 %v3689_v37, %v3620_v34  ;;  %5123 = vmatpush1.bf16.msra.mxu1 %v5122_v31  ;;  %v3912_v31 = vld [vmem:[%s551_s20] sm:$0xff]  ;;  %s5224_s20 = scalar_lea.vmem %s5223_s18, 256 }
 0x623   : > { %5124 = vmatprep.subr.bf16.mxu1 %v5286_v7  ;;  %p5226_p4 = scmp.lt.s32.totalorder %s5224_s20, %s5218_s19 }
 0x624   : > { %v5125_v63 = vpack.c.bf16 %v3708_v41, %v3707_v21  ;;  %v4671_v26 = vpop.f32.mrb[30].mxu0  ;;  %v9048_v21 = vlaneseq }
 0x625   : > { %v3710_v25 = vmul.f32 %v4671_v26, %v3692_v62  ;;  %v3630_v28 = vpop.f32.mrb[31].mxu0  ;;  %p5227_p5 = por %p5226_p4, %p5225_p3 }
 0x626   : > { %v3709_v6 = vmul.f32 %v3691_v46, %v3630_v28  ;;  %5126 = vmatpush1.bf16.msra.mxu1 %v5125_v63  ;;  %v3911_v62 = vand.u32 127, %v9048_v21 }
 0x627   : > { %5127 = vmatprep.subr.bf16.mxu1 %v5286_v7  ;;  %p5228_p7 = pnand %p5227_p5, %p5221_p2 }
 0x628   : > { %v5128_v52 = vpack.c.bf16 %v3710_v25, %v3709_v6  ;;  %v4674_v0 = vpop.f32.mrb[32].mxu0 }
 0x629   : > { %v3712_v9 = vmul.f32 %v4674_v0, %v3694_v33  ;;  %v3640_v47 = vpop.f32.mrb[33].mxu0 }
 0x62a   : > { %v3711_v3 = vmul.f32 %v3693_v48, %v3640_v47  ;;  %5129 = vmatpush1.bf16.msra.mxu1 %v5128_v52 }
 0x62b   : > { %5130 = vmatprep.subr.bf16.mxu1 %v5286_v7 }
 0x62c   : > { %v5131_v60 = vpack.c.bf16 %v3712_v9, %v3711_v3  ;;  %v4677_v29 = vpop.f32.mrb[34].mxu0 }
 0x62d   : > { %v3714_v16 = vmul.f32 %v4677_v29, %v3696_v40  ;;  %v3650_v27 = vpop.f32.mrb[35].mxu0 }
 0x62e   : > { %v3713_v4 = vmul.f32 %v3695_v22, %v3650_v27  ;;  %5132 = vmatpush1.bf16.msra.mxu1 %v5131_v60 }
 0x62f   : > { %5133 = vmatprep.subr.bf16.mxu1 %v5286_v7 }
 0x630   : > { %v5134_v55 = vpack.c.bf16 %v3714_v16, %v3713_v4  ;;  %v4680_v11 = vpop.f32.mrb[36].mxu0 }
 0x631   : > { %v3716_v17 = vmul.f32 %v4680_v11, %v3698_v49  ;;  %v3660_v13 = vpop.f32.mrb[37].mxu0 }
 0x632   : > { %v3715_v54 = vmul.f32 %v3697_v61, %v3660_v13  ;;  %5135 = vmatpush1.bf16.msra.mxu1 %v5134_v55 }
 0x633   : > { %5136 = vmatprep.subr.bf16.mxu1 %v5286_v7 }
 0x634   : > { %v5137_v58 = vpack.c.bf16 %v3716_v17, %v3715_v54  ;;  %v4683_v44 = vpop.f32.mrb[38].mxu0 }
 0x635   : > { %v3718_v59 = vmul.f32 %v4683_v44, %v3700_v15  ;;  %v3670_v5 = vpop.f32.mrb[39].mxu0 }
 0x636   : > { %v3717_v50 = vmul.f32 %v3699_v18, %v3670_v5  ;;  %5138 = vmatpush1.bf16.msra.mxu1 %v5137_v58 }
 0x637   : > { %5139 = vmatprep.subr.bf16.mxu1 %v5286_v7  ;;  %v3681_v7 = vld [vmem:[%s8772_s12 + $0x10] sm:$0x3] }
 0x638   : > { %v5140_v20 = vpack.c.bf16 %v3718_v59, %v3717_v50 }
 0x63a   : > { %5142 = vmatpush1.bf16.msk.msra.mxu1 %vm7526_vm7, %v5140_v20 }
 0x63d   : > { %3794 = vmatmul.mubr.f32.vlgmr.msra.gmra.mrb[22].mxu1 %v3679_v35 }
 0x63e   : > { %4452 = vmatprep.mubr.msk.f32.mxu1 %vm3719_vm12, %v3682_v43 }
 0x641   : > { %3799 = vmatmul.mubr.f32.gmra.mrb[24].mxu1 %v3681_v7 }
 0x710   : > { %v3795_v56 = vpop.f32.mrb[22].mxu1 }
 0x711   : > { %v3797_v2 = vpop.f32.mrb[23].mxu1 }
 0x714   : > { %v3800_v53 = vpop.f32.mrb[24].mxu1 }
 0x715   : > { %v5144_v38 = vpack.c.bf16 %v3800_v53, %v3795_v56  ;;  %v3802_v32 = vpop.f32.mrb[25].mxu1 }
 0x717   : > { %5146 = vmatpush3.bf16.xpose.msk.msra.mxu0 %vm5145_vm14, %v5144_v38 }
 0x71e   : > { %4689 = vmatmul.mubr.msk.f32.vlgmr.msra.gmra.mrb[40].mxu0 %vm3805_vm13, %v3804_v14 }
 0x7f1   : > { %v3881_v19 = vpop.f32.mrb[40].mxu0 }
 0x7f2   : > { %v3887_v1 = vsel %vm3885_vm15, %v3881_v19, -inf  ;;  %v4690_v8 = vpop.f32.mrb[41].mxu0  ;;  %3886 = vst.msk [vmem:[%s8693_s24] sm:$0xff] %vm3885_vm15, %v3881_v19 }
 0x7f3   : > { %3888 = vmax.xlane.f32.xlu0 %v3887_v1 }
 0x880   : > { %v3889_v24 = vpop.xlane.xlu0 %3888 }
 0x881   : > { %v3890_v42 = vsub.f32 %v3881_v19, %v3889_v24 }
 0x883   : > { %v3891_v30 = vmul.f32 1.442695, %v3890_v42 }
 0x885   : > { %5210 = vpow2.f32 %v3891_v30 }
 0x88f   : > { %v5211_v12 = vpop.eup %5210 }
 0x890   : > { %v3893_v23 = vsel %vm3885_vm15, %v5211_v12, 0.0 }
 0x891   : > { %3894 = vadd.xlane.f32.xlu1 %v3893_v23 }
 0x91e   : > { %v3895_v45 = vpop.xlane.xlu1 %3894 }
 0x91f   : > { %5212 = vrcp.f32 %v3895_v45 }
 0x929   : > { %v5213_v57 = vpop.eup %5212 }
 0x92a   : > { %v3897_v10 = vmul.f32 %v5213_v57, %v5211_v12 }
 0x92c   : > { %v3898_v37 = vsel %vm3885_vm15, %v3897_v10, -inf }
 0x92d   : > { %3899 = vmax.xlane.f32.xlu0 %v3898_v37 }
 0x943   : > { %3914 = vperm.xlu0 %5209, %v3912_v31  }
 0x9ba   : > { %v3900_v51 = vpop.xlane.xlu0 %3899 }
 0x9bb   : > { %v3901_v41 = vsub.f32 %v3897_v10, %v3900_v51 }
 0x9bd   : > { %v3902_v34 = vmul.f32 1.442695, %v3901_v41 }
 0x9bf   : > { %5214 = vpow2.f32 %v3902_v34 }
 0x9c2   : > { %v3915_v46 = vpop.permute.xlu0 %3914 }
 0x9c3   : > { %vm3916_vm0 = vcmp.eq.s32.totalorder %v3911_v62, %v3915_v46 }
 0x9c4   : > { %v3917_v25 = vsel %vm3916_vm0, %v3897_v10, 0.0 }
 0x9c5   : > { %v3918_v28 = vsel %vm3885_vm15, %v3917_v25, 0.0 }
 0x9c9   : > { %v5215_v63 = vpop.eup %5214 }
 0x9ca   : > { %v3904_v26 = vsel %vm3885_vm15, %v5215_v63, 0.0 }
 0x9cb   : > { %3905 = vadd.xlane.f32.xlu1 %v3904_v26 }
 0x9cf   : > { %3919 = vadd.xlane.f32.xlu1 %v3918_v28 }
 0x9d0   : > { %5231 = shalt.err (!%p5228_p7)
}
 0x9d1   : > { %s5232_s22 = scalar_lea.hbm %s8716_s17, 128  ;;  %s5236_s29 = scalar_lea.hbm %s8774_s14, 256 }
 0x9d2   : > { %p5233_p10 = scmp.ne.s32.totalorder %s8716_s17, %s5232_s22  ;;  %p5237_p13 = scmp.lt.u32.totalorder %s8716_s17, %s8774_s14 }
 0x9d3   : > { %p5238_p0 = scmp.lt.u32.totalorder %s5236_s29, %s5232_s22  ;;  %p5240_p2 = scmp.lt.u32.totalorder %s5232_s22, %s8716_s17 }
 0x9d4   : > { %p5234_p11 = pnand %p5233_p10, %p5409_p6 }
 0x9d5   : > { %p5239_p1 = por %p5238_p0, %p5237_p13 }
 0x9d6   : > { %p5235_p12 = pneg %p5234_p11 }
 0x9d7   : > { %p5241_p3 = por %p5240_p2, %p5239_p1 }
 0x9d9   : > { %p5242_p4 = pnand %p5241_p3, %p5235_p12 }
 0x9db   : > { %5245 = shalt.err (!%p5242_p4)
}
 0x9dc   : > { %5163 = dma.vmem_to_hbm [thread:$0]  (%p5409_p6), %s3943_s27, 128, %s8716_s17, %s3925_s16   ;;  %vm3922_vm1 = vcmask 7168  }
 0x9dd   : > { %s555_s18 = scalar_lea.vmem %s8775_s15, %s4055_s25 }
 0xa58   : > { %v3906_v6 = vpop.xlane.xlu1 %3905 }
 0xa59   : > { %5216 = vlog2.f32 %v3906_v6 }
 0xa5c   : > { %v3920_v0 = vpop.xlane.xlu1 %3919 }
 0xa63   : > { %v5217_v33 = vpop.eup %5216 }
 0xa64   : > { %v3908_v48 = vmul.f32 0.6931472, %v5217_v33 }
 0xa66   : > { %v3909_v52 = vadd.f32 %v3908_v48, %v3900_v51 }
 0xa68   : > { %v3921_v9 = vsub.f32 %v3909_v52, %v3920_v0 }
 0xa6a   : > { %3923 = vst.msk [vmem:[%s555_s18] sm:$0xff] %vm3922_vm1, %v3921_v9 }
 0xa6b PF: > { %s9049_s20 = sld [smem:[#allocation6_spill]]  ;;  %p5166_p6 = pnand %p4048_p9, %p5413_p8 }
 0xa71   : > { %s3957_s30 = sand.u32 1, %s9049_s20  }
 0xa72   : > { %s3958_s17 = scalar_lea.sflag [#allocation4], %s3957_s30 }
 0xa73   : > { %5263 = dma.done.wait (!%p5166_p6), %s3958_s17, 128  }
 0xa74   : > { %5265 = vsyncadd (!%p5166_p6), %s3958_s17, 4294967168  ;;  %s9052_s21 = sld [smem:[#allocation10_spill]]  ;;  %s9053_s18 = sld [smem:[#allocation7_spill]] }
 0xa75   : > { %s9054_s19 = sld [smem:[#allocation8_spill]]  ;;  %s9055_s20 = sld [smem:[#allocation11_spill]] }
 0xa7a   : > { %p26_p5 = scmp.ge.s32.totalorder %s9052_s21, 4  }
 0xa7c   :  { %28 = sbr.rel (!%p26_p5) target bundleno = 5 (0x5), region = 196 }
 0xa83   :  { %3970 = vsyncpa [#allocation4], 1 }
 0xa84   :  { %3972 = vsyncpa [#allocation4 + $0x1], 1 }

</bundles_post_ra>
